<compile_context>
chip_gen: v7x
topology: tpu7x:2x2x1
jax: 0.10.0
libtpu: 0.0.40
codegen_flags: <defaults>
</compile_context>

<pallas_src>
import math

import jax
import jax.numpy as jnp
from jax.experimental import pallas as pl
from jax.experimental.pallas import tpu as pltpu


def get_cnn_out_size(h, w, k, stride, dilation=1, padding=0):
    oh = math.floor((h + 2 * padding - dilation * (k - 1) - 1) / stride + 1)
    ow = math.floor((w + 2 * padding - dilation * (k - 1) - 1) / stride + 1)
    return oh, ow


def _ceil_to(x, m):
    return ((x + m - 1) // m) * m


# ----------------------------------------------------------------------------
# Kernel 1: conv1 -> relu -> conv2 -> relu.   One grid step = Bblk images.
# Activations are channel-major (channels, Bblk*P1): batch*spatial composite in
# the lane dim (a multiple of 128 -> fully dense vregs).
# ----------------------------------------------------------------------------
def make_conv_kernel(shifts, c1):
    def conv_kernel(p_ref, w1_ref, b1_ref, w2_ref, b2_ref, o_ref, f1_scr, g_scr):
        L = p_ref.shape[1]                        # Bblk * P1 (multiple of 128)

        # conv1: (C1, K1) @ (K1, L) on the MXU, f32 accumulate.
        a1 = jnp.dot(w1_ref[...], p_ref[...], preferred_element_type=jnp.float32)
        feat1 = jnp.maximum(a1 + b1_ref[...], 0.0).astype(jnp.bfloat16)

        # Stash conv1 output with a zero tail so shifted slices never read OOB.
        f1_scr[:, :L] = feat1
        pad = f1_scr.shape[1] - L
        f1_scr[:, L:L + pad] = jnp.zeros((c1, pad), jnp.bfloat16)

        # conv2 im2col: stack the 9 statically shifted copies along sublanes.
        # Values shifted in from a neighbouring image / the zero tail only ever
        # land on spatially-invalid output columns, which are multiplied by the
        # zero rows of the padded fc1 weight downstream.
        for t, sh in enumerate(shifts):
            g_scr[t * c1:(t + 1) * c1, :] = f1_scr[:, sh:sh + L]

        # conv2: ONE (C2, 9*C1) @ (9*C1, L) MXU matmul (no selection matmuls,
        # no per-tap accumulator round trips).
        a2 = jnp.dot(w2_ref[...], g_scr[...], preferred_element_type=jnp.float32)
        o_ref[...] = jnp.maximum(a2 + b2_ref[...], 0.0).astype(o_ref.dtype)

    return conv_kernel


# ----------------------------------------------------------------------------
# Kernel 2: fc1 -> relu -> fc2 -> relu.  One grid step = Bblk images; fc1 is a
# single (Bblk, 4608) x (4608, 512) matmul (K = 18 full 256-wide MXU tiles).
# ----------------------------------------------------------------------------
def fc_kernel(x_ref, wf1_ref, bf1_ref, wf2_ref, bf2_ref, o_ref):
    h = jnp.dot(x_ref[...], wf1_ref[...], preferred_element_type=jnp.float32)
    h = jnp.maximum(h + bf1_ref[...], 0.0).astype(jnp.bfloat16)
    y = jnp.dot(h, wf2_ref[...], preferred_element_type=jnp.float32) + bf2_ref[...]
    o_ref[...] = jnp.maximum(y, 0.0)


# ----------------------------------------------------------------------------
# Forward wrapper
# ----------------------------------------------------------------------------
@jax.jit
def cnn_base_forward(kp, x):
    """x: (B, C, H, W) float32 -> (B, hidden_size) float32."""
    B, C, H, W = x.shape
    k1, k2 = 5, 3
    oh1, ow1 = H - k1 + 1, W - k1 + 1
    P1 = oh1 * ow1                       # conv1 output positions (12*12 = 144)
    C1, K1 = kp["w1"].shape              # (16, 100)
    C2, KC = kp["w2"].shape              # (32, 144)
    KF, F1 = kp["wf1"].shape             # (C2*P1 = 4608, 512)
    HID = kp["wf2"].shape[1]

    # Batch block: up to 128 images per grid step (VMEM-sized for v7x too).
    Bblk = 128 if B >= 128 else _ceil_to(B, 8)
    Bpad = _ceil_to(B, Bblk)
    L = Bblk * P1

    # conv1 im2col in the wrapper; feature order (Cin, kh, kw) matches w1.
    # TODO(synk): per the v5e review note this im2col could move in-kernel to
    # cut HBM traffic; kept in the wrapper here for simplicity.
    p = jax.lax.conv_general_dilated_patches(x, (k1, k1), (1, 1), "VALID")
    p = p.reshape(B, K1, P1)
    if Bpad != B:
        p = jnp.pad(p, ((0, Bpad - B), (0, 0), (0, 0)))
    p = jnp.transpose(p, (1, 0, 2)).reshape(K1, Bpad * P1).astype(jnp.bfloat16)

    shifts = tuple(di * ow1 + dj for di in range(k2) for dj in range(k2))

    conv_cost = pl.CostEstimate(
        flops=2 * Bpad * P1 * (K1 * C1 + KC * C2),
        transcendentals=0,
        bytes_accessed=int(p.size) * 2 + C2 * Bpad * P1 * 2
        + (C1 * K1 + C2 * KC) * 2)

    feat2 = pl.pallas_call(
        make_conv_kernel(shifts, C1),
        out_shape=jax.ShapeDtypeStruct((C2, Bpad * P1), jnp.bfloat16),
        grid=(Bpad // Bblk,),
        in_specs=[
            pl.BlockSpec((K1, L), lambda g: (0, g)),     # conv1 patches block
            pl.BlockSpec((C1, K1), lambda g: (0, 0)),    # w1   (resident)
            pl.BlockSpec((C1, 1), lambda g: (0, 0)),     # b1
            pl.BlockSpec((C2, KC), lambda g: (0, 0)),    # conv2 taps (C2, 9*C1)
            pl.BlockSpec((C2, 1), lambda g: (0, 0)),     # b2
        ],
        out_specs=pl.BlockSpec((C2, L), lambda g: (0, g)),
        scratch_shapes=[
            pltpu.VMEM((C1, L + 128), jnp.bfloat16),     # conv1 act + zero tail
            pltpu.VMEM((KC, L), jnp.bfloat16),           # conv2 im2col operand
        ],
        compiler_params=pltpu.CompilerParams(
            dimension_semantics=("parallel",),
            vmem_limit_bytes=40 * 1024 * 1024),
        cost_estimate=conv_cost,
    )(p, kp["w1"], kp["b1"], kp["w2"], kp["b2"])

    # conv -> fc relayout: contiguous reshape + cheap XLA transpose of the
    # small bf16 intermediate (~9 KB/image).  Row b, lanes ordered c*P1 + s,
    # which is exactly the row order of the zero-padded fc1 weight.
    xfc = feat2.reshape(C2, Bpad, P1).transpose(1, 0, 2).reshape(Bpad, KF)

    fc_cost = pl.CostEstimate(
        flops=2 * Bpad * (KF * F1 + F1 * HID),
        transcendentals=0,
        bytes_accessed=Bpad * KF * 2 + KF * F1 * 2 + F1 * HID * 2
        + Bpad * HID * 4)

    out = pl.pallas_call(
        fc_kernel,
        out_shape=jax.ShapeDtypeStruct((Bpad, HID), jnp.float32),
        grid=(Bpad // Bblk,),
        in_specs=[
            pl.BlockSpec((Bblk, KF), lambda g: (g, 0)),  # fc input block
            pl.BlockSpec((KF, F1), lambda g: (0, 0)),    # fc1 weight (resident)
            pl.BlockSpec((1, F1), lambda g: (0, 0)),     # b_fc1
            pl.BlockSpec((F1, HID), lambda g: (0, 0)),   # fc2 weight
            pl.BlockSpec((1, HID), lambda g: (0, 0)),    # b_fc2
        ],
        out_specs=pl.BlockSpec((Bblk, HID), lambda g: (g, 0)),
        compiler_params=pltpu.CompilerParams(
            dimension_semantics=("parallel",),
            vmem_limit_bytes=40 * 1024 * 1024),
        cost_estimate=fc_cost,
    )(xfc, kp["wf1"], kp["bf1"], kp["wf2"], kp["bf2"])

    return out[:B]


# ----------------------------------------------------------------------------
# Parameter construction / rearrangement (done ONCE, outside the hot path)
# ----------------------------------------------------------------------------
def init_cnn_base_params(key, hidden_size, obs_shape):
    """Torch-layout parameters (weights stored bf16, biases f32)."""
    C, H, W = obs_shape
    k1, k2 = 5, 3
    c1, c2 = hidden_size // 2, hidden_size
    oh, ow = get_cnn_out_size(H, W, k1, 1)
    oh, ow = get_cnn_out_size(oh, ow, k2, 1)
    fc_in = hidden_size * oh * ow
    keys = jax.random.split(key, 4)
    gain = math.sqrt(2.0)

    # TODO(synk): torch orthogonal init not reproduced exactly; deterministic
    # scaled normal (gain=sqrt(2)) keeps forward-pass magnitudes equivalent.
    def w(k, shape, fan_in):
        return (jax.random.normal(k, shape, jnp.float32)
                * (gain / math.sqrt(fan_in))).astype(jnp.bfloat16)

    return {
        "w_conv1": w(keys[0], (c1, C, k1, k1), C * k1 * k1),
        "b_conv1": jnp.zeros((c1,), jnp.float32),
        "w_conv2": w(keys[1], (c2, c1, k2, k2), c1 * k2 * k2),
        "b_conv2": jnp.zeros((c2,), jnp.float32),
        "w_fc1": w(keys[2], (512, fc_in), fc_in),
        "b_fc1": jnp.zeros((512,), jnp.float32),
        "w_fc2": w(keys[3], (hidden_size, 512), 512),
        "b_fc2": jnp.zeros((hidden_size,), jnp.float32),
    }


def prepare_kernel_params(params, obs_shape):
    """Rearrange torch-layout params into kernel-ready bf16 layouts (once)."""
    C, H, W = obs_shape
    k1, k2 = 5, 3
    c1 = params["w_conv1"].shape[0]
    c2 = params["w_conv2"].shape[0]
    oh1, ow1 = get_cnn_out_size(H, W, k1, 1)
    oh2, ow2 = get_cnn_out_size(oh1, ow1, k2, 1)
    bf16, f32 = jnp.bfloat16, jnp.float32

    # conv1: (C1, C*k1*k1) — matches the (Cin, kh, kw) patch feature order.
    w1 = params["w_conv1"].reshape(c1, C * k1 * k1).astype(bf16)
    b1 = params["b_conv1"].reshape(c1, 1).astype(f32)

    # conv2 taps flattened into K: column order (di, dj, ci) == g row order.
    w2 = jnp.transpose(params["w_conv2"], (0, 2, 3, 1)).reshape(
        c2, k2 * k2 * c1).astype(bf16)
    b2 = params["b_conv2"].reshape(c2, 1).astype(f32)

    # fc1 weight: torch column c*oh2*ow2 + i*ow2 + j  ->  kernel row
    # c*oh1*ow1 + i*ow1 + j, with zero rows for the padded (invalid) spatial
    # positions of the 12x12 grid.  This folds the 12x12 -> 10x10 compaction.
    nf1 = params["w_fc1"].shape[0]
    wf1 = params["w_fc1"].reshape(nf1, c2, oh2, ow2)
    wf1 = jnp.pad(wf1, ((0, 0), (0, 0), (0, oh1 - oh2), (0, ow1 - ow2)))
    wf1 = jnp.transpose(wf1, (1, 2, 3, 0)).reshape(c2 * oh1 * ow1, nf1).astype(bf16)
    bf1 = params["b_fc1"].reshape(1, nf1).astype(f32)

    hid = params["w_fc2"].shape[0]
    wf2 = jnp.transpose(params["w_fc2"]).astype(bf16)          # (512, hid)
    bf2 = params["b_fc2"].reshape(1, hid).astype(f32)

    return dict(w1=w1, b1=b1, w2=w2, b2=b2, wf1=wf1, bf1=bf1, wf2=wf2, bf2=bf2)


# ----------------------------------------------------------------------------
# Pure-JAX reference (f32 math at HIGHEST precision, same bf16-rounded params)
# ----------------------------------------------------------------------------
def cnn_base_reference(params, x):
    f32 = jnp.float32
    hp = jax.lax.Precision.HIGHEST

    def conv(x, w, b):
        y = jax.lax.conv_general_dilated(
            x, w.astype(f32), (1, 1), "VALID",
            dimension_numbers=("NCHW", "OIHW", "NCHW"), precision=hp)
        return jax.nn.relu(y + b[None, :, None, None])

    x = conv(x, params["w_conv1"], params["b_conv1"])
    x = conv(x, params["w_conv2"], params["b_conv2"])
    x = x.reshape(x.shape[0], -1)
    x = jax.nn.relu(jnp.dot(x, params["w_fc1"].astype(f32).T, precision=hp)
                    + params["b_fc1"])
    x = jax.nn.relu(jnp.dot(x, params["w_fc2"].astype(f32).T, precision=hp)
                    + params["b_fc2"])
    return x


if __name__ == "__main__":
    hidden_size = 32
    obs_shape = (4, 16, 16)          # (C, H, W)
    batch = 2

    key = jax.random.PRNGKey(0)
    pkey, xkey = jax.random.split(key)
    params = init_cnn_base_params(pkey, hidden_size, obs_shape)
    kparams = prepare_kernel_params(params, obs_shape)
    x = jax.random.normal(xkey, (batch,) + obs_shape, jnp.float32)

    out = jax.block_until_ready(cnn_base_forward(kparams, x))

    ref = cnn_base_reference(params, x)
    assert out.shape == (batch, hidden_size), out.shape
    # bf16 activations/MXU vs f32-HIGHEST reference -> allow ~1% level error.
    assert jnp.allclose(out, ref, atol=5e-2, rtol=5e-2), \
        float(jnp.max(jnp.abs(out - ref)))

    print("KERNEL_OK")
</pallas_src>

<mosaic_0001>
module attributes {stable_mosaic.version = 11 : i64} {
  func.func @conv_kernel(%arg0: i32, %arg1: memref<100x1152xbf16, #tpu.memory_space<vmem>>, %arg2: memref<16x100xbf16, #tpu.memory_space<vmem>>, %arg3: memref<16x1xf32, #tpu.memory_space<vmem>>, %arg4: memref<32x144xbf16, #tpu.memory_space<vmem>>, %arg5: memref<32x1xf32, #tpu.memory_space<vmem>>, %arg6: memref<32x1152xbf16, #tpu.memory_space<vmem>>, %arg7: memref<16x1280xbf16, #tpu.memory_space<vmem>>, %arg8: memref<144x1152xbf16, #tpu.memory_space<vmem>>) attributes {dimension_semantics = [#tpu.dimension_semantics<parallel>], iteration_bounds = array<i64: 1>, scalar_prefetch = 0 : i64, scratch_operands = 2 : i64, tpu.core_type = #tpu.core_type<tc>, window_params = [{transform_indices = @transform_0, window_bounds = array<i64: 100, 1152>}, {pipeline_mode = #tpu.pipeline_mode<synchronous>, transform_indices = @transform_1, window_bounds = array<i64: 16, 100>}, {pipeline_mode = #tpu.pipeline_mode<synchronous>, transform_indices = @transform_2, window_bounds = array<i64: 16, 1>}, {pipeline_mode = #tpu.pipeline_mode<synchronous>, transform_indices = @transform_3, window_bounds = array<i64: 32, 144>}, {pipeline_mode = #tpu.pipeline_mode<synchronous>, transform_indices = @transform_4, window_bounds = array<i64: 32, 1>}, {transform_indices = @transform_5, window_bounds = array<i64: 32, 1152>}]} {
    %c0 = arith.constant 0 : index
    %c0_0 = arith.constant 0 : index
    %0 = vector.load %arg2[%c0, %c0_0] : memref<16x100xbf16, #tpu.memory_space<vmem>>, vector<16x100xbf16>
    %c0_1 = arith.constant 0 : index
    %c0_2 = arith.constant 0 : index
    %1 = vector.load %arg1[%c0_1, %c0_2] : memref<100x1152xbf16, #tpu.memory_space<vmem>>, vector<100x1152xbf16>
    %cst = arith.constant dense<0.000000e+00> : vector<16x1152xf32>
    %2 = tpu.matmul %0, %1, %cst {dimension_numbers = #tpu.dot_dimension_numbers<[1], [0], [0], [1], [0, 0, 1, 1], [], []>} : vector<16x100xbf16>, vector<100x1152xbf16>, vector<16x1152xf32> -> vector<16x1152xf32>
    %c0_3 = arith.constant 0 : index
    %c0_4 = arith.constant 0 : index
    %3 = vector.load %arg3[%c0_3, %c0_4] : memref<16x1xf32, #tpu.memory_space<vmem>>, vector<16x1xf32>
    %4 = vector.broadcast %3 : vector<16x1xf32> to vector<16x1152xf32>
    %5 = arith.addf %2, %4 : vector<16x1152xf32>
    %cst_5 = arith.constant 0.000000e+00 : f32
    %6 = vector.broadcast %cst_5 : f32 to vector<16x1152xf32>
    %7 = arith.maximumf %5, %6 : vector<16x1152xf32>
    %8 = arith.truncf %7 : vector<16x1152xf32> to vector<16x1152xbf16>
    %c0_6 = arith.constant 0 : index
    %c0_7 = arith.constant 0 : index
    %9 = vector.load %arg7[%c0_6, %c0_7] : memref<16x1280xbf16, #tpu.memory_space<vmem>>, vector<16x1152xbf16>
    tpu.vector_store %arg7[%c0_6, %c0_7], %8 {strides = array<i32>} : memref<16x1280xbf16, #tpu.memory_space<vmem>>, vector<16x1152xbf16>,
    %cst_8 = arith.constant 0.000000e+00 : bf16
    %10 = vector.broadcast %cst_8 : bf16 to vector<16x128xbf16>
    %c0_9 = arith.constant 0 : index
    %c1152 = arith.constant 1152 : index
    %11 = vector.load %arg7[%c0_9, %c1152] : memref<16x1280xbf16, #tpu.memory_space<vmem>>, vector<16x128xbf16>
    tpu.vector_store %arg7[%c0_9, %c1152], %10 {strides = array<i32>} : memref<16x1280xbf16, #tpu.memory_space<vmem>>, vector<16x128xbf16>,
    %c0_10 = arith.constant 0 : index
    %c0_11 = arith.constant 0 : index
    %12 = vector.load %arg7[%c0_10, %c0_11] : memref<16x1280xbf16, #tpu.memory_space<vmem>>, vector<16x1152xbf16>
    %c0_12 = arith.constant 0 : index
    %c0_13 = arith.constant 0 : index
    %13 = vector.load %arg8[%c0_12, %c0_13] : memref<144x1152xbf16, #tpu.memory_space<vmem>>, vector<16x1152xbf16>
    tpu.vector_store %arg8[%c0_12, %c0_13], %12 {strides = array<i32>} : memref<144x1152xbf16, #tpu.memory_space<vmem>>, vector<16x1152xbf16>,
    %c0_14 = arith.constant 0 : index
    %c1 = arith.constant 1 : index
    %14 = vector.load %arg7[%c0_14, %c1] : memref<16x1280xbf16, #tpu.memory_space<vmem>>, vector<16x1152xbf16>
    %c16 = arith.constant 16 : index
    %c0_15 = arith.constant 0 : index
    %15 = vector.load %arg8[%c16, %c0_15] : memref<144x1152xbf16, #tpu.memory_space<vmem>>, vector<16x1152xbf16>
    tpu.vector_store %arg8[%c16, %c0_15], %14 {strides = array<i32>} : memref<144x1152xbf16, #tpu.memory_space<vmem>>, vector<16x1152xbf16>,
    %c0_16 = arith.constant 0 : index
    %c2 = arith.constant 2 : index
    %16 = vector.load %arg7[%c0_16, %c2] : memref<16x1280xbf16, #tpu.memory_space<vmem>>, vector<16x1152xbf16>
    %c32 = arith.constant 32 : index
    %c0_17 = arith.constant 0 : index
    %17 = vector.load %arg8[%c32, %c0_17] : memref<144x1152xbf16, #tpu.memory_space<vmem>>, vector<16x1152xbf16>
    tpu.vector_store %arg8[%c32, %c0_17], %16 {strides = array<i32>} : memref<144x1152xbf16, #tpu.memory_space<vmem>>, vector<16x1152xbf16>,
    %c0_18 = arith.constant 0 : index
    %c12 = arith.constant 12 : index
    %18 = vector.load %arg7[%c0_18, %c12] : memref<16x1280xbf16, #tpu.memory_space<vmem>>, vector<16x1152xbf16>
    %c48 = arith.constant 48 : index
    %c0_19 = arith.constant 0 : index
    %19 = vector.load %arg8[%c48, %c0_19] : memref<144x1152xbf16, #tpu.memory_space<vmem>>, vector<16x1152xbf16>
    tpu.vector_store %arg8[%c48, %c0_19], %18 {strides = array<i32>} : memref<144x1152xbf16, #tpu.memory_space<vmem>>, vector<16x1152xbf16>,
    %c0_20 = arith.constant 0 : index
    %c13 = arith.constant 13 : index
    %20 = vector.load %arg7[%c0_20, %c13] : memref<16x1280xbf16, #tpu.memory_space<vmem>>, vector<16x1152xbf16>
    %c64 = arith.constant 64 : index
    %c0_21 = arith.constant 0 : index
    %21 = vector.load %arg8[%c64, %c0_21] : memref<144x1152xbf16, #tpu.memory_space<vmem>>, vector<16x1152xbf16>
    tpu.vector_store %arg8[%c64, %c0_21], %20 {strides = array<i32>} : memref<144x1152xbf16, #tpu.memory_space<vmem>>, vector<16x1152xbf16>,
    %c0_22 = arith.constant 0 : index
    %c14 = arith.constant 14 : index
    %22 = vector.load %arg7[%c0_22, %c14] : memref<16x1280xbf16, #tpu.memory_space<vmem>>, vector<16x1152xbf16>
    %c80 = arith.constant 80 : index
    %c0_23 = arith.constant 0 : index
    %23 = vector.load %arg8[%c80, %c0_23] : memref<144x1152xbf16, #tpu.memory_space<vmem>>, vector<16x1152xbf16>
    tpu.vector_store %arg8[%c80, %c0_23], %22 {strides = array<i32>} : memref<144x1152xbf16, #tpu.memory_space<vmem>>, vector<16x1152xbf16>,
    %c0_24 = arith.constant 0 : index
    %c24 = arith.constant 24 : index
    %24 = vector.load %arg7[%c0_24, %c24] : memref<16x1280xbf16, #tpu.memory_space<vmem>>, vector<16x1152xbf16>
    %c96 = arith.constant 96 : index
    %c0_25 = arith.constant 0 : index
    %25 = vector.load %arg8[%c96, %c0_25] : memref<144x1152xbf16, #tpu.memory_space<vmem>>, vector<16x1152xbf16>
    tpu.vector_store %arg8[%c96, %c0_25], %24 {strides = array<i32>} : memref<144x1152xbf16, #tpu.memory_space<vmem>>, vector<16x1152xbf16>,
    %c0_26 = arith.constant 0 : index
    %c25 = arith.constant 25 : index
    %26 = vector.load %arg7[%c0_26, %c25] : memref<16x1280xbf16, #tpu.memory_space<vmem>>, vector<16x1152xbf16>
    %c112 = arith.constant 112 : index
    %c0_27 = arith.constant 0 : index
    %27 = vector.load %arg8[%c112, %c0_27] : memref<144x1152xbf16, #tpu.memory_space<vmem>>, vector<16x1152xbf16>
    tpu.vector_store %arg8[%c112, %c0_27], %26 {strides = array<i32>} : memref<144x1152xbf16, #tpu.memory_space<vmem>>, vector<16x1152xbf16>,
    %c0_28 = arith.constant 0 : index
    %c26 = arith.constant 26 : index
    %28 = vector.load %arg7[%c0_28, %c26] : memref<16x1280xbf16, #tpu.memory_space<vmem>>, vector<16x1152xbf16>
    %c128 = arith.constant 128 : index
    %c0_29 = arith.constant 0 : index
    %29 = vector.load %arg8[%c128, %c0_29] : memref<144x1152xbf16, #tpu.memory_space<vmem>>, vector<16x1152xbf16>
    tpu.vector_store %arg8[%c128, %c0_29], %28 {strides = array<i32>} : memref<144x1152xbf16, #tpu.memory_space<vmem>>, vector<16x1152xbf16>,
    %c0_30 = arith.constant 0 : index
    %c0_31 = arith.constant 0 : index
    %30 = vector.load %arg4[%c0_30, %c0_31] : memref<32x144xbf16, #tpu.memory_space<vmem>>, vector<32x144xbf16>
    %c0_32 = arith.constant 0 : index
    %c0_33 = arith.constant 0 : index
    %31 = vector.load %arg8[%c0_32, %c0_33] : memref<144x1152xbf16, #tpu.memory_space<vmem>>, vector<144x1152xbf16>
    %cst_34 = arith.constant dense<0.000000e+00> : vector<32x1152xf32>
    %32 = tpu.matmul %30, %31, %cst_34 {dimension_numbers = #tpu.dot_dimension_numbers<[1], [0], [0], [1], [0, 0, 1, 1], [], []>} : vector<32x144xbf16>, vector<144x1152xbf16>, vector<32x1152xf32> -> vector<32x1152xf32>
    %c0_35 = arith.constant 0 : index
    %c0_36 = arith.constant 0 : index
    %33 = vector.load %arg5[%c0_35, %c0_36] : memref<32x1xf32, #tpu.memory_space<vmem>>, vector<32x1xf32>
    %34 = vector.broadcast %33 : vector<32x1xf32> to vector<32x1152xf32>
    %35 = arith.addf %32, %34 : vector<32x1152xf32>
    %cst_37 = arith.constant 0.000000e+00 : f32
    %36 = vector.broadcast %cst_37 : f32 to vector<32x1152xf32>
    %37 = arith.maximumf %35, %36 : vector<32x1152xf32>
    %38 = arith.truncf %37 : vector<32x1152xf32> to vector<32x1152xbf16>
    %c0_38 = arith.constant 0 : index
    %c0_39 = arith.constant 0 : index
    %39 = vector.load %arg6[%c0_38, %c0_39] : memref<32x1152xbf16, #tpu.memory_space<vmem>>, vector<32x1152xbf16>
    tpu.vector_store %arg6[%c0_38, %c0_39], %38 {strides = array<i32>} : memref<32x1152xbf16, #tpu.memory_space<vmem>>, vector<32x1152xbf16>,
    return
  }
  func.func @transform_0(%arg0: i32) -> (i32, i32) {
    %c0_i32 = arith.constant 0 : i32
    %c0_i32_0 = arith.constant 0 : i32
    return %c0_i32, %arg0 : i32, i32
  }
  func.func @transform_1(%arg0: i32) -> (i32, i32) {
    %c0_i32 = arith.constant 0 : i32
    %c0_i32_0 = arith.constant 0 : i32
    %c0_i32_1 = arith.constant 0 : i32
    return %c0_i32, %c0_i32_0 : i32, i32
  }
  func.func @transform_2(%arg0: i32) -> (i32, i32) {
    %c0_i32 = arith.constant 0 : i32
    %c0_i32_0 = arith.constant 0 : i32
    %c0_i32_1 = arith.constant 0 : i32
    return %c0_i32, %c0_i32_0 : i32, i32
  }
  func.func @transform_3(%arg0: i32) -> (i32, i32) {
    %c0_i32 = arith.constant 0 : i32
    %c0_i32_0 = arith.constant 0 : i32
    %c0_i32_1 = arith.constant 0 : i32
    return %c0_i32, %c0_i32_0 : i32, i32
  }
  func.func @transform_4(%arg0: i32) -> (i32, i32) {
    %c0_i32 = arith.constant 0 : i32
    %c0_i32_0 = arith.constant 0 : i32
    %c0_i32_1 = arith.constant 0 : i32
    return %c0_i32, %c0_i32_0 : i32, i32
  }
  func.func @transform_5(%arg0: i32) -> (i32, i32) {
    %c0_i32 = arith.constant 0 : i32
    %c0_i32_0 = arith.constant 0 : i32
    return %c0_i32, %arg0 : i32, i32
  }
}

module attributes {stable_mosaic.version = 11 : i64} {
  func.func @fc_kernel(%arg0: i32, %arg1: memref<8x4608xbf16, #tpu.memory_space<vmem>>, %arg2: memref<4608x512xbf16, #tpu.memory_space<vmem>>, %arg3: memref<1x512xf32, #tpu.memory_space<vmem>>, %arg4: memref<512x32xbf16, #tpu.memory_space<vmem>>, %arg5: memref<1x32xf32, #tpu.memory_space<vmem>>, %arg6: memref<8x32xf32, #tpu.memory_space<vmem>>) attributes {dimension_semantics = [#tpu.dimension_semantics<parallel>], iteration_bounds = array<i64: 1>, scalar_prefetch = 0 : i64, scratch_operands = 0 : i64, tpu.core_type = #tpu.core_type<tc>, window_params = [{transform_indices = @transform_0, window_bounds = array<i64: 8, 4608>}, {pipeline_mode = #tpu.pipeline_mode<synchronous>, transform_indices = @transform_1, window_bounds = array<i64: 4608, 512>}, {pipeline_mode = #tpu.pipeline_mode<synchronous>, transform_indices = @transform_2, window_bounds = array<i64: 1, 512>}, {pipeline_mode = #tpu.pipeline_mode<synchronous>, transform_indices = @transform_3, window_bounds = array<i64: 512, 32>}, {pipeline_mode = #tpu.pipeline_mode<synchronous>, transform_indices = @transform_4, window_bounds = array<i64: 1, 32>}, {transform_indices = @transform_5, window_bounds = array<i64: 8, 32>}]} {
    %c0 = arith.constant 0 : index
    %c0_0 = arith.constant 0 : index
    %0 = vector.load %arg1[%c0, %c0_0] : memref<8x4608xbf16, #tpu.memory_space<vmem>>, vector<8x4608xbf16>
    %c0_1 = arith.constant 0 : index
    %c0_2 = arith.constant 0 : index
    %1 = vector.load %arg2[%c0_1, %c0_2] : memref<4608x512xbf16, #tpu.memory_space<vmem>>, vector<4608x512xbf16>
    %cst = arith.constant dense<0.000000e+00> : vector<8x512xf32>
    %2 = tpu.matmul %0, %1, %cst {dimension_numbers = #tpu.dot_dimension_numbers<[1], [0], [0], [1], [0, 0, 1, 1], [], []>} : vector<8x4608xbf16>, vector<4608x512xbf16>, vector<8x512xf32> -> vector<8x512xf32>
    %c0_3 = arith.constant 0 : index
    %c0_4 = arith.constant 0 : index
    %3 = vector.load %arg3[%c0_3, %c0_4] : memref<1x512xf32, #tpu.memory_space<vmem>>, vector<1x512xf32>
    %4 = vector.broadcast %3 : vector<1x512xf32> to vector<8x512xf32>
    %5 = arith.addf %2, %4 : vector<8x512xf32>
    %cst_5 = arith.constant 0.000000e+00 : f32
    %6 = vector.broadcast %cst_5 : f32 to vector<8x512xf32>
    %7 = arith.maximumf %5, %6 : vector<8x512xf32>
    %8 = arith.truncf %7 : vector<8x512xf32> to vector<8x512xbf16>
    %c0_6 = arith.constant 0 : index
    %c0_7 = arith.constant 0 : index
    %9 = vector.load %arg4[%c0_6, %c0_7] : memref<512x32xbf16, #tpu.memory_space<vmem>>, vector<512x32xbf16>
    %cst_8 = arith.constant dense<0.000000e+00> : vector<8x32xf32>
    %10 = tpu.matmul %8, %9, %cst_8 {dimension_numbers = #tpu.dot_dimension_numbers<[1], [0], [0], [1], [0, 0, 1, 1], [], []>} : vector<8x512xbf16>, vector<512x32xbf16>, vector<8x32xf32> -> vector<8x32xf32>
    %c0_9 = arith.constant 0 : index
    %c0_10 = arith.constant 0 : index
    %11 = vector.load %arg5[%c0_9, %c0_10] : memref<1x32xf32, #tpu.memory_space<vmem>>, vector<1x32xf32>
    %12 = vector.broadcast %11 : vector<1x32xf32> to vector<8x32xf32>
    %13 = arith.addf %10, %12 : vector<8x32xf32>
    %cst_11 = arith.constant 0.000000e+00 : f32
    %14 = vector.broadcast %cst_11 : f32 to vector<8x32xf32>
    %15 = arith.maximumf %13, %14 : vector<8x32xf32>
    %c0_12 = arith.constant 0 : index
    %c0_13 = arith.constant 0 : index
    %16 = vector.load %arg6[%c0_12, %c0_13] : memref<8x32xf32, #tpu.memory_space<vmem>>, vector<8x32xf32>
    tpu.vector_store %arg6[%c0_12, %c0_13], %15 {strides = array<i32>} : memref<8x32xf32, #tpu.memory_space<vmem>>, vector<8x32xf32>,
    return
  }
  func.func @transform_0(%arg0: i32) -> (i32, i32) {
    %c0_i32 = arith.constant 0 : i32
    %c0_i32_0 = arith.constant 0 : i32
    return %arg0, %c0_i32 : i32, i32
  }
  func.func @transform_1(%arg0: i32) -> (i32, i32) {
    %c0_i32 = arith.constant 0 : i32
    %c0_i32_0 = arith.constant 0 : i32
    %c0_i32_1 = arith.constant 0 : i32
    return %c0_i32, %c0_i32_0 : i32, i32
  }
  func.func @transform_2(%arg0: i32) -> (i32, i32) {
    %c0_i32 = arith.constant 0 : i32
    %c0_i32_0 = arith.constant 0 : i32
    %c0_i32_1 = arith.constant 0 : i32
    return %c0_i32, %c0_i32_0 : i32, i32
  }
  func.func @transform_3(%arg0: i32) -> (i32, i32) {
    %c0_i32 = arith.constant 0 : i32
    %c0_i32_0 = arith.constant 0 : i32
    %c0_i32_1 = arith.constant 0 : i32
    return %c0_i32, %c0_i32_0 : i32, i32
  }
  func.func @transform_4(%arg0: i32) -> (i32, i32) {
    %c0_i32 = arith.constant 0 : i32
    %c0_i32_0 = arith.constant 0 : i32
    %c0_i32_1 = arith.constant 0 : i32
    return %c0_i32, %c0_i32_0 : i32, i32
  }
  func.func @transform_5(%arg0: i32) -> (i32, i32) {
    %c0_i32 = arith.constant 0 : i32
    %c0_i32_0 = arith.constant 0 : i32
    return %arg0, %c0_i32 : i32, i32
  }
}

</mosaic_0001>

<bundles_post_ra>
// kernel: cnn_base_forward.2
= control target key start
LH: loop header
LB: loop body
LE: loop exit
PB: predicated region body
PF: predicated region fallthrough
CT: control target
= control target key end

     0   :  { %10 = vsyncpa [#allocation5], 0  ;;  %s2952_s0 = inlined_call_operand.vmem [shape: bf16[100,1152], index: 0, kind: input, shape index: {}]   ;;  %s2953_s1 = inlined_call_operand.hbm [shape: bf16[16,100], index: 1, kind: input, shape index: {}]   ;;  %s2954_s2 = inlined_call_operand.vmem [shape: f32[16,1], index: 2, kind: input, shape index: {}]   ;;  %s2955_s3 = inlined_call_operand.hbm [shape: bf16[32,144], index: 3, kind: input, shape index: {}]   ;;  %s2956_s4 = inlined_call_operand.vmem [shape: f32[32,1], index: 4, kind: input, shape index: {}]   ;;  %s2957_s5 = inlined_call_operand.vmem [shape: bf16[32,1152], index: 5, kind: output, shape index: {}]  }
   0x1   :  { %11 = vsyncpa [#allocation7], 0  ;;  %s2159_s18 = smov [#allocation4]   ;;  %s2111_s22 = scalar_lea.hbm %s2953_s1, 128 }
   0x2   :  { %s19_s19 = sshll.u32 %s2159_s18, 4  ;;  %p2112_p0 = scmp.ne.s32.totalorder %s2953_s1, %s2111_s22  ;;  %s20_s19 = int_to_ptr.vmem [resolvable:$true] %s19_s19 }
   0x3   :  { %p2115_p1 = scmp.lt.u32.totalorder %s2111_s22, %s2953_s1 }
   0x5   :  { %p2117_p2 = pnand %p2115_p1, %p2112_p0 }
   0x7   :  { %2120 = shalt.err (!%p2117_p2)
}
   0x8   :  { %s2121_s27 = scalar_lea.vmem %s20_s19, 128  ;;  %p2126_p4 = scmp.lt.s32.totalorder %s20_s19, %s20_s19 }
   0x9   :  { %p2122_p3 = scmp.ne.s32.totalorder %s20_s19, %s2121_s27  ;;  %p2127_p5 = scmp.lt.s32.totalorder %s2121_s27, %s2121_s27 }
   0xb   :  { %p2128_p6 = por %p2127_p5, %p2126_p4 }
   0xd   :  { %p2129_p7 = pnand %p2128_p6, %p2122_p3 }
   0xf   :  { %2132 = shalt.err (!%p2129_p7)
}
  0x10   :  { %s2160_s28 = smov 64   ;;  %s2161_s29 = smov 4  }
  0x11   :  { %25 = dma.hbm_to_vmem [thread:$0]  %s2953_s1, 128, %s20_s19, [#allocation5], %s2160_s28, %s2160_s28, %s2161_s29  }
  0x12   :  { %s2162_s7 = smov [#allocation6]   ;;  %s2133_s11 = scalar_lea.hbm %s2955_s3, 512 }
  0x13   :  { %s33_s8 = sshll.u32 %s2162_s7, 4  ;;  %p2134_p8 = scmp.ne.s32.totalorder %s2955_s3, %s2133_s11  ;;  %s34_s8 = int_to_ptr.vmem [resolvable:$true] %s33_s8 }
  0x14   :  { %p2137_p9 = scmp.lt.u32.totalorder %s2133_s11, %s2955_s3 }
  0x16   :  { %p2139_p10 = pnand %p2137_p9, %p2134_p8 }
  0x18   :  { %2142 = shalt.err (!%p2139_p10)
}
  0x19   :  { %s2143_s16 = scalar_lea.vmem %s34_s8, 512  ;;  %p2148_p12 = scmp.lt.s32.totalorder %s34_s8, %s34_s8 }
  0x1a   :  { %p2144_p11 = scmp.ne.s32.totalorder %s34_s8, %s2143_s16  ;;  %p2149_p13 = scmp.lt.s32.totalorder %s2143_s16, %s2143_s16 }
  0x1c   :  { %p2150_p0 = por %p2149_p13, %p2148_p12 }
  0x1e   :  { %p2151_p1 = pnand %p2150_p0, %p2144_p11 }
  0x20   :  { %2154 = shalt.err (!%p2151_p1)
}
  0x21   :  { %s2163_s1 = smov 128   ;;  %s2164_s17 = smov 8  }
  0x22   :  { %39 = dma.hbm_to_vmem [thread:$0]  %s2955_s3, 512, %s34_s8, [#allocation7], %s2163_s1, %s2163_s1, %s2164_s17  }
  0x23   :  { %2155 = dma.done.wait [#allocation5], 128  }
  0x24   :  { %2156 = vsyncadd [#allocation5], 4294967168 }
  0x25   :  { %2157 = dma.done.wait [#allocation7], 512  }
  0x26   :  { %2158 = vsyncadd [#allocation7], 4294966784  ;;  %v2165_v0 = vmov 0   ;;  %v2017_v1 = vld [vmem:[%s2952_s0 + $0x4] ss:$36 sps:$4 sm:$0xff]   ;;  %vm436_vm0 = vcmask 1041408  }
  0x27   :  { %496 = vmatprep.mubr.bf16.mxu0 %v2165_v0  ;;  %539 = vmatprep.mubr.bf16.mxu1 %v2165_v0  ;;  %v2019_v2 = vld [vmem:[%s2952_s0 + $0xc] ss:$36 sps:$4 sm:$0xff]   ;;  %v2021_v3 = vld [vmem:[%s2952_s0] ss:$36 sps:$4 sm:$0xff]   ;;  %v2025_v6 = vld [vmem:[%s2952_s0 + $0x54] ss:$36 sps:$4 sm:$0xff]  }
  0x28   :  { %2015 = vset.pattern.permute.xlu0 %v2165_v0  ;;  %2016 = vset.pattern.permute.xlu1 %v2165_v0  ;;  %v2022_v4 = vld [vmem:[%s2952_s0 + $0x8] ss:$36 sps:$4 sm:$0xff]   ;;  %v2028_v8 = vld [vmem:[%s2952_s0 + $0x50] ss:$36 sps:$4 sm:$0xff]   ;;  %v2031_v10 = vld [vmem:[%s2952_s0 + $0x9c] ss:$36 sps:$4 sm:$0xff]  }
  0x29   :  { %464 = vmatprep.subr.bf16.mxu0 %v2017_v1  ;;  %507 = vmatprep.subr.bf16.mxu1 %v2019_v2  ;;  %v2023_v5 = vld [vmem:[%s2952_s0 + $0x4c] ss:$36 sps:$4 sm:$0xff]   ;;  %v2029_v9 = vld [vmem:[%s2952_s0 + $0x94] ss:$36 sps:$4 sm:$0xff]   ;;  %v2035_v13 = vld [vmem:[%s2952_s0 + $0xdc] ss:$36 sps:$4 sm:$0xff]  }
  0x2a   :  { %465 = vmatpush1.bf16.msra.mxu0 %v2021_v3  ;;  %508 = vmatpush1.bf16.msra.mxu1 %v2022_v4  ;;  %v2027_v7 = vld [vmem:[%s2952_s0 + $0x48] ss:$36 sps:$4 sm:$0xff]   ;;  %v2033_v11 = vld [vmem:[%s2952_s0 + $0x90] ss:$36 sps:$4 sm:$0xff]   ;;  %v2034_v12 = vld [vmem:[%s2952_s0 + $0x98] ss:$36 sps:$4 sm:$0xff]  }
  0x2b   :  { %466 = vmatprep.subr.bf16.mxu0 %v2023_v5  ;;  %509 = vmatprep.subr.bf16.mxu1 %v2025_v6  ;;  %v2037_v14 = vld [vmem:[%s2952_s0 + $0xe4] ss:$36 sps:$4 sm:$0xff]   ;;  %v2039_v15 = vld [vmem:[%s2952_s0 + $0xd8] ss:$36 sps:$4 sm:$0xff]   ;;  %v2043_v18 = vld [vmem:[%s2952_s0 + $0x12c] ss:$36 sps:$4 sm:$0xff]  }
  0x2c   :  { %v2040_v16 = vld [vmem:[%s2952_s0 + $0xe0] ss:$36 sps:$4 sm:$0xff]   ;;  %v2046_v20 = vld [vmem:[%s2952_s0 + $0x128] ss:$36 sps:$4 sm:$0xff]   ;;  %v2049_v22 = vld [vmem:[%s2952_s0 + $0x174] ss:$36 sps:$4 sm:$0xff]  }
  0x2d   :  { %v2041_v17 = vld [vmem:[%s2952_s0 + $0x124] ss:$36 sps:$4 sm:$0xff]   ;;  %v2047_v21 = vld [vmem:[%s2952_s0 + $0x16c] ss:$36 sps:$4 sm:$0xff]   ;;  %v112_v24 = vld [vmem:[%s2952_s0 + $0x1b8] sm:$0x33] }
  0x2e   :  { %467 = vmatpush1.bf16.msra.mxu0 %v2027_v7  ;;  %510 = vmatpush1.bf16.msra.mxu1 %v2028_v8  ;;  %v2045_v19 = vld [vmem:[%s2952_s0 + $0x120] ss:$36 sps:$4 sm:$0xff]   ;;  %v111_v23 = vld [vmem:[%s2952_s0 + $0x1b0] sm:$0x33]  ;;  %v2051_v25 = vld [vmem:[%s2952_s0 + $0x168] ss:$36 sps:$4 sm:$0xff]   ;;  %v1903_v28 = vcombine.high %v112_v24, %v112_v24  ;;  %v1902_v30 = vcombine.low %v112_v24, %v112_v24 }
  0x2f   :  { %468 = vmatprep.subr.bf16.mxu0 %v2029_v9  ;;  %511 = vmatprep.subr.bf16.mxu1 %v2031_v10  ;;  %v2052_v26 = vld [vmem:[%s2952_s0 + $0x170] ss:$36 sps:$4 sm:$0xff]   ;;  %v1901_v27 = vcombine.high %v111_v23, %v111_v23  ;;  %v1900_v29 = vcombine.low %v111_v23, %v111_v23  ;;  %v2063_v34 = vld [vmem:[%s2952_s0 + $0x1c] ss:$36 sps:$4 sm:$0xff]   ;;  %vm432_vm1 = vcmask 818176   ;;  %v117_v51 = vld [vmem:[%s2954_s2 + $0x8] sm:$0xff] }
  0x30   :  { %v2060_v31 = vld [vmem:[%s2952_s0 + $0x14] ss:$36 sps:$4 sm:$0xff]   ;;  %v444_v33 = vsel %vm436_vm0, %v1902_v30, 0  ;;  %v2322_v35 = vld [vmem:[#allocation4] sm:$0xff]   ;;  %v2075_v43 = vld [vmem:[%s2952_s0 + $0xac] ss:$36 sps:$4 sm:$0xff]  }
  0x31   :  { %v438_v32 = vsel %vm436_vm0, %v1900_v29, 0  ;;  %v2058_v36 = vld [vmem:[%s2952_s0 + $0x10] ss:$36 sps:$4 sm:$0xff]   ;;  %v2061_v37 = vld [vmem:[%s2952_s0 + $0x18] ss:$36 sps:$4 sm:$0xff]   ;;  %v116_v46 = vld [vmem:[%s2954_s2] sm:$0xff] }
  0x32   :  { %469 = vmatpush1.bf16.msra.mxu0 %v2033_v11  ;;  %512 = vmatpush1.bf16.msra.mxu1 %v2034_v12  ;;  %v2066_v38 = vld [vmem:[%s2952_s0 + $0x5c] ss:$36 sps:$4 sm:$0xff]   ;;  %v2069_v39 = vld [vmem:[%s2952_s0 + $0x64] ss:$36 sps:$4 sm:$0xff]   ;;  %v2078_v47 = vld [vmem:[%s2952_s0 + $0xec] ss:$36 sps:$4 sm:$0xff]  }
  0x33   :  { %470 = vmatprep.subr.bf16.mxu0 %v2035_v13  ;;  %513 = vmatprep.subr.bf16.mxu1 %v2037_v14  ;;  %v2064_v40 = vld [vmem:[%s2952_s0 + $0x58] ss:$36 sps:$4 sm:$0xff]   ;;  %v2067_v41 = vld [vmem:[%s2952_s0 + $0x60] ss:$36 sps:$4 sm:$0xff]   ;;  %v2073_v45 = vld [vmem:[%s2952_s0 + $0xa8] ss:$36 sps:$4 sm:$0xff]  }
  0x34   :  { %v2072_v42 = vld [vmem:[%s2952_s0 + $0xa4] ss:$36 sps:$4 sm:$0xff]   ;;  %v2081_v48 = vld [vmem:[%s2952_s0 + $0xf4] ss:$36 sps:$4 sm:$0xff]   ;;  %120 = vperm.xlu0 %2015, %v116_v46   ;;  %v2087_v53 = vld [vmem:[%s2952_s0 + $0x13c] ss:$36 sps:$4 sm:$0xff]  }
  0x35   :  { %v2070_v44 = vld [vmem:[%s2952_s0 + $0xa0] ss:$36 sps:$4 sm:$0xff]   ;;  %v2076_v49 = vld [vmem:[%s2952_s0 + $0xe8] ss:$36 sps:$4 sm:$0xff]   ;;  %v2079_v50 = vld [vmem:[%s2952_s0 + $0xf0] ss:$36 sps:$4 sm:$0xff]  }
  0x36   :  { %471 = vmatpush1.bf16.msra.mxu0 %v2039_v15  ;;  %514 = vmatpush1.bf16.msra.mxu1 %v2040_v16  ;;  %v2084_v52 = vld [vmem:[%s2952_s0 + $0x134] ss:$36 sps:$4 sm:$0xff]   ;;  %v2090_v56 = vld [vmem:[%s2952_s0 + $0x17c] ss:$36 sps:$4 sm:$0xff]   ;;  %v2093_v57 = vld [vmem:[%s2952_s0 + $0x184] ss:$36 sps:$4 sm:$0xff]  }
  0x37   :  { %472 = vmatprep.subr.bf16.mxu0 %v2041_v17  ;;  %515 = vmatprep.subr.bf16.mxu1 %v2043_v18  ;;  %v2082_v54 = vld [vmem:[%s2952_s0 + $0x130] ss:$36 sps:$4 sm:$0xff]   ;;  %v2085_v55 = vld [vmem:[%s2952_s0 + $0x138] ss:$36 sps:$4 sm:$0xff]   ;;  %v113_v58 = vld [vmem:[%s2952_s0 + $0x1c0] sm:$0x33] }
  0x38   :  { %125 = vperm.xlu0 %2015, %v117_v51   ;;  %v114_v59 = vld [vmem:[%s2952_s0 + $0x1c8] sm:$0x33]  ;;  %v2088_v60 = vld [vmem:[%s2952_s0 + $0x178] ss:$36 sps:$4 sm:$0xff]   ;;  %v2091_v61 = vld [vmem:[%s2952_s0 + $0x180] ss:$36 sps:$4 sm:$0xff]   ;;  %v1905_v62 = vcombine.high %v113_v58, %v113_v58  ;;  %v1904_v1 = vcombine.low %v113_v58, %v113_v58 }
  0x39   :  { %v1907_v63 = vcombine.high %v114_v59, %v114_v59  ;;  %v1906_v2 = vcombine.low %v114_v59, %v114_v59  ;;  %v2098_v5 = vld [vmem:[%s2952_s0 + $0x20] ss:$36 sps:$4 sm:$0xff]   ;;  %v2166_v6 = vmov 0.0   ;;  %v2099_v7 = vld [vmem:[%s2952_s0 + $0x68] ss:$36 sps:$4 sm:$0xff]   ;;  %vm2167_vm2 = vmmov 0  }
  0x3a   :  { %473 = vmatpush1.bf16.msra.mxu0 %v2045_v19  ;;  %516 = vmatpush1.bf16.msra.mxu1 %v2046_v20  ;;  %v450_v3 = vsel %vm436_vm0, %v1904_v1, 0  ;;  %v2100_v8 = vld [vmem:[%s2952_s0 + $0xb0] ss:$36 sps:$4 sm:$0xff]   ;;  %v2101_v9 = vld [vmem:[%s2952_s0 + $0xf8] ss:$36 sps:$4 sm:$0xff]   ;;  %s2168_s2 = smov 127  }
  0x3b   :  { %474 = vmatprep.subr.bf16.mxu0 %v2047_v21  ;;  %517 = vmatprep.subr.bf16.mxu1 %v2049_v22  ;;  %v456_v4 = vsel %vm436_vm0, %v1906_v2, 0  ;;  %v2102_v10 = vld [vmem:[%s2952_s0 + $0x140] ss:$36 sps:$4 sm:$0xff]   ;;  %v2103_v11 = vld [vmem:[%s2952_s0 + $0x188] ss:$36 sps:$4 sm:$0xff]   ;;  %s2169_s7 = smov 126  }
  0x3c   :  { %v2104_v12 = vld [vmem:[%s2952_s0 + $0x1d0] ss:$0 sps:$4 sm:$0x33]   ;;  %770 = vrot.lane.b32.xlu0 %v2165_v0, %s2168_s2  ;;  %838 = vrot.lane.b32.xlu1 %v2165_v0, %s2169_s7  ;;  %s2170_s8 = smov 116   ;;  %s2171_s0 = smov 115   ;;  %vm1403_vm3 = vcmask 130048  }
  0x3d   :  { %v462_v13 = vsel %vm436_vm0, %v2104_v12, 0  ;;  %s2172_s9 = smov 114   ;;  %s2173_s10 = smov 104   ;;  %vm772_vm4 = vcmask 1039360   ;;  %vm840_vm5 = vcmask 1031168   ;;  %vm908_vm6 = vcmask 949248  }
  0x3e   :  { %475 = vmatpush1.bf16.msra.mxu0 %v2051_v25  ;;  %518 = vmatpush1.bf16.msra.mxu1 %v2052_v26  ;;  %s2174_s11 = smov 103   ;;  %s2175_s12 = smov 102   ;;  %vm976_vm7 = vcmask 941056   ;;  %vm1044_vm8 = vcmask 932864   ;;  %vm1112_vm9 = vcmask 850944   ;;  %vm1180_vm10 = vcmask 842752  }
  0x3f   :  { %1909 = vmatprep.subr.msk.bf16.mxu0 %vm436_vm0, %v1901_v27  ;;  %1911 = vmatprep.subr.msk.bf16.mxu1 %vm436_vm0, %v1903_v28  ;;  %vm1248_vm11 = vcmask 834560  }
  0x40   :  { %906 = vrot.lane.b32.xlu0 %v2165_v0, %s2170_s8 }
  0x42   :  { %477 = vmatpush1.bf16.msra.mxu0 %v438_v32  ;;  %520 = vmatpush1.bf16.msra.mxu1 %v444_v33 }
  0x43   :  { %550 = vmatprep.subr.bf16.mxu0 %v2060_v31  ;;  %593 = vmatprep.subr.bf16.mxu1 %v2063_v34 }
  0x45   :  { %1910 = vmatmul.mubr.msk.bf16.vlgmr.msra.gmra.mrb[0].mxu0 %vm432_vm1, %v2322_v35  ;;  %1912 = vmatmul.mubr.msk.bf16.vlgmr.msra.gmra.mrb[0].mxu1 %vm432_vm1, %v2322_v35 }
  0x46   :  { %551 = vmatpush1.bf16.msra.mxu0 %v2058_v36  ;;  %594 = vmatpush1.bf16.msra.mxu1 %v2061_v37 }
  0x47   :  { %552 = vmatprep.subr.bf16.mxu0 %v2066_v38  ;;  %595 = vmatprep.subr.bf16.mxu1 %v2069_v39 }
  0x48   :  { %582 = vmatprep.mubr.bf16.mxu0 %v2165_v0  ;;  %625 = vmatprep.mubr.bf16.mxu1 %v2165_v0 }
  0x4a   :  { %553 = vmatpush1.bf16.msra.mxu0 %v2064_v40  ;;  %596 = vmatpush1.bf16.msra.mxu1 %v2067_v41 }
  0x4b   :  { %554 = vmatprep.subr.bf16.mxu0 %v2072_v42  ;;  %597 = vmatprep.subr.bf16.mxu1 %v2075_v43 }
  0x4e   :  { %555 = vmatpush1.bf16.msra.mxu0 %v2070_v44  ;;  %598 = vmatpush1.bf16.msra.mxu1 %v2073_v45 }
  0x4f   :  { %556 = vmatprep.subr.bf16.mxu0 %v2078_v47  ;;  %599 = vmatprep.subr.bf16.mxu1 %v2081_v48 }
  0x52   :  { %557 = vmatpush1.bf16.msra.mxu0 %v2076_v49  ;;  %600 = vmatpush1.bf16.msra.mxu1 %v2079_v50 }
  0x53   :  { %558 = vmatprep.subr.bf16.mxu0 %v2084_v52  ;;  %601 = vmatprep.subr.bf16.mxu1 %v2087_v53 }
  0x56   :  { %559 = vmatpush1.bf16.msra.mxu0 %v2082_v54  ;;  %602 = vmatpush1.bf16.msra.mxu1 %v2085_v55 }
  0x57   :  { %560 = vmatprep.subr.bf16.mxu0 %v2090_v56  ;;  %603 = vmatprep.subr.bf16.mxu1 %v2093_v57 }
  0x5a   :  { %561 = vmatpush1.bf16.msra.mxu0 %v2088_v60  ;;  %604 = vmatpush1.bf16.msra.mxu1 %v2091_v61 }
  0x5b   :  { %1913 = vmatprep.subr.msk.bf16.mxu0 %vm436_vm0, %v1905_v62  ;;  %1915 = vmatprep.subr.msk.bf16.mxu1 %vm436_vm0, %v1907_v63 }
  0x5e   :  { %563 = vmatpush1.bf16.msra.mxu0 %v450_v3  ;;  %606 = vmatpush1.bf16.msra.mxu1 %v456_v4 }
  0x5f   :  { %1980 = vmatprep.subr.bf16.mxu0 %v2166_v6 }
  0x61   :  { %1914 = vmatmul.mubr.msk.bf16.vlgmr.msra.gmra.mrb[4].mxu0 %vm432_vm1, %v2322_v35  ;;  %1916 = vmatmul.mubr.msk.bf16.vlgmr.msra.gmra.mrb[4].mxu1 %vm432_vm1, %v2322_v35 }
  0x62   :  { %1981 = vmatpush3.bf16.msra.mxu0 %v2098_v5  ;;  %1994 = vmatprep.mubr.msk.bf16.mxu0 %vm2167_vm2, %v2166_v6 }
  0x63   :  { %1982 = vmatprep.subr.bf16.mxu0 %v2166_v6 }
  0x66   :  { %1983 = vmatpush3.bf16.msra.mxu0 %v2099_v7 }
  0x67   :  { %1984 = vmatprep.subr.bf16.mxu0 %v2166_v6 }
  0x6a   :  { %1985 = vmatpush3.bf16.msra.mxu0 %v2100_v8 }
  0x6b   :  { %1986 = vmatprep.subr.bf16.mxu0 %v2166_v6 }
  0x6e   :  { %1987 = vmatpush3.bf16.msra.mxu0 %v2101_v9 }
  0x6f   :  { %1988 = vmatprep.subr.bf16.mxu0 %v2166_v6 }
  0x72   :  { %1989 = vmatpush3.bf16.msra.mxu0 %v2102_v10 }
  0x73   :  { %1990 = vmatprep.subr.bf16.mxu0 %v2166_v6 }
  0x76   :  { %1991 = vmatpush3.bf16.msra.mxu0 %v2103_v11 }
  0x77   :  { %1992 = vmatprep.subr.bf16.mxu0 %v2166_v6 }
  0x7a   :  { %1993 = vmatpush3.bf16.msra.mxu0 %v462_v13 }
  0x7d   :  { %1995 = vmatmul.mubr.msk.bf16.vlgmr.msra.gmra.mrb[8].mxu0 %vm432_vm1, %v2322_v35 }
  0xb3   :  { %v2446_v14 = vpop.permute.xlu0 %120 }
  0xb7   :  { %v2448_v15 = vpop.permute.xlu0 %125 }
 0x118   :  { %v498_v16 = vpop.f32.mrb[0].mxu0  ;;  %v541_v17 = vpop.f32.mrb[0].mxu1 }
 0x119   :  { %v499_v18 = vadd.f32 %v498_v16, %v2446_v14  ;;  %v542_v19 = vadd.f32 %v541_v17, %v2446_v14  ;;  %v500_v20 = vpop.f32.mrb[1].mxu0  ;;  %v543_v21 = vpop.f32.mrb[1].mxu1  ;;  %v2518_v17 = vld [vmem:[#allocation6 + $0x4] ss:$8 sps:$4 sm:$0xff]  }
 0x11a   :  { %v501_v22 = vadd.f32 %v500_v20, %v2446_v14  ;;  %v544_v23 = vadd.f32 %v543_v21, %v2446_v14  ;;  %v502_v24 = vpop.f32.mrb[2].mxu0  ;;  %v545_v25 = vpop.f32.mrb[2].mxu1  ;;  %1922 = vmatprep.mubr.msk.bf16.mxu1 %vm1403_vm3, %v2518_v17  ;;  %1924 = vmatprep.mubr.msk.bf16.mxu0 %vm1403_vm3, %v2518_v17 }
 0x11b   :  { %v503_v26 = vadd.f32 %v502_v24, %v2448_v15  ;;  %v546_v27 = vadd.f32 %v545_v25, %v2448_v15  ;;  %v504_v28 = vpop.f32.mrb[3].mxu0  ;;  %v547_v29 = vpop.f32.mrb[3].mxu1  ;;  %v677_v32 = vmax.f32 %v499_v18, 0.0  ;;  %v679_v33 = vmax.f32 %v542_v19, 0.0 }
 0x11c   :  { %v505_v30 = vadd.f32 %v504_v28, %v2448_v15  ;;  %v548_v31 = vadd.f32 %v547_v29, %v2448_v15  ;;  %v678_v36 = vmax.f32 %v501_v22, 0.0  ;;  %v680_v37 = vmax.f32 %v544_v23, 0.0  ;;  %v2588_v20 = vpop.permute.xlu1 %838 }
 0x11d   :  { %v686_v34 = vmax.f32 %v503_v26, 0.0  ;;  %v688_v35 = vmax.f32 %v546_v27, 0.0 }
 0x11e   :  { %v687_v38 = vmax.f32 %v505_v30, 0.0  ;;  %v689_v39 = vmax.f32 %v548_v31, 0.0 }
 0x11f   :  { %v695_v40 = vpack.c.bf16 %v686_v34, %v677_v32  ;;  %v697_v41 = vpack.c.bf16 %v688_v35, %v679_v33 }
 0x120   :  { %v2458_v42 = vpack.c.bf16 %v687_v38, %v678_v36  ;;  %v2460_v43 = vpack.c.bf16 %v689_v39, %v680_v37  ;;  %v1361_v38 = vld [vmem:[%s2956_s4] sm:$0xff] }
 0x121   :  { %756 = vrot.lane.b32.xlu1 %v697_v41, %s2168_s2  ;;  %752 = vrot.lane.b32.xlu0 %v695_v40, %s2168_s2 }
 0x122   :  { %1410 = vmatprep.subr.bf16.mxu1 %v2458_v42  ;;  %1463 = vmatprep.subr.bf16.mxu0 %v2460_v43 }
 0x123   :  { %1411 = vmatpush1.bf16.msra.mxu1 %v695_v40  ;;  %1464 = vmatpush1.bf16.msra.mxu0 %v697_v41 }
 0x125   :  { %820 = vrot.lane.b32.xlu1 %v695_v40, %s2169_s7  ;;  %824 = vrot.lane.b32.xlu0 %v697_v41, %s2169_s7 }
 0x129   :  { %892 = vrot.lane.b32.xlu1 %v697_v41, %s2170_s8  ;;  %888 = vrot.lane.b32.xlu0 %v695_v40, %s2170_s8 }
 0x12d   :  { %956 = vrot.lane.b32.xlu1 %v695_v40, %s2171_s0  ;;  %960 = vrot.lane.b32.xlu0 %v697_v41, %s2171_s0 }
 0x131   :  { %1028 = vrot.lane.b32.xlu1 %v697_v41, %s2172_s9  ;;  %1024 = vrot.lane.b32.xlu0 %v695_v40, %s2172_s9 }
 0x134   :  { %v584_v44 = vpop.f32.mrb[4].mxu0  ;;  %v627_v45 = vpop.f32.mrb[4].mxu1 }
 0x135   :  { %v585_v46 = vadd.f32 %v584_v44, %v2446_v14  ;;  %v628_v47 = vadd.f32 %v627_v45, %v2446_v14  ;;  %v586_v48 = vpop.f32.mrb[5].mxu0  ;;  %v629_v49 = vpop.f32.mrb[5].mxu1  ;;  %1092 = vrot.lane.b32.xlu1 %v695_v40, %s2173_s10  ;;  %1096 = vrot.lane.b32.xlu0 %v697_v41, %s2173_s10 }
 0x136   :  { %v587_v50 = vadd.f32 %v586_v48, %v2446_v14  ;;  %v630_v51 = vadd.f32 %v629_v49, %v2446_v14  ;;  %v588_v52 = vpop.f32.mrb[6].mxu0  ;;  %v631_v53 = vpop.f32.mrb[6].mxu1 }
 0x137   :  { %v589_v54 = vadd.f32 %v588_v52, %v2448_v15  ;;  %v632_v55 = vadd.f32 %v631_v53, %v2448_v15  ;;  %v590_v56 = vpop.f32.mrb[7].mxu0  ;;  %v633_v57 = vpop.f32.mrb[7].mxu1  ;;  %v681_v60 = vmax.f32 %v585_v46, 0.0  ;;  %v683_v61 = vmax.f32 %v628_v47, 0.0  ;;  %v1362_v52 = vld [vmem:[%s2956_s4 + $0x8] sm:$0xff] }
 0x138   :  { %v591_v58 = vadd.f32 %v590_v56, %v2448_v15  ;;  %v634_v59 = vadd.f32 %v633_v57, %v2448_v15  ;;  %v682_v1 = vmax.f32 %v587_v50, 0.0  ;;  %v684_v2 = vmax.f32 %v630_v51, 0.0  ;;  %v1364_v57 = vld [vmem:[%s2956_s4 + $0x18] sm:$0xff] }
 0x139   :  { %v690_v62 = vmax.f32 %v589_v54, 0.0  ;;  %v692_v63 = vmax.f32 %v632_v55, 0.0  ;;  %1164 = vrot.lane.b32.xlu1 %v697_v41, %s2174_s11  ;;  %1160 = vrot.lane.b32.xlu0 %v695_v40, %s2174_s11 }
 0x13a   :  { %v691_v3 = vmax.f32 %v591_v58, 0.0  ;;  %v693_v4 = vmax.f32 %v634_v59, 0.0 }
 0x13b   :  { %v2486_v5 = vpack.c.bf16 %v690_v62, %v681_v60  ;;  %v2488_v6 = vpack.c.bf16 %v692_v63, %v683_v61 }
 0x13c   :  { %v2490_v7 = vpack.c.bf16 %v691_v3, %v682_v1  ;;  %v2492_v8 = vpack.c.bf16 %v693_v4, %v684_v2 }
 0x13d   :  { %1228 = vrot.lane.b32.xlu1 %v695_v40, %s2175_s12  ;;  %1232 = vrot.lane.b32.xlu0 %v697_v41, %s2175_s12 }
 0x141   :  { %754 = vrot.lane.b32.xlu1 %v2458_v42, %s2168_s2  ;;  %890 = vrot.lane.b32.xlu0 %v2458_v42, %s2170_s8 }
 0x145   :  { %822 = vrot.lane.b32.xlu1 %v2458_v42, %s2169_s7  ;;  %1026 = vrot.lane.b32.xlu0 %v2458_v42, %s2172_s9 }
 0x149   :  { %958 = vrot.lane.b32.xlu1 %v2458_v42, %s2171_s0  ;;  %1162 = vrot.lane.b32.xlu0 %v2458_v42, %s2174_s11 }
 0x14d   :  { %1094 = vrot.lane.b32.xlu1 %v2458_v42, %s2173_s10  ;;  %758 = vrot.lane.b32.xlu0 %v2460_v43, %s2168_s2 }
 0x150   :  { %v670_v9 = vpop.f32.mrb[8].mxu0 }
 0x151   :  { %v671_v10 = vadd.f32 %v670_v9, %v2446_v14  ;;  %v1996_v11 = vpop.f32.mrb[9].mxu0  ;;  %1230 = vrot.lane.b32.xlu1 %v2458_v42, %s2175_s12  ;;  %826 = vrot.lane.b32.xlu0 %v2460_v43, %s2169_s7 }
 0x152   :  { %v673_v12 = vpop.f32.mrb[10].mxu0 }
 0x153   :  { %v674_v13 = vadd.f32 %v673_v12, %v2448_v15  ;;  %v1997_v16 = vpop.f32.mrb[11].mxu0  ;;  %v685_v18 = vmax.f32 %v671_v10, 0.0  ;;  %v2578_v15 = vpop.permute.xlu0 %770 }
 0x155   :  { %v694_v19 = vmax.f32 %v674_v13, 0.0  ;;  %760 = vrot.lane.b32.xlu1 %v2486_v5, %s2168_s2  ;;  %894 = vrot.lane.b32.xlu0 %v2460_v43, %s2170_s8 }
 0x157   :  { %v2528_v14 = vpack.c.bf16 %v694_v19, %v685_v18  ;;  %v2590_v21 = vpop.permute.xlu0 %906 }
 0x159   :  { %764 = vrot.lane.b32.xlu1 %v2488_v6, %s2168_s2  ;;  %962 = vrot.lane.b32.xlu0 %v2460_v43, %s2171_s0 }
 0x15d   :  { %828 = vrot.lane.b32.xlu1 %v2486_v5, %s2169_s7  ;;  %1030 = vrot.lane.b32.xlu0 %v2460_v43, %s2172_s9 }
 0x161   :  { %832 = vrot.lane.b32.xlu1 %v2488_v6, %s2169_s7  ;;  %1098 = vrot.lane.b32.xlu0 %v2460_v43, %s2173_s10 }
 0x165   :  { %896 = vrot.lane.b32.xlu1 %v2486_v5, %s2170_s8  ;;  %1166 = vrot.lane.b32.xlu0 %v2460_v43, %s2174_s11 }
 0x169   :  { %900 = vrot.lane.b32.xlu1 %v2488_v6, %s2170_s8  ;;  %1234 = vrot.lane.b32.xlu0 %v2460_v43, %s2175_s12  ;;  %v1363_v43 = vld [vmem:[%s2956_s4 + $0x10] sm:$0xff] }
 0x16d   :  { %964 = vrot.lane.b32.xlu1 %v2486_v5, %s2171_s0  ;;  %762 = vrot.lane.b32.xlu0 %v2490_v7, %s2168_s2 }
 0x171   :  { %968 = vrot.lane.b32.xlu1 %v2488_v6, %s2171_s0  ;;  %830 = vrot.lane.b32.xlu0 %v2490_v7, %s2169_s7 }
 0x175   :  { %1032 = vrot.lane.b32.xlu1 %v2486_v5, %s2172_s9  ;;  %898 = vrot.lane.b32.xlu0 %v2490_v7, %s2170_s8 }
 0x179   :  { %1036 = vrot.lane.b32.xlu1 %v2488_v6, %s2172_s9  ;;  %966 = vrot.lane.b32.xlu0 %v2490_v7, %s2171_s0 }
 0x17d   :  { %1100 = vrot.lane.b32.xlu1 %v2486_v5, %s2173_s10  ;;  %1034 = vrot.lane.b32.xlu0 %v2490_v7, %s2172_s9 }
 0x181   :  { %1104 = vrot.lane.b32.xlu1 %v2488_v6, %s2173_s10  ;;  %1102 = vrot.lane.b32.xlu0 %v2490_v7, %s2173_s10 }
 0x185   :  { %1168 = vrot.lane.b32.xlu1 %v2486_v5, %s2174_s11  ;;  %1170 = vrot.lane.b32.xlu0 %v2490_v7, %s2174_s11 }
 0x189   :  { %1172 = vrot.lane.b32.xlu1 %v2488_v6, %s2174_s11  ;;  %1238 = vrot.lane.b32.xlu0 %v2490_v7, %s2175_s12 }
 0x18d   :  { %1236 = vrot.lane.b32.xlu1 %v2486_v5, %s2175_s12  ;;  %766 = vrot.lane.b32.xlu0 %v2492_v8, %s2168_s2 }
 0x191   :  { %1240 = vrot.lane.b32.xlu1 %v2488_v6, %s2175_s12  ;;  %902 = vrot.lane.b32.xlu0 %v2492_v8, %s2170_s8 }
 0x193   :  { %v2596_v22 = vpop.permute.xlu1 %756  ;;  %v753_v23 = vpop.permute.xlu0 %752 }
 0x195   :  { %834 = vrot.lane.b32.xlu1 %v2492_v8, %s2169_s7  ;;  %1038 = vrot.lane.b32.xlu0 %v2492_v8, %s2172_s9 }
 0x197   :  { %v821_v24 = vpop.permute.xlu1 %820  ;;  %v2602_v25 = vpop.permute.xlu0 %824 }
 0x199   :  { %970 = vrot.lane.b32.xlu1 %v2492_v8, %s2171_s0  ;;  %836 = vrot.lane.b32.xlu0 %v2528_v14, %s2169_s7 }
 0x19b   :  { %v2608_v26 = vpop.permute.xlu1 %892  ;;  %v889_v27 = vpop.permute.xlu0 %888 }
 0x19d   :  { %768 = vrot.lane.b32.xlu1 %v2528_v14, %s2168_s2  ;;  %1042 = vrot.lane.b32.xlu0 %v2165_v0, %s2172_s9 }
 0x19f   :  { %v957_v28 = vpop.permute.xlu1 %956  ;;  %v2614_v29 = vpop.permute.xlu0 %960 }
 0x1a1   :  { %974 = vrot.lane.b32.xlu1 %v2165_v0, %s2171_s0  ;;  %972 = vrot.lane.b32.xlu0 %v2528_v14, %s2171_s0 }
 0x1a3   :  { %v2620_v30 = vpop.permute.xlu1 %1028  ;;  %v1025_v31 = vpop.permute.xlu0 %1024 }
 0x1a5   :  { %904 = vrot.lane.b32.xlu1 %v2528_v14, %s2170_s8  ;;  %1174 = vrot.lane.b32.xlu0 %v2492_v8, %s2174_s11 }
 0x1a7   :  { %v2626_v32 = vpop.permute.xlu1 %1092  ;;  %v2628_v33 = vpop.permute.xlu0 %1096 }
 0x1a9   :  { %1106 = vrot.lane.b32.xlu1 %v2492_v8, %s2173_s10  ;;  %1108 = vrot.lane.b32.xlu0 %v2528_v14, %s2173_s10 }
 0x1ab   :  { %v2634_v34 = vpop.permute.xlu1 %1164  ;;  %v2636_v35 = vpop.permute.xlu0 %1160 }
 0x1ad   :  { %1040 = vrot.lane.b32.xlu1 %v2528_v14, %s2172_s9  ;;  %1178 = vrot.lane.b32.xlu0 %v2165_v0, %s2174_s11 }
 0x1af   :  { %v2642_v36 = vpop.permute.xlu1 %1228  ;;  %v2644_v37 = vpop.permute.xlu0 %1232 }
 0x1b1   :  { %1110 = vrot.lane.b32.xlu1 %v2165_v0, %s2173_s10  ;;  %1244 = vrot.lane.b32.xlu0 %v2528_v14, %s2175_s12 }
 0x1b3   :  { %v755_v39 = vpop.permute.xlu1 %754  ;;  %v891_v40 = vpop.permute.xlu0 %890 }
 0x1b4   :  { %v773_v41 = vsel %vm772_vm4, %v753_v23, %v755_v39  ;;  %v774_v42 = vsel %vm772_vm4, %v755_v39, %v2596_v22  ;;  %v910_v50 = vsel %vm908_vm6, %v891_v40, %v2608_v26  ;;  %v909_v51 = vsel %vm908_vm6, %v889_v27, %v891_v40 }
 0x1b5   :  { %1176 = vrot.lane.b32.xlu1 %v2528_v14, %s2174_s11  ;;  %1367 = vperm.xlu0 %2015, %v1361_v38   ;;  %v2719_v38 = vld [vmem:[#allocation6 + $0x10] ss:$8 sps:$4 sm:$0xff]  }
 0x1b6   :  { %1412 = vmatprep.subr.bf16.mxu1 %v774_v42 }
 0x1b7   :  { %1413 = vmatpush1.bf16.msra.mxu1 %v773_v41  ;;  %v823_v44 = vpop.permute.xlu1 %822  ;;  %v1027_v45 = vpop.permute.xlu0 %1026 }
 0x1b8   :  { %v841_v46 = vsel %vm840_vm5, %v821_v24, %v823_v44  ;;  %v842_v47 = vsel %vm840_vm5, %v823_v44, %v2602_v25  ;;  %v1046_v60 = vsel %vm1044_vm8, %v1027_v45, %v2620_v30  ;;  %v1045_v61 = vsel %vm1044_vm8, %v1025_v31, %v1027_v45  ;;  %v2703_v24 = vld [vmem:[#allocation6] ss:$8 sps:$4 sm:$0xff]   ;;  %v2707_v31 = vld [vmem:[#allocation6 + $0x14] ss:$8 sps:$4 sm:$0xff]  }
 0x1b9   :  { %1242 = vrot.lane.b32.xlu1 %v2492_v8, %s2175_s12  ;;  %1377 = vperm.xlu0 %2015, %v1363_v43  }
 0x1ba   :  { %1414 = vmatprep.subr.bf16.mxu1 %v842_v47 }
 0x1bb   :  { %1415 = vmatpush1.bf16.msra.mxu1 %v841_v46  ;;  %v959_v48 = vpop.permute.xlu1 %958  ;;  %v1163_v49 = vpop.permute.xlu0 %1162 }
 0x1bc   :  { %1416 = vmatprep.subr.bf16.mxu1 %v910_v50  ;;  %v978_v55 = vsel %vm976_vm7, %v959_v48, %v2614_v29  ;;  %v977_v56 = vsel %vm976_vm7, %v957_v28, %v959_v48  ;;  %v1182_v11 = vsel %vm1180_vm10, %v1163_v49, %v2634_v34  ;;  %v1181_v12 = vsel %vm1180_vm10, %v2636_v35, %v1163_v49 }
 0x1bd   :  { %1246 = vrot.lane.b32.xlu1 %v2165_v0, %s2175_s12 }
 0x1bf   :  { %1417 = vmatpush1.bf16.msra.mxu1 %v909_v51  ;;  %v1095_v53 = vpop.permute.xlu1 %1094  ;;  %v759_v54 = vpop.permute.xlu0 %758 }
 0x1c0   :  { %1418 = vmatprep.subr.bf16.mxu1 %v978_v55  ;;  %v1114_v1 = vsel %vm1112_vm9, %v1095_v53, %v2628_v33  ;;  %v775_v3 = vsel %vm772_vm4, %v2596_v22, %v759_v54  ;;  %v1113_v4 = vsel %vm1112_vm9, %v2626_v32, %v1095_v53 }
 0x1c1   :  { %1372 = vperm.xlu1 %2016, %v1362_v52  }
 0x1c3   :  { %1419 = vmatpush1.bf16.msra.mxu1 %v977_v56  ;;  %v1231_v58 = vpop.permute.xlu1 %1230  ;;  %v827_v59 = vpop.permute.xlu0 %826 }
 0x1c4   :  { %1420 = vmatprep.subr.bf16.mxu1 %v1046_v60  ;;  %v1250_v18 = vsel %vm1248_vm11, %v1231_v58, %v2644_v37  ;;  %v843_v22 = vsel %vm840_vm5, %v2602_v25, %v827_v59  ;;  %v1249_v23 = vsel %vm1248_vm11, %v2642_v36, %v1231_v58 }
 0x1c5   :  { %1382 = vperm.xlu1 %2016, %v1364_v57  }
 0x1c7   :  { %1421 = vmatpush1.bf16.msra.mxu1 %v1045_v61  ;;  %v761_v62 = vpop.permute.xlu1 %760  ;;  %v895_v63 = vpop.permute.xlu0 %894 }
 0x1c8   :  { %1422 = vmatprep.subr.bf16.mxu1 %v1114_v1  ;;  %v776_v2 = vsel %vm772_vm4, %v759_v54, %v761_v62  ;;  %v911_v36 = vsel %vm908_vm6, %v2608_v26, %v895_v63 }
 0x1c9   :  { %1465 = vmatprep.subr.bf16.mxu0 %v776_v2 }
 0x1ca   :  { %1466 = vmatpush1.bf16.msra.mxu0 %v775_v3 }
 0x1cb   :  { %1423 = vmatpush1.bf16.msra.mxu1 %v1113_v4  ;;  %v2690_v9 = vpop.permute.xlu1 %764  ;;  %v963_v10 = vpop.permute.xlu0 %962 }
 0x1cc   :  { %1424 = vmatprep.subr.bf16.mxu1 %v1182_v11  ;;  %v979_v43 = vsel %vm976_vm7, %v2614_v29, %v963_v10 }
 0x1cf   :  { %1425 = vmatpush1.bf16.msra.mxu1 %v1181_v12  ;;  %v829_v13 = vpop.permute.xlu1 %828  ;;  %v1031_v16 = vpop.permute.xlu0 %1030 }
 0x1d0   :  { %1426 = vmatprep.subr.bf16.mxu1 %v1250_v18  ;;  %v844_v19 = vsel %vm840_vm5, %v827_v59, %v829_v13  ;;  %v1047_v52 = vsel %vm1044_vm8, %v2620_v30, %v1031_v16 }
 0x1d1   :  { %1467 = vmatprep.subr.bf16.mxu0 %v844_v19 }
 0x1d2   :  { %1468 = vmatpush1.bf16.msra.mxu0 %v843_v22 }
 0x1d3   :  { %1427 = vmatpush1.bf16.msra.mxu1 %v1249_v23  ;;  %v2705_v27 = vpop.permute.xlu1 %832  ;;  %v1099_v28 = vpop.permute.xlu0 %1098 }
 0x1d4   :  { %1516 = vmatprep.subr.bf16.mxu1 %v2490_v7  ;;  %v1115_v61 = vsel %vm1112_vm9, %v2628_v33, %v1099_v28 }
 0x1d6   :  { %1443 = vmatmul.mubr.bf16.vlgmr.msra.gmra.mrb[8].mxu1 %v2703_v24 }
 0x1d7   :  { %1517 = vmatpush1.bf16.msra.mxu1 %v2486_v5  ;;  %v897_v25 = vpop.permute.xlu1 %896  ;;  %v2712_v32 = vpop.permute.xlu0 %1166  ;;  %1923 = vmatprep.mubr.msk.bf16.mxu1 %vm1403_vm3, %v2707_v31 }
 0x1d8   :  { %v912_v35 = vsel %vm908_vm6, %v895_v63, %v897_v25  ;;  %v1183_v33 = vsel %vm1180_vm10, %v2634_v34, %v2712_v32 }
 0x1d9   :  { %1469 = vmatprep.subr.bf16.mxu0 %v912_v35 }
 0x1da   :  { %1470 = vmatpush1.bf16.msra.mxu0 %v911_v36 }
 0x1db   :  { %v2721_v7 = vpop.permute.xlu1 %900  ;;  %v2723_v39 = vpop.permute.xlu0 %1234 }
 0x1dc   :  { %v1251_v34 = vsel %vm1248_vm11, %v2644_v37, %v2723_v39 }
 0x1de   :  { %1453 = vmatmul.mubr.bf16.gmra.mrb[12].mxu1 %v2719_v38 }
 0x1df   :  { %v965_v5 = vpop.permute.xlu1 %964  ;;  %v763_v40 = vpop.permute.xlu0 %762  ;;  %1926 = vmatprep.mubr.msk.bf16.mxu1 %vm1403_vm3, %v2518_v17 }
 0x1e0   :  { %v777_v41 = vsel %vm772_vm4, %v761_v62, %v763_v40  ;;  %v980_v42 = vsel %vm976_vm7, %v963_v10, %v965_v5  ;;  %v778_v26 = vsel %vm772_vm4, %v763_v40, %v2690_v9 }
 0x1e1   :  { %1471 = vmatprep.subr.bf16.mxu0 %v980_v42  ;;  %1518 = vmatprep.subr.bf16.mxu1 %v778_v26 }
 0x1e2   :  { %1472 = vmatpush1.bf16.msra.mxu0 %v979_v43  ;;  %1519 = vmatpush1.bf16.msra.mxu1 %v777_v41 }
 0x1e3   :  { %v2734_v44 = vpop.permute.xlu1 %968  ;;  %v831_v45 = vpop.permute.xlu0 %830 }
 0x1e4   :  { %v845_v46 = vsel %vm840_vm5, %v829_v13, %v831_v45  ;;  %v846_v47 = vsel %vm840_vm5, %v831_v45, %v2705_v27 }
 0x1e5   :  { %1520 = vmatprep.subr.bf16.mxu1 %v846_v47 }
 0x1e6   :  { %1521 = vmatpush1.bf16.msra.mxu1 %v845_v46 }
 0x1e7   :  { %v1033_v48 = vpop.permute.xlu1 %1032  ;;  %v899_v49 = vpop.permute.xlu0 %898 }
 0x1e8   :  { %v913_v50 = vsel %vm908_vm6, %v897_v25, %v899_v49  ;;  %v1048_v29 = vsel %vm1044_vm8, %v1031_v16, %v1033_v48  ;;  %v914_v51 = vsel %vm908_vm6, %v899_v49, %v2721_v7 }
 0x1e9   :  { %1473 = vmatprep.subr.bf16.mxu0 %v1048_v29  ;;  %1522 = vmatprep.subr.bf16.mxu1 %v914_v51 }
 0x1ea   :  { %1474 = vmatpush1.bf16.msra.mxu0 %v1047_v52  ;;  %1523 = vmatpush1.bf16.msra.mxu1 %v913_v50 }
 0x1eb   :  { %v2745_v53 = vpop.permute.xlu1 %1036  ;;  %v967_v54 = vpop.permute.xlu0 %966 }
 0x1ec   :  { %v981_v55 = vsel %vm976_vm7, %v965_v5, %v967_v54  ;;  %v982_v56 = vsel %vm976_vm7, %v967_v54, %v2734_v44 }
 0x1ed   :  { %1524 = vmatprep.subr.bf16.mxu1 %v982_v56 }
 0x1ee   :  { %1525 = vmatpush1.bf16.msra.mxu1 %v981_v55 }
 0x1ef   :  { %v1101_v57 = vpop.permute.xlu1 %1100  ;;  %v1035_v58 = vpop.permute.xlu0 %1034 }
 0x1f0   :  { %v1049_v59 = vsel %vm1044_vm8, %v1033_v48, %v1035_v58  ;;  %v1116_v30 = vsel %vm1112_vm9, %v1099_v28, %v1101_v57  ;;  %v1050_v60 = vsel %vm1044_vm8, %v1035_v58, %v2745_v53 }
 0x1f1   :  { %1475 = vmatprep.subr.bf16.mxu0 %v1116_v30  ;;  %1526 = vmatprep.subr.bf16.mxu1 %v1050_v60 }
 0x1f2   :  { %1476 = vmatpush1.bf16.msra.mxu0 %v1115_v61  ;;  %1527 = vmatpush1.bf16.msra.mxu1 %v1049_v59 }
 0x1f3   :  { %v2756_v62 = vpop.permute.xlu1 %1104  ;;  %v1103_v63 = vpop.permute.xlu0 %1102 }
 0x1f4   :  { %v1117_v1 = vsel %vm1112_vm9, %v1101_v57, %v1103_v63  ;;  %v1118_v2 = vsel %vm1112_vm9, %v1103_v63, %v2756_v62 }
 0x1f5   :  { %1528 = vmatprep.subr.bf16.mxu1 %v1118_v2 }
 0x1f6   :  { %1529 = vmatpush1.bf16.msra.mxu1 %v1117_v1 }
 0x1f7   :  { %v1169_v3 = vpop.permute.xlu1 %1168  ;;  %v1171_v4 = vpop.permute.xlu0 %1170 }
 0x1f8   :  { %v1184_v10 = vsel %vm1180_vm10, %v2712_v32, %v1169_v3  ;;  %v1185_v16 = vsel %vm1180_vm10, %v1169_v3, %v1171_v4 }
 0x1f9   :  { %1477 = vmatprep.subr.bf16.mxu0 %v1184_v10 }
 0x1fa   :  { %1478 = vmatpush1.bf16.msra.mxu0 %v1183_v33 }
 0x1fb   :  { %v2766_v11 = vpop.permute.xlu1 %1172  ;;  %v1239_v12 = vpop.permute.xlu0 %1238 }
 0x1fc   :  { %v1186_v13 = vsel %vm1180_vm10, %v1171_v4, %v2766_v11 }
 0x1fd   :  { %1530 = vmatprep.subr.bf16.mxu1 %v1186_v13 }
 0x1fe   :  { %1531 = vmatpush1.bf16.msra.mxu1 %v1185_v16 }
 0x1ff   :  { %v1237_v18 = vpop.permute.xlu1 %1236  ;;  %v767_v19 = vpop.permute.xlu0 %766 }
 0x200   :  { %v1252_v22 = vsel %vm1248_vm11, %v2723_v39, %v1237_v18  ;;  %v1253_v32 = vsel %vm1248_vm11, %v1237_v18, %v1239_v12 }
 0x201   :  { %1479 = vmatprep.subr.bf16.mxu0 %v1252_v22 }
 0x202   :  { %1480 = vmatpush1.bf16.msra.mxu0 %v1251_v34 }
 0x203   :  { %v2776_v23 = vpop.permute.xlu1 %1240  ;;  %1569 = vmatprep.subr.bf16.mxu0 %v2492_v8  ;;  %v903_v28 = vpop.permute.xlu0 %902 }
 0x204   :  { %v1254_v25 = vsel %vm1248_vm11, %v1239_v12, %v2776_v23  ;;  %v915_v47 = vsel %vm908_vm6, %v2721_v7, %v903_v28 }
 0x205   :  { %1496 = vmatmul.mubr.bf16.vlgmr.msra.gmra.mrb[12].mxu0 %v2703_v24  ;;  %1532 = vmatprep.subr.bf16.mxu1 %v1254_v25 }
 0x206   :  { %1533 = vmatpush1.bf16.msra.mxu1 %v1253_v32  ;;  %1570 = vmatpush1.bf16.msra.mxu0 %v2488_v6 }
 0x207   :  { %v835_v35 = vpop.permute.xlu1 %834  ;;  %v1039_v37 = vpop.permute.xlu0 %1038  ;;  %1622 = vmatprep.subr.bf16.mxu1 %v2165_v0  ;;  %1925 = vmatprep.mubr.msk.bf16.mxu0 %vm1403_vm3, %v2707_v31 }
 0x208   :  { %v1051_v51 = vsel %vm1044_vm8, %v2745_v53, %v1039_v37 }
 0x209   :  { %1549 = vmatmul.mubr.bf16.vlgmr.msra.gmra.mrb[16].mxu1 %v2703_v24 }
 0x20a   :  { %1623 = vmatpush1.bf16.msra.mxu1 %v2528_v14  ;;  %1927 = vmatprep.mubr.msk.bf16.mxu1 %vm1403_vm3, %v2707_v31  ;;  %v779_v14 = vsel %vm772_vm4, %v2690_v9, %v767_v19 }
 0x20b   :  { %v971_v8 = vpop.permute.xlu1 %970  ;;  %v837_v36 = vpop.permute.xlu0 %836  ;;  %1624 = vmatprep.subr.bf16.mxu1 %v2165_v0 }
 0x20c   :  { %v848_v41 = vsel %vm840_vm5, %v835_v35, %v837_v36  ;;  %v849_v9 = vsel %vm840_vm5, %v837_v36, %v2588_v20  ;;  %v983_v48 = vsel %vm976_vm7, %v2734_v44, %v971_v8 }
 0x20d   :  { %1506 = vmatmul.mubr.bf16.gmra.mrb[16].mxu0 %v2719_v38 }
 0x20e   :  { %1928 = vmatprep.mubr.msk.bf16.mxu0 %vm1403_vm3, %v2518_v17 }
 0x20f   :  { %v769_v6 = vpop.permute.xlu1 %768  ;;  %v1043_v39 = vpop.permute.xlu0 %1042 }
 0x210   :  { %v781_v5 = vsel %vm772_vm4, %v769_v6, %v2578_v15  ;;  %v780_v40 = vsel %vm772_vm4, %v767_v19, %v769_v6  ;;  %v847_v15 = vsel %vm840_vm5, %v2705_v27, %v835_v35 }
 0x211   :  { %1559 = vmatmul.mubr.bf16.gmra.mrb[20].mxu1 %v2719_v38  ;;  %1571 = vmatprep.subr.bf16.mxu0 %v780_v40 }
 0x212   :  { %1625 = vmatpush1.bf16.msra.mxu1 %v781_v5  ;;  %1572 = vmatpush1.bf16.msra.mxu0 %v779_v14 }
 0x213   :  { %v975_v42 = vpop.permute.xlu1 %974  ;;  %1573 = vmatprep.subr.bf16.mxu0 %v848_v41  ;;  %v973_v26 = vpop.permute.xlu0 %972  ;;  %1626 = vmatprep.subr.bf16.mxu1 %v2165_v0 }
 0x214   :  { %1930 = vmatprep.mubr.msk.bf16.mxu1 %vm1403_vm3, %v2518_v17  ;;  %v984_v27 = vsel %vm976_vm7, %v971_v8, %v973_v26 }
 0x216   :  { %1627 = vmatpush1.bf16.msra.mxu1 %v849_v9  ;;  %1574 = vmatpush1.bf16.msra.mxu0 %v847_v15 }
 0x217   :  { %v905_v43 = vpop.permute.xlu1 %904  ;;  %1628 = vmatprep.subr.bf16.mxu1 %v2165_v0  ;;  %v1175_v17 = vpop.permute.xlu0 %1174 }
 0x218   :  { %v917_v45 = vsel %vm908_vm6, %v905_v43, %v2590_v21  ;;  %v916_v46 = vsel %vm908_vm6, %v903_v28, %v905_v43  ;;  %v985_v21 = vsel %vm976_vm7, %v973_v26, %v975_v42  ;;  %v1187_v59 = vsel %vm1180_vm10, %v2766_v11, %v1175_v17 }
 0x219   :  { %1575 = vmatprep.subr.bf16.mxu0 %v916_v46 }
 0x21a   :  { %1629 = vmatpush1.bf16.msra.mxu1 %v917_v45  ;;  %1576 = vmatpush1.bf16.msra.mxu0 %v915_v47 }
 0x21b   :  { %v1107_v20 = vpop.permute.xlu1 %1106  ;;  %1577 = vmatprep.subr.bf16.mxu0 %v984_v27  ;;  %1630 = vmatprep.subr.bf16.mxu1 %v2165_v0  ;;  %v1109_v49 = vpop.permute.xlu0 %1108 }
 0x21c   :  { %v1120_v44 = vsel %vm1112_vm9, %v1107_v20, %v1109_v49  ;;  %v1119_v55 = vsel %vm1112_vm9, %v2756_v62, %v1107_v20 }
 0x21e   :  { %1631 = vmatpush1.bf16.msra.mxu1 %v985_v21  ;;  %1578 = vmatpush1.bf16.msra.mxu0 %v983_v48 }
 0x21f   :  { %v1041_v50 = vpop.permute.xlu1 %1040  ;;  %1632 = vmatprep.subr.bf16.mxu1 %v2165_v0  ;;  %v1179_v56 = vpop.permute.xlu0 %1178 }
 0x220   :  { %v1053_v7 = vsel %vm1044_vm8, %v1041_v50, %v1043_v39  ;;  %v1052_v29 = vsel %vm1044_vm8, %v1039_v37, %v1041_v50 }
 0x221   :  { %1579 = vmatprep.subr.bf16.mxu0 %v1052_v29 }
 0x222   :  { %1633 = vmatpush1.bf16.msra.mxu1 %v1053_v7  ;;  %1580 = vmatpush1.bf16.msra.mxu0 %v1051_v51 }
 0x223   :  { %v1111_v52 = vpop.permute.xlu1 %1110  ;;  %1581 = vmatprep.subr.bf16.mxu0 %v1120_v44  ;;  %1634 = vmatprep.subr.bf16.mxu1 %v2165_v0  ;;  %v1245_v30 = vpop.permute.xlu0 %1244 }
 0x224   :  { %v1121_v54 = vsel %vm1112_vm9, %v1109_v49, %v1111_v52 }
 0x226   :  { %1635 = vmatpush1.bf16.msra.mxu1 %v1121_v54  ;;  %1582 = vmatpush1.bf16.msra.mxu0 %v1119_v55 }
 0x227   :  { %v1177_v57 = vpop.permute.xlu1 %1176  ;;  %1636 = vmatprep.subr.bf16.mxu1 %v2165_v0 }
 0x228   :  { %v1189_v53 = vsel %vm1180_vm10, %v1177_v57, %v1179_v56  ;;  %v1188_v58 = vsel %vm1180_vm10, %v1175_v17, %v1177_v57 }
 0x229   :  { %1583 = vmatprep.subr.bf16.mxu0 %v1188_v58 }
 0x22a   :  { %1637 = vmatpush1.bf16.msra.mxu1 %v1189_v53  ;;  %1584 = vmatpush1.bf16.msra.mxu0 %v1187_v59 }
 0x22b   :  { %v1243_v60 = vpop.permute.xlu1 %1242  ;;  %1638 = vmatprep.subr.bf16.mxu1 %v2165_v0 }
 0x22c   :  { %v1255_v61 = vsel %vm1248_vm11, %v2776_v23, %v1243_v60  ;;  %v1256_v62 = vsel %vm1248_vm11, %v1243_v60, %v1245_v30 }
 0x22d   :  { %1585 = vmatprep.subr.bf16.mxu0 %v1256_v62 }
 0x22e   :  { %1586 = vmatpush1.bf16.msra.mxu0 %v1255_v61 }
 0x22f   :  { %v1247_v63 = vpop.permute.xlu1 %1246 }
 0x230   :  { %v1257_v1 = vsel %vm1248_vm11, %v1245_v30, %v1247_v63 }
 0x231   :  { %1602 = vmatmul.mubr.bf16.vlgmr.msra.gmra.mrb[20].mxu0 %v2703_v24  ;;  %1639 = vmatpush1.bf16.msra.mxu1 %v1257_v1 }
 0x232   :  { %1929 = vmatprep.mubr.msk.bf16.mxu0 %vm1403_vm3, %v2707_v31 }
 0x234   :  { %1655 = vmatmul.mubr.bf16.vlgmr.msra.gmra.mrb[24].mxu1 %v2703_v24  ;;  %v2848_v0 = vpop.permute.xlu0 %1367 }
 0x235   :  { %1931 = vmatprep.mubr.msk.bf16.mxu1 %vm1403_vm3, %v2707_v31 }
 0x238   :  { %v2856_v22 = vpop.permute.xlu0 %1377 }
 0x239   :  { %1612 = vmatmul.mubr.bf16.gmra.mrb[24].mxu0 %v2719_v38 }
 0x23c   :  { %1663 = vmatmul.mubr.bf16.gmra.mrb[28].mxu1 %v2719_v38 }
 0x240   :  { %v2850_v3 = vpop.permute.xlu1 %1372 }
 0x244   :  { %v2861_v28 = vpop.permute.xlu1 %1382 }
 0x2a9   :  { %v1444_v2 = vpop.f32.mrb[8].mxu1 }
 0x2aa   :  { %v1445_v4 = vadd.f32 %v1444_v2, %v2848_v0  ;;  %v1446_v10 = vpop.f32.mrb[9].mxu1 }
 0x2ab   :  { %v1447_v33 = vadd.f32 %v1446_v10, %v2848_v0  ;;  %v1448_v11 = vpop.f32.mrb[10].mxu1 }
 0x2ac   :  { %v1671_v12 = vmax.f32 %v1445_v4, 0.0  ;;  %v1450_v24 = vpop.f32.mrb[11].mxu1  ;;  %v1449_v13 = vadd.f32 %v1448_v11, %v2850_v3 }
 0x2ad   :  { %v1672_v31 = vmax.f32 %v1447_v33, 0.0  ;;  %v1451_v16 = vadd.f32 %v1450_v24, %v2850_v3 }
 0x2ae   :  { %v1680_v18 = vmax.f32 %v1449_v13, 0.0 }
 0x2af   :  { %v1952_v38 = vpack.c.bf16 %v1672_v31, %v1671_v12  ;;  %v1681_v19 = vmax.f32 %v1451_v16, 0.0 }
 0x2b1   :  { %1819 = vst [vmem:[%s2957_s5] sm:$0xff] %v1952_v38  ;;  %v1454_v34 = vpop.f32.mrb[12].mxu1  ;;  %v1957_v23 = vpack.c.bf16 %v1681_v19, %v1680_v18 }
 0x2b2   :  { %v1455_v25 = vadd.f32 %v1454_v34, %v2856_v22  ;;  %v1456_v32 = vpop.f32.mrb[13].mxu1 }
 0x2b3   :  { %v1457_v35 = vadd.f32 %v1456_v32, %v2856_v22  ;;  %1824 = vst [vmem:[%s2957_s5 + $0x24] sm:$0xff] %v1957_v23  ;;  %v1458_v37 = vpop.f32.mrb[14].mxu1 }
 0x2b4   :  { %v1689_v8 = vmax.f32 %v1455_v25, 0.0  ;;  %v1460_v36 = vpop.f32.mrb[15].mxu1  ;;  %v1459_v6 = vadd.f32 %v1458_v37, %v2861_v28 }
 0x2b5   :  { %v1690_v39 = vmax.f32 %v1457_v35, 0.0  ;;  %v1461_v5 = vadd.f32 %v1460_v36, %v2861_v28 }
 0x2b6   :  { %v1698_v40 = vmax.f32 %v1459_v6, 0.0 }
 0x2b7   :  { %v1962_v14 = vpack.c.bf16 %v1690_v39, %v1689_v8  ;;  %v1699_v41 = vmax.f32 %v1461_v5, 0.0 }
 0x2b9   :  { %1829 = vst [vmem:[%s2957_s5 + $0x48] sm:$0xff] %v1962_v14  ;;  %v1967_v42 = vpack.c.bf16 %v1699_v41, %v1698_v40 }
 0x2bb   :  { %1834 = vst [vmem:[%s2957_s5 + $0x6c] sm:$0xff] %v1967_v42 }
 0x2d8   :  { %v1497_v26 = vpop.f32.mrb[12].mxu0 }
 0x2d9   :  { %v1498_v15 = vadd.f32 %v1497_v26, %v2848_v0  ;;  %v1499_v9 = vpop.f32.mrb[13].mxu0 }
 0x2da   :  { %v1500_v43 = vadd.f32 %v1499_v9, %v2848_v0  ;;  %v1501_v45 = vpop.f32.mrb[14].mxu0 }
 0x2db   :  { %v1673_v46 = vmax.f32 %v1498_v15, 0.0  ;;  %v1502_v47 = vadd.f32 %v1501_v45, %v2850_v3  ;;  %v1503_v17 = vpop.f32.mrb[15].mxu0 }
 0x2dc   :  { %v1674_v27 = vmax.f32 %v1500_v43, 0.0  ;;  %v1550_v20 = vpop.f32.mrb[16].mxu1  ;;  %v1504_v48 = vadd.f32 %v1503_v17, %v2850_v3 }
 0x2dd   :  { %v1551_v21 = vadd.f32 %v1550_v20, %v2848_v0  ;;  %v1552_v49 = vpop.f32.mrb[17].mxu1  ;;  %v1682_v50 = vmax.f32 %v1502_v47, 0.0 }
 0x2de   :  { %v1953_v7 = vpack.c.bf16 %v1674_v27, %v1673_v46  ;;  %v1553_v29 = vadd.f32 %v1552_v49, %v2848_v0  ;;  %v1683_v51 = vmax.f32 %v1504_v48, 0.0  ;;  %v1554_v44 = vpop.f32.mrb[18].mxu1 }
 0x2df   :  { %v1675_v52 = vmax.f32 %v1551_v21, 0.0  ;;  %v1555_v54 = vadd.f32 %v1554_v44, %v2850_v3  ;;  %v1556_v55 = vpop.f32.mrb[19].mxu1 }
 0x2e0   :  { %1820 = vst [vmem:[%s2957_s5 + $0x8] sm:$0xff] %v1953_v7  ;;  %v1676_v56 = vmax.f32 %v1553_v29, 0.0  ;;  %v1958_v57 = vpack.c.bf16 %v1683_v51, %v1682_v50  ;;  %v1507_v53 = vpop.f32.mrb[16].mxu0  ;;  %v1557_v58 = vadd.f32 %v1556_v55, %v2850_v3 }
 0x2e1   :  { %v1508_v59 = vadd.f32 %v1507_v53, %v2856_v22  ;;  %v1509_v30 = vpop.f32.mrb[17].mxu0  ;;  %v1684_v60 = vmax.f32 %v1555_v54, 0.0 }
 0x2e2   :  { %v1954_v61 = vpack.c.bf16 %v1676_v56, %v1675_v52  ;;  %1825 = vst [vmem:[%s2957_s5 + $0x2c] sm:$0xff] %v1958_v57  ;;  %v1510_v62 = vadd.f32 %v1509_v30, %v2856_v22  ;;  %v1685_v63 = vmax.f32 %v1557_v58, 0.0  ;;  %v1511_v1 = vpop.f32.mrb[18].mxu0 }
 0x2e3   :  { %v1691_v2 = vmax.f32 %v1508_v59, 0.0  ;;  %v1512_v4 = vadd.f32 %v1511_v1, %v2861_v28  ;;  %v1513_v10 = vpop.f32.mrb[19].mxu0 }
 0x2e4   :  { %1821 = vst [vmem:[%s2957_s5 + $0x10] sm:$0xff] %v1954_v61  ;;  %v1692_v33 = vmax.f32 %v1510_v62, 0.0  ;;  %v1959_v11 = vpack.c.bf16 %v1685_v63, %v1684_v60  ;;  %v1560_v12 = vpop.f32.mrb[20].mxu1  ;;  %v1514_v24 = vadd.f32 %v1513_v10, %v2861_v28 }
 0x2e5   :  { %v1561_v13 = vadd.f32 %v1560_v12, %v2856_v22  ;;  %v1562_v31 = vpop.f32.mrb[21].mxu1  ;;  %v1700_v16 = vmax.f32 %v1512_v4, 0.0 }
 0x2e6   :  { %v1963_v18 = vpack.c.bf16 %v1692_v33, %v1691_v2  ;;  %1826 = vst [vmem:[%s2957_s5 + $0x34] sm:$0xff] %v1959_v11  ;;  %v1563_v38 = vadd.f32 %v1562_v31, %v2856_v22  ;;  %v1701_v19 = vmax.f32 %v1514_v24, 0.0  ;;  %v1564_v34 = vpop.f32.mrb[22].mxu1 }
 0x2e7   :  { %v1693_v23 = vmax.f32 %v1561_v13, 0.0  ;;  %v1565_v25 = vadd.f32 %v1564_v34, %v2861_v28  ;;  %v1566_v32 = vpop.f32.mrb[23].mxu1 }
 0x2e8   :  { %1830 = vst [vmem:[%s2957_s5 + $0x50] sm:$0xff] %v1963_v18  ;;  %v1694_v35 = vmax.f32 %v1563_v38, 0.0  ;;  %v1968_v37 = vpack.c.bf16 %v1701_v19, %v1700_v16  ;;  %v1567_v8 = vadd.f32 %v1566_v32, %v2861_v28 }
 0x2e9   :  { %v1702_v36 = vmax.f32 %v1565_v25, 0.0 }
 0x2ea   :  { %v1964_v6 = vpack.c.bf16 %v1694_v35, %v1693_v23  ;;  %1835 = vst [vmem:[%s2957_s5 + $0x74] sm:$0xff] %v1968_v37  ;;  %v1703_v39 = vmax.f32 %v1567_v8, 0.0 }
 0x2ec   :  { %1831 = vst [vmem:[%s2957_s5 + $0x58] sm:$0xff] %v1964_v6  ;;  %v1969_v5 = vpack.c.bf16 %v1703_v39, %v1702_v36 }
 0x2ee   :  { %1836 = vst [vmem:[%s2957_s5 + $0x7c] sm:$0xff] %v1969_v5 }
 0x304   :  { %v1603_v40 = vpop.f32.mrb[20].mxu0 }
 0x305   :  { %v1604_v14 = vadd.f32 %v1603_v40, %v2848_v0  ;;  %v1605_v41 = vpop.f32.mrb[21].mxu0 }
 0x306   :  { %v1606_v42 = vadd.f32 %v1605_v41, %v2848_v0  ;;  %v1607_v26 = vpop.f32.mrb[22].mxu0 }
 0x307   :  { %v1677_v15 = vmax.f32 %v1604_v14, 0.0  ;;  %v1608_v9 = vadd.f32 %v1607_v26, %v2850_v3  ;;  %v1609_v43 = vpop.f32.mrb[23].mxu0  ;;  %v1656_v45 = vpop.f32.mrb[24].mxu1 }
 0x308   :  { %v1678_v46 = vmax.f32 %v1606_v42, 0.0  ;;  %v1610_v47 = vadd.f32 %v1609_v43, %v2850_v3  ;;  %v1657_v17 = vadd.f32 %v1656_v45, %v2848_v0  ;;  %v1658_v27 = vpop.f32.mrb[25].mxu1 }
 0x309   :  { %v1686_v20 = vmax.f32 %v1608_v9, 0.0  ;;  %v1659_v48 = vpop.f32.mrb[26].mxu1 }
 0x30a   :  { %v1955_v21 = vpack.c.bf16 %v1678_v46, %v1677_v15  ;;  %v1687_v49 = vmax.f32 %v1610_v47, 0.0  ;;  %v1679_v50 = vmax.f32 %v1657_v17, 0.0  ;;  %v1660_v7 = vadd.f32 %v1659_v48, %v2850_v3  ;;  %v1661_v29 = vpop.f32.mrb[27].mxu1 }
 0x30c   :  { %1822 = vst [vmem:[%s2957_s5 + $0x18] sm:$0xff] %v1955_v21  ;;  %v1960_v51 = vpack.c.bf16 %v1687_v49, %v1686_v20  ;;  %v1956_v44 = vpack.c.bf16 %v1679_v50, %v1679_v50  ;;  %v1688_v52 = vmax.f32 %v1660_v7, 0.0  ;;  %v1613_v54 = vpop.f32.mrb[24].mxu0 }
 0x30d   :  { %v1614_v55 = vadd.f32 %v1613_v54, %v2856_v22  ;;  %v1615_v0 = vpop.f32.mrb[25].mxu0 }
 0x30e   :  { %1827 = vst [vmem:[%s2957_s5 + $0x3c] sm:$0xff] %v1960_v51  ;;  %1823 = vst [vmem:[%s2957_s5 + $0x20] sm:$0xf] %v1956_v44  ;;  %v1961_v3 = vpack.c.bf16 %v1688_v52, %v1688_v52  ;;  %v1616_v56 = vadd.f32 %v1615_v0, %v2856_v22  ;;  %v1617_v57 = vpop.f32.mrb[26].mxu0 }
 0x30f   :  { %v1695_v53 = vmax.f32 %v1614_v55, 0.0  ;;  %v1618_v58 = vadd.f32 %v1617_v57, %v2861_v28  ;;  %v1619_v59 = vpop.f32.mrb[27].mxu0  ;;  %v1664_v30 = vpop.f32.mrb[28].mxu1 }
 0x310   :  { %1828 = vst [vmem:[%s2957_s5 + $0x44] sm:$0xf] %v1961_v3  ;;  %v1696_v60 = vmax.f32 %v1616_v56, 0.0  ;;  %v1620_v61 = vadd.f32 %v1619_v59, %v2861_v28  ;;  %v1665_v62 = vadd.f32 %v1664_v30, %v2856_v22  ;;  %v1666_v63 = vpop.f32.mrb[29].mxu1 }
 0x311   :  { %v1704_v1 = vmax.f32 %v1618_v58, 0.0  ;;  %v1667_v2 = vpop.f32.mrb[30].mxu1 }
 0x312   :  { %v1965_v4 = vpack.c.bf16 %v1696_v60, %v1695_v53  ;;  %v1705_v10 = vmax.f32 %v1620_v61, 0.0  ;;  %v1697_v33 = vmax.f32 %v1665_v62, 0.0  ;;  %v1668_v11 = vadd.f32 %v1667_v2, %v2861_v28  ;;  %v1669_v12 = vpop.f32.mrb[31].mxu1 }
 0x314   :  { %1832 = vst [vmem:[%s2957_s5 + $0x60] sm:$0xff] %v1965_v4  ;;  %v1970_v24 = vpack.c.bf16 %v1705_v10, %v1704_v1  ;;  %v1966_v13 = vpack.c.bf16 %v1697_v33, %v1697_v33  ;;  %v1706_v31 = vmax.f32 %v1668_v11, 0.0 }
 0x316   :  { %1837 = vst [vmem:[%s2957_s5 + $0x84] sm:$0xff] %v1970_v24  ;;  %1833 = vst [vmem:[%s2957_s5 + $0x68] sm:$0xf] %v1966_v13  ;;  %v1971_v22 = vpack.c.bf16 %v1706_v31, %v1706_v31 }
 0x318   :  { %1838 = vst [vmem:[%s2957_s5 + $0x8c] sm:$0xf] %v1971_v22 }
 0x319   :  { %1843 = vsyncpa [#allocation5], 1 }
 0x31a   :  { %1844 = vsyncpa [#allocation7], 1 }

// kernel: cnn_base_forward.3
= control target key start
LH: loop header
LB: loop body
LE: loop exit
PB: predicated region body
PF: predicated region fallthrough
CT: control target
= control target key end

     0   :  { %10 = vsyncpa [#allocation3], 0  ;;  %s12581_s0 = inlined_call_operand.vmem [shape: bf16[8,4608], index: 0, kind: input, shape index: {}]   ;;  %s12582_s1 = inlined_call_operand.hbm [shape: bf16[4608,512], index: 1, kind: input, shape index: {}]   ;;  %s12583_s2 = inlined_call_operand.hbm [shape: f32[1,512], index: 2, kind: input, shape index: {}]   ;;  %s12584_s3 = inlined_call_operand.vmem [shape: bf16[512,32], index: 3, kind: input, shape index: {}]   ;;  %s12585_s4 = inlined_call_operand.hbm [shape: f32[1,32], index: 4, kind: input, shape index: {}]   ;;  %s12586_s5 = inlined_call_operand.vmem [shape: f32[8,32], index: 5, kind: output, shape index: {}]  }
   0x1   :  { %11 = vsyncpa [#allocation5], 0  ;;  %s12248_s18 = smov [#allocation4]   ;;  %s12249_s20 = smov [#allocation2]  }
   0x2   :  { %s32_s19 = sshll.u32 %s12248_s18, 4  ;;  %s19_s21 = sshll.u32 %s12249_s20, 4  ;;  %s33_s19 = int_to_ptr.vmem [resolvable:$true] %s32_s19  ;;  %s12283_s21 = int_to_ptr.vmem [resolvable:$true] %s19_s21 }
   0x3   :  { %s12178_s24 = scalar_lea.hbm %s12583_s2, 64 }
   0x4   :  { %p12179_p0 = scmp.ne.s32.totalorder %s12583_s2, %s12178_s24  ;;  %p12182_p1 = scmp.lt.u32.totalorder %s12178_s24, %s12583_s2 }
   0x6   :  { %p12184_p2 = pnand %p12182_p1, %p12179_p0 }
   0x8   :  { %12187 = shalt.err (!%p12184_p2)
}
   0x9   :  { %s12188_s29 = scalar_lea.vmem %s33_s19, 64  ;;  %p12193_p4 = scmp.lt.s32.totalorder %s33_s19, %s33_s19 }
   0xa   :  { %p12189_p3 = scmp.ne.s32.totalorder %s33_s19, %s12188_s29  ;;  %p12194_p5 = scmp.lt.s32.totalorder %s12188_s29, %s12188_s29 }
   0xc   :  { %p12195_p6 = por %p12194_p5, %p12193_p4 }
   0xe   :  { %p12196_p7 = pnand %p12195_p6, %p12189_p3 }
  0x10   :  { %12199 = shalt.err (!%p12196_p7)
}
  0x11   :  { %35 = dma.hbm_to_vmem [thread:$0]  %s12583_s2, 64, %s33_s19, [#allocation5]  }
  0x12   :  { %s12200_s9 = scalar_lea.hbm %s12582_s1, 147456 }
  0x13   :  { %p12201_p8 = scmp.ne.s32.totalorder %s12582_s1, %s12200_s9  ;;  %p12204_p9 = scmp.lt.u32.totalorder %s12200_s9, %s12582_s1 }
  0x15   :  { %p12206_p10 = pnand %p12204_p9, %p12201_p8 }
  0x17   :  { %12209 = shalt.err (!%p12206_p10)
}
  0x18   :  { %s12210_s14 = scalar_lea.vmem %s12283_s21, 147456  ;;  %p12215_p12 = scmp.lt.s32.totalorder %s12283_s21, %s12283_s21 }
  0x19   :  { %p12211_p11 = scmp.ne.s32.totalorder %s12283_s21, %s12210_s14  ;;  %p12216_p13 = scmp.lt.s32.totalorder %s12210_s14, %s12210_s14 }
  0x1b   :  { %p12217_p0 = por %p12216_p13, %p12215_p12 }
  0x1d   :  { %p12218_p1 = pnand %p12217_p0, %p12211_p11 }
  0x1f   :  { %12221 = shalt.err (!%p12218_p1)
}
  0x20   :  { %s12250_s2 = smov 256   ;;  %s12251_s15 = smov 16  }
  0x21   :  { %25 = dma.hbm_to_vmem [thread:$0]  %s12582_s1, 147456, %s12283_s21, [#allocation3], %s12250_s2, %s12250_s2, %s12251_s15  }
  0x22   :  { %s12252_s18 = smov [#allocation6]   ;;  %s12222_s23 = scalar_lea.hbm %s12585_s4, 16 }
  0x23   :  { %s44_s19 = sshll.u32 %s12252_s18, 4  ;;  %p12223_p2 = scmp.ne.s32.totalorder %s12585_s4, %s12222_s23  ;;  %s45_s19 = int_to_ptr.vmem [resolvable:$true] %s44_s19 }
  0x24   :  { %p12226_p3 = scmp.lt.u32.totalorder %s12222_s23, %s12585_s4 }
  0x26   :  { %p12228_p4 = pnand %p12226_p3, %p12223_p2 }
  0x28   :  { %12231 = shalt.err (!%p12228_p4)
}
  0x29   :  { %s12232_s28 = scalar_lea.vmem %s45_s19, 16  ;;  %s12236_s1 = scalar_lea.vmem %s45_s19, 32 }
  0x2a   :  { %p12233_p5 = scmp.ne.s32.totalorder %s45_s19, %s12232_s28  ;;  %p12237_p6 = scmp.lt.s32.totalorder %s45_s19, %s45_s19 }
  0x2b   :  { %p12238_p7 = scmp.lt.s32.totalorder %s12236_s1, %s12232_s28 }
  0x2d   :  { %p12239_p8 = por %p12238_p7, %p12237_p6 }
  0x2f   :  { %p12240_p9 = pnand %p12239_p8, %p12233_p5 }
  0x31   :  { %12243 = shalt.err (!%p12240_p9)
}
  0x32   :  { %47 = dma.hbm_to_vmem [thread:$0]  %s12585_s4, 16, %s45_s19, [#allocation5]  }
  0x33   :  { %12244 = dma.done.wait [#allocation3], 147456  }
  0x34   :  { %12245 = vsyncadd [#allocation3], 4294819840 }
  0x35   :  { %12246 = dma.done.wait [#allocation5], 80  }
  0x36   :  { %12247 = vsyncadd [#allocation5], 4294967216  ;;  %v10382_v0 = vld [vmem:[#allocation2 + $0x4] ss:$16 sps:$4 sm:$0xff]   ;;  %v10384_v1 = vld [vmem:[#allocation2 + $0xc] ss:$16 sps:$4 sm:$0xff]  }
  0x37   :  { %7136 = vmatprep.subr.bf16.mxu0 %v10382_v0  ;;  %v10386_v2 = vld [vmem:[#allocation2] ss:$16 sps:$4 sm:$0xff]   ;;  %v10387_v3 = vld [vmem:[#allocation2 + $0x8] ss:$16 sps:$4 sm:$0xff]   ;;  %7874 = vmatprep.subr.bf16.mxu1 %v10384_v1  ;;  %v10388_v4 = vld [vmem:[#allocation2 + $0x24] ss:$16 sps:$4 sm:$0xff]  }
  0x38   :  { %7137 = vmatpush1.bf16.msra.mxu0 %v10386_v2  ;;  %7875 = vmatpush1.bf16.msra.mxu1 %v10387_v3  ;;  %v10390_v5 = vld [vmem:[#allocation2 + $0x2c] ss:$16 sps:$4 sm:$0xff]   ;;  %v10392_v6 = vld [vmem:[#allocation2 + $0x20] ss:$16 sps:$4 sm:$0xff]   ;;  %v10393_v7 = vld [vmem:[#allocation2 + $0x28] ss:$16 sps:$4 sm:$0xff]  }
  0x39   :  { %7138 = vmatprep.subr.bf16.mxu0 %v10388_v4  ;;  %7876 = vmatprep.subr.bf16.mxu1 %v10390_v5  ;;  %v10394_v8 = vld [vmem:[#allocation2 + $0x44] ss:$16 sps:$4 sm:$0xff]   ;;  %v10396_v9 = vld [vmem:[#allocation2 + $0x4c] ss:$16 sps:$4 sm:$0xff]   ;;  %v10398_v10 = vld [vmem:[#allocation2 + $0x40] ss:$16 sps:$4 sm:$0xff]  }
  0x3a   :  { %v10399_v11 = vld [vmem:[#allocation2 + $0x48] ss:$16 sps:$4 sm:$0xff]   ;;  %v10400_v12 = vld [vmem:[#allocation2 + $0x64] ss:$16 sps:$4 sm:$0xff]   ;;  %v10402_v13 = vld [vmem:[#allocation2 + $0x6c] ss:$16 sps:$4 sm:$0xff]  }
  0x3b   :  { %v10404_v14 = vld [vmem:[#allocation2 + $0x60] ss:$16 sps:$4 sm:$0xff]   ;;  %v10405_v15 = vld [vmem:[#allocation2 + $0x68] ss:$16 sps:$4 sm:$0xff]   ;;  %v10406_v16 = vld [vmem:[#allocation2 + $0x84] ss:$16 sps:$4 sm:$0xff]  }
  0x3c   :  { %7139 = vmatpush1.bf16.msra.mxu0 %v10392_v6  ;;  %7877 = vmatpush1.bf16.msra.mxu1 %v10393_v7  ;;  %v10408_v17 = vld [vmem:[#allocation2 + $0x8c] ss:$16 sps:$4 sm:$0xff]   ;;  %v10410_v18 = vld [vmem:[#allocation2 + $0x80] ss:$16 sps:$4 sm:$0xff]   ;;  %v10411_v19 = vld [vmem:[#allocation2 + $0x88] ss:$16 sps:$4 sm:$0xff]  }
  0x3d   :  { %7140 = vmatprep.subr.bf16.mxu0 %v10394_v8  ;;  %7878 = vmatprep.subr.bf16.mxu1 %v10396_v9  ;;  %v10412_v20 = vld [vmem:[#allocation2 + $0xa4] ss:$16 sps:$4 sm:$0xff]   ;;  %v10414_v21 = vld [vmem:[#allocation2 + $0xac] ss:$16 sps:$4 sm:$0xff]   ;;  %v10416_v22 = vld [vmem:[#allocation2 + $0xa0] ss:$16 sps:$4 sm:$0xff]  }
  0x3e   :  { %v10417_v23 = vld [vmem:[#allocation2 + $0xa8] ss:$16 sps:$4 sm:$0xff]   ;;  %v10418_v24 = vld [vmem:[#allocation2 + $0xc4] ss:$16 sps:$4 sm:$0xff]   ;;  %v10420_v25 = vld [vmem:[#allocation2 + $0xcc] ss:$16 sps:$4 sm:$0xff]  }
  0x3f   :  { %v10422_v26 = vld [vmem:[#allocation2 + $0xc0] ss:$16 sps:$4 sm:$0xff]   ;;  %v10423_v27 = vld [vmem:[#allocation2 + $0xc8] ss:$16 sps:$4 sm:$0xff]   ;;  %v10424_v28 = vld [vmem:[#allocation2 + $0xe4] ss:$16 sps:$4 sm:$0xff]  }
  0x40   :  { %7141 = vmatpush1.bf16.msra.mxu0 %v10398_v10  ;;  %7879 = vmatpush1.bf16.msra.mxu1 %v10399_v11  ;;  %v10426_v29 = vld [vmem:[#allocation2 + $0xec] ss:$16 sps:$4 sm:$0xff]   ;;  %v10428_v30 = vld [vmem:[#allocation2 + $0xe0] ss:$16 sps:$4 sm:$0xff]   ;;  %v10429_v31 = vld [vmem:[#allocation2 + $0xe8] ss:$16 sps:$4 sm:$0xff]  }
  0x41   :  { %7142 = vmatprep.subr.bf16.mxu0 %v10400_v12  ;;  %7880 = vmatprep.subr.bf16.mxu1 %v10402_v13  ;;  %v10430_v32 = vld [vmem:[#allocation2 + $0x104] ss:$16 sps:$4 sm:$0xff]   ;;  %v10432_v33 = vld [vmem:[#allocation2 + $0x10c] ss:$16 sps:$4 sm:$0xff]   ;;  %v10434_v34 = vld [vmem:[#allocation2 + $0x100] ss:$16 sps:$4 sm:$0xff]  }
  0x42   :  { %v10435_v35 = vld [vmem:[#allocation2 + $0x108] ss:$16 sps:$4 sm:$0xff]   ;;  %v10436_v36 = vld [vmem:[#allocation2 + $0x124] ss:$16 sps:$4 sm:$0xff]   ;;  %v10438_v37 = vld [vmem:[#allocation2 + $0x12c] ss:$16 sps:$4 sm:$0xff]  }
  0x43   :  { %v10440_v38 = vld [vmem:[#allocation2 + $0x120] ss:$16 sps:$4 sm:$0xff]   ;;  %v10441_v39 = vld [vmem:[#allocation2 + $0x128] ss:$16 sps:$4 sm:$0xff]   ;;  %v10442_v40 = vld [vmem:[#allocation2 + $0x144] ss:$16 sps:$4 sm:$0xff]  }
  0x44   :  { %7143 = vmatpush1.bf16.msra.mxu0 %v10404_v14  ;;  %7881 = vmatpush1.bf16.msra.mxu1 %v10405_v15  ;;  %v10444_v41 = vld [vmem:[#allocation2 + $0x14c] ss:$16 sps:$4 sm:$0xff]   ;;  %v10446_v42 = vld [vmem:[#allocation2 + $0x140] ss:$16 sps:$4 sm:$0xff]   ;;  %v10447_v43 = vld [vmem:[#allocation2 + $0x148] ss:$16 sps:$4 sm:$0xff]  }
  0x45   :  { %7144 = vmatprep.subr.bf16.mxu0 %v10406_v16  ;;  %7882 = vmatprep.subr.bf16.mxu1 %v10408_v17  ;;  %v10448_v44 = vld [vmem:[#allocation2 + $0x164] ss:$16 sps:$4 sm:$0xff]   ;;  %v10450_v45 = vld [vmem:[#allocation2 + $0x16c] ss:$16 sps:$4 sm:$0xff]   ;;  %v10452_v47 = vld [vmem:[#allocation2 + $0x160] ss:$16 sps:$4 sm:$0xff]  }
  0x46   :  { %v58_v46 = vld [vmem:[%s12581_s0] sm:$0xff]  ;;  %v10453_v49 = vld [vmem:[#allocation2 + $0x168] ss:$16 sps:$4 sm:$0xff]   ;;  %v10456_v51 = vld [vmem:[#allocation2 + $0x18c] ss:$16 sps:$4 sm:$0xff]   ;;  %vm8964_vm0 = vcmask 261120  }
  0x47   :  { %v8973_v48 = vcombine.high %v58_v46, %v58_v46  ;;  %v10454_v50 = vld [vmem:[#allocation2 + $0x184] ss:$16 sps:$4 sm:$0xff]   ;;  %v10458_v52 = vld [vmem:[#allocation2 + $0x180] ss:$16 sps:$4 sm:$0xff]   ;;  %v10459_v53 = vld [vmem:[#allocation2 + $0x188] ss:$16 sps:$4 sm:$0xff]   ;;  %v8972_v4 = vcombine.low %v58_v46, %v58_v46 }
  0x48   :  { %7145 = vmatpush1.bf16.msra.mxu0 %v10410_v18  ;;  %7883 = vmatpush1.bf16.msra.mxu1 %v10411_v19  ;;  %v10460_v54 = vld [vmem:[#allocation2 + $0x1a4] ss:$16 sps:$4 sm:$0xff]   ;;  %v10462_v55 = vld [vmem:[#allocation2 + $0x1ac] ss:$16 sps:$4 sm:$0xff]   ;;  %v10464_v56 = vld [vmem:[#allocation2 + $0x1a0] ss:$16 sps:$4 sm:$0xff]  }
  0x49   :  { %7146 = vmatprep.subr.bf16.mxu0 %v10412_v20  ;;  %7884 = vmatprep.subr.bf16.mxu1 %v10414_v21  ;;  %v10465_v57 = vld [vmem:[#allocation2 + $0x1a8] ss:$16 sps:$4 sm:$0xff]   ;;  %v10466_v58 = vld [vmem:[#allocation2 + $0x1c4] ss:$16 sps:$4 sm:$0xff]   ;;  %v10468_v59 = vld [vmem:[#allocation2 + $0x1cc] ss:$16 sps:$4 sm:$0xff]  }
  0x4a   :  { %7168 = vmatprep.mubr.bf16.mxu0 %v8973_v48  ;;  %7906 = vmatprep.mubr.bf16.mxu1 %v8973_v48  ;;  %v10470_v60 = vld [vmem:[#allocation2 + $0x1c0] ss:$16 sps:$4 sm:$0xff]   ;;  %v10471_v61 = vld [vmem:[#allocation2 + $0x1c8] ss:$16 sps:$4 sm:$0xff]   ;;  %v10472_v62 = vld [vmem:[#allocation2 + $0x1e4] ss:$16 sps:$4 sm:$0xff]  }
  0x4b   :  { %v10474_v63 = vld [vmem:[#allocation2 + $0x1ec] ss:$16 sps:$4 sm:$0xff]   ;;  %v10476_v0 = vld [vmem:[#allocation2 + $0x1e0] ss:$16 sps:$4 sm:$0xff]   ;;  %v10477_v1 = vld [vmem:[#allocation2 + $0x1e8] ss:$16 sps:$4 sm:$0xff]  }
  0x4c   :  { %7147 = vmatpush1.bf16.msra.mxu0 %v10416_v22  ;;  %7885 = vmatpush1.bf16.msra.mxu1 %v10417_v23  ;;  %v10482_v2 = vld [vmem:[#allocation2 + $0x204] ss:$16 sps:$4 sm:$0xff]   ;;  %v10485_v3 = vld [vmem:[#allocation2 + $0x20c] ss:$16 sps:$4 sm:$0xff]   ;;  %v10480_v5 = vld [vmem:[#allocation2 + $0x200] ss:$16 sps:$4 sm:$0xff]  }
  0x4d   :  { %7148 = vmatprep.subr.bf16.mxu0 %v10418_v24  ;;  %7886 = vmatprep.subr.bf16.mxu1 %v10420_v25  ;;  %v10483_v6 = vld [vmem:[#allocation2 + $0x208] ss:$16 sps:$4 sm:$0xff]   ;;  %v10488_v7 = vld [vmem:[#allocation2 + $0x224] ss:$16 sps:$4 sm:$0xff]   ;;  %v10491_v8 = vld [vmem:[#allocation2 + $0x22c] ss:$16 sps:$4 sm:$0xff]  }
  0x4e   :  { %v10486_v9 = vld [vmem:[#allocation2 + $0x220] ss:$16 sps:$4 sm:$0xff]   ;;  %v10489_v10 = vld [vmem:[#allocation2 + $0x228] ss:$16 sps:$4 sm:$0xff]   ;;  %v10494_v11 = vld [vmem:[#allocation2 + $0x244] ss:$16 sps:$4 sm:$0xff]  }
  0x4f   :  { %v10497_v12 = vld [vmem:[#allocation2 + $0x24c] ss:$16 sps:$4 sm:$0xff]   ;;  %v10492_v13 = vld [vmem:[#allocation2 + $0x240] ss:$16 sps:$4 sm:$0xff]   ;;  %v10495_v14 = vld [vmem:[#allocation2 + $0x248] ss:$16 sps:$4 sm:$0xff]  }
  0x50   :  { %7149 = vmatpush1.bf16.msra.mxu0 %v10422_v26  ;;  %7887 = vmatpush1.bf16.msra.mxu1 %v10423_v27  ;;  %v10500_v15 = vld [vmem:[#allocation2 + $0x264] ss:$16 sps:$4 sm:$0xff]   ;;  %v10503_v16 = vld [vmem:[#allocation2 + $0x26c] ss:$16 sps:$4 sm:$0xff]   ;;  %v10498_v17 = vld [vmem:[#allocation2 + $0x260] ss:$16 sps:$4 sm:$0xff]  }
  0x51   :  { %7150 = vmatprep.subr.bf16.mxu0 %v10424_v28  ;;  %7888 = vmatprep.subr.bf16.mxu1 %v10426_v29  ;;  %v10501_v18 = vld [vmem:[#allocation2 + $0x268] ss:$16 sps:$4 sm:$0xff]   ;;  %v10506_v19 = vld [vmem:[#allocation2 + $0x284] ss:$16 sps:$4 sm:$0xff]   ;;  %v10509_v20 = vld [vmem:[#allocation2 + $0x28c] ss:$16 sps:$4 sm:$0xff]  }
  0x52   :  { %v10504_v21 = vld [vmem:[#allocation2 + $0x280] ss:$16 sps:$4 sm:$0xff]   ;;  %v10507_v22 = vld [vmem:[#allocation2 + $0x288] ss:$16 sps:$4 sm:$0xff]   ;;  %v10512_v23 = vld [vmem:[#allocation2 + $0x2a4] ss:$16 sps:$4 sm:$0xff]  }
  0x53   :  { %v10515_v24 = vld [vmem:[#allocation2 + $0x2ac] ss:$16 sps:$4 sm:$0xff]   ;;  %v10510_v25 = vld [vmem:[#allocation2 + $0x2a0] ss:$16 sps:$4 sm:$0xff]   ;;  %v10513_v26 = vld [vmem:[#allocation2 + $0x2a8] ss:$16 sps:$4 sm:$0xff]  }
  0x54   :  { %7151 = vmatpush1.bf16.msra.mxu0 %v10428_v30  ;;  %7889 = vmatpush1.bf16.msra.mxu1 %v10429_v31  ;;  %v10518_v27 = vld [vmem:[#allocation2 + $0x2c4] ss:$16 sps:$4 sm:$0xff]   ;;  %v10521_v28 = vld [vmem:[#allocation2 + $0x2cc] ss:$16 sps:$4 sm:$0xff]   ;;  %v10516_v31 = vld [vmem:[#allocation2 + $0x2c0] ss:$16 sps:$4 sm:$0xff]  }
  0x55   :  { %7152 = vmatprep.subr.bf16.mxu0 %v10430_v32  ;;  %7890 = vmatprep.subr.bf16.mxu1 %v10432_v33  ;;  %v12332_v29 = vld [vmem:[%s12581_s0 + $0x8] sm:$0xff]  ;;  %v10524_v33 = vld [vmem:[#allocation2 + $0x2e4] ss:$16 sps:$4 sm:$0xff]  }
  0x56   :  { %v8975_v30 = vcombine.high %v12332_v29, %v12332_v29  ;;  %v10519_v32 = vld [vmem:[#allocation2 + $0x2c8] ss:$16 sps:$4 sm:$0xff]   ;;  %v10545_v46 = vld [vmem:[#allocation2 + $0x34c] ss:$16 sps:$4 sm:$0xff]  }
  0x57   :  { %v10543_v48 = vld [vmem:[#allocation2 + $0x348] ss:$16 sps:$4 sm:$0xff]  }
  0x58   :  { %7153 = vmatpush1.bf16.msra.mxu0 %v10434_v34  ;;  %7891 = vmatpush1.bf16.msra.mxu1 %v10435_v35  ;;  %v10527_v34 = vld [vmem:[#allocation2 + $0x2ec] ss:$16 sps:$4 sm:$0xff]   ;;  %v10522_v35 = vld [vmem:[#allocation2 + $0x2e0] ss:$16 sps:$4 sm:$0xff]  }
  0x59   :  { %7154 = vmatprep.subr.bf16.mxu0 %v10436_v36  ;;  %7892 = vmatprep.subr.bf16.mxu1 %v10438_v37  ;;  %v10525_v36 = vld [vmem:[#allocation2 + $0x2e8] ss:$16 sps:$4 sm:$0xff]   ;;  %v10530_v37 = vld [vmem:[#allocation2 + $0x304] ss:$16 sps:$4 sm:$0xff]  }
  0x5c   :  { %7155 = vmatpush1.bf16.msra.mxu0 %v10440_v38  ;;  %7893 = vmatpush1.bf16.msra.mxu1 %v10441_v39  ;;  %v10533_v38 = vld [vmem:[#allocation2 + $0x30c] ss:$16 sps:$4 sm:$0xff]   ;;  %v10528_v39 = vld [vmem:[#allocation2 + $0x300] ss:$16 sps:$4 sm:$0xff]  }
  0x5d   :  { %7156 = vmatprep.subr.bf16.mxu0 %v10442_v40  ;;  %7894 = vmatprep.subr.bf16.mxu1 %v10444_v41  ;;  %v10531_v40 = vld [vmem:[#allocation2 + $0x308] ss:$16 sps:$4 sm:$0xff]   ;;  %v10536_v41 = vld [vmem:[#allocation2 + $0x324] ss:$16 sps:$4 sm:$0xff]  }
  0x60   :  { %7157 = vmatpush1.bf16.msra.mxu0 %v10446_v42  ;;  %7895 = vmatpush1.bf16.msra.mxu1 %v10447_v43  ;;  %v10539_v42 = vld [vmem:[#allocation2 + $0x32c] ss:$16 sps:$4 sm:$0xff]   ;;  %v10534_v43 = vld [vmem:[#allocation2 + $0x320] ss:$16 sps:$4 sm:$0xff]  }
  0x61   :  { %7158 = vmatprep.subr.bf16.mxu0 %v10448_v44  ;;  %7896 = vmatprep.subr.bf16.mxu1 %v10450_v45  ;;  %v10537_v44 = vld [vmem:[#allocation2 + $0x328] ss:$16 sps:$4 sm:$0xff]   ;;  %v10542_v45 = vld [vmem:[#allocation2 + $0x344] ss:$16 sps:$4 sm:$0xff]  }
  0x64   :  { %7159 = vmatpush1.bf16.msra.mxu0 %v10452_v47  ;;  %7897 = vmatpush1.bf16.msra.mxu1 %v10453_v49  ;;  %v10540_v47 = vld [vmem:[#allocation2 + $0x340] ss:$16 sps:$4 sm:$0xff]   ;;  %v10548_v49 = vld [vmem:[#allocation2 + $0x364] ss:$16 sps:$4 sm:$0xff]  }
  0x65   :  { %7160 = vmatprep.subr.bf16.mxu0 %v10454_v50  ;;  %7898 = vmatprep.subr.bf16.mxu1 %v10456_v51  ;;  %v10551_v50 = vld [vmem:[#allocation2 + $0x36c] ss:$16 sps:$4 sm:$0xff]   ;;  %v10546_v51 = vld [vmem:[#allocation2 + $0x360] ss:$16 sps:$4 sm:$0xff]  }
  0x68   :  { %7161 = vmatpush1.bf16.msra.mxu0 %v10458_v52  ;;  %7899 = vmatpush1.bf16.msra.mxu1 %v10459_v53  ;;  %v10549_v52 = vld [vmem:[#allocation2 + $0x368] ss:$16 sps:$4 sm:$0xff]   ;;  %v10554_v53 = vld [vmem:[#allocation2 + $0x384] ss:$16 sps:$4 sm:$0xff]  }
  0x69   :  { %7162 = vmatprep.subr.bf16.mxu0 %v10460_v54  ;;  %7900 = vmatprep.subr.bf16.mxu1 %v10462_v55  ;;  %v10557_v54 = vld [vmem:[#allocation2 + $0x38c] ss:$16 sps:$4 sm:$0xff]   ;;  %v10552_v55 = vld [vmem:[#allocation2 + $0x380] ss:$16 sps:$4 sm:$0xff]  }
  0x6c   :  { %7163 = vmatpush1.bf16.msra.mxu0 %v10464_v56  ;;  %7901 = vmatpush1.bf16.msra.mxu1 %v10465_v57  ;;  %v10555_v56 = vld [vmem:[#allocation2 + $0x388] ss:$16 sps:$4 sm:$0xff]   ;;  %v10560_v57 = vld [vmem:[#allocation2 + $0x3a4] ss:$16 sps:$4 sm:$0xff]  }
  0x6d   :  { %7164 = vmatprep.subr.bf16.mxu0 %v10466_v58  ;;  %7902 = vmatprep.subr.bf16.mxu1 %v10468_v59  ;;  %v10563_v58 = vld [vmem:[#allocation2 + $0x3ac] ss:$16 sps:$4 sm:$0xff]   ;;  %v10558_v59 = vld [vmem:[#allocation2 + $0x3a0] ss:$16 sps:$4 sm:$0xff]  }
  0x70   :  { %7165 = vmatpush1.bf16.msra.mxu0 %v10470_v60  ;;  %7903 = vmatpush1.bf16.msra.mxu1 %v10471_v61  ;;  %v10561_v60 = vld [vmem:[#allocation2 + $0x3a8] ss:$16 sps:$4 sm:$0xff]   ;;  %v10566_v61 = vld [vmem:[#allocation2 + $0x3c4] ss:$16 sps:$4 sm:$0xff]  }
  0x71   :  { %7166 = vmatprep.subr.bf16.mxu0 %v10472_v62  ;;  %7904 = vmatprep.subr.bf16.mxu1 %v10474_v63  ;;  %v10569_v62 = vld [vmem:[#allocation2 + $0x3cc] ss:$16 sps:$4 sm:$0xff]   ;;  %v10564_v63 = vld [vmem:[#allocation2 + $0x3c0] ss:$16 sps:$4 sm:$0xff]  }
  0x74   :  { %7167 = vmatpush1.bf16.msra.mxu0 %v10476_v0  ;;  %7905 = vmatpush1.bf16.msra.mxu1 %v10477_v1  ;;  %v10567_v0 = vld [vmem:[#allocation2 + $0x3c8] ss:$16 sps:$4 sm:$0xff]   ;;  %v10572_v1 = vld [vmem:[#allocation2 + $0x3e4] ss:$16 sps:$4 sm:$0xff]  }
  0x75   :  { %7177 = vmatprep.subr.bf16.mxu0 %v10482_v2  ;;  %7915 = vmatprep.subr.bf16.mxu1 %v10485_v3  ;;  %v10575_v2 = vld [vmem:[#allocation2 + $0x3ec] ss:$16 sps:$4 sm:$0xff]   ;;  %v10570_v3 = vld [vmem:[#allocation2 + $0x3e0] ss:$16 sps:$4 sm:$0xff]  }
  0x77   :  { %7169 = vmatmul.mubr.bf16.vlgmr.msra.gmra.mrb[0].mxu0 %v8972_v4  ;;  %7907 = vmatmul.mubr.bf16.vlgmr.msra.gmra.mrb[0].mxu1 %v8972_v4  ;;  %v10573_v4 = vld [vmem:[#allocation2 + $0x3e8] ss:$16 sps:$4 sm:$0xff]  }
  0x78   :  { %7178 = vmatpush1.bf16.msra.mxu0 %v10480_v5  ;;  %7916 = vmatpush1.bf16.msra.mxu1 %v10483_v6  ;;  %v10580_v5 = vld [vmem:[#allocation2 + $0x404] ss:$16 sps:$4 sm:$0xff]   ;;  %v10583_v6 = vld [vmem:[#allocation2 + $0x40c] ss:$16 sps:$4 sm:$0xff]  }
  0x79   :  { %7179 = vmatprep.subr.bf16.mxu0 %v10488_v7  ;;  %7917 = vmatprep.subr.bf16.mxu1 %v10491_v8  ;;  %v8974_v7 = vcombine.low %v12332_v29, %v12332_v29  ;;  %v10578_v8 = vld [vmem:[#allocation2 + $0x400] ss:$16 sps:$4 sm:$0xff]   ;;  %v10613_v29 = vld [vmem:[#allocation2 + $0x4ac] ss:$16 sps:$4 sm:$0xff]  }
  0x7a   :  { %7209 = vmatprep.mubr.bf16.mxu0 %v8975_v30  ;;  %7947 = vmatprep.mubr.bf16.mxu1 %v8975_v30  ;;  %v10608_v30 = vld [vmem:[#allocation2 + $0x4a0] ss:$16 sps:$4 sm:$0xff]  }
  0x7c   :  { %7180 = vmatpush1.bf16.msra.mxu0 %v10486_v9  ;;  %7918 = vmatpush1.bf16.msra.mxu1 %v10489_v10  ;;  %v10581_v9 = vld [vmem:[#allocation2 + $0x408] ss:$16 sps:$4 sm:$0xff]   ;;  %v10586_v10 = vld [vmem:[#allocation2 + $0x424] ss:$16 sps:$4 sm:$0xff]  }
  0x7d   :  { %7181 = vmatprep.subr.bf16.mxu0 %v10494_v11  ;;  %7919 = vmatprep.subr.bf16.mxu1 %v10497_v12  ;;  %v12341_v11 = vld [vmem:[%s12581_s0 + $0x10] sm:$0xff]  ;;  %v10589_v12 = vld [vmem:[#allocation2 + $0x42c] ss:$16 sps:$4 sm:$0xff]  }
  0x80   :  { %7182 = vmatpush1.bf16.msra.mxu0 %v10492_v13  ;;  %7920 = vmatpush1.bf16.msra.mxu1 %v10495_v14  ;;  %v8977_v13 = vcombine.high %v12341_v11, %v12341_v11  ;;  %v10584_v14 = vld [vmem:[#allocation2 + $0x420] ss:$16 sps:$4 sm:$0xff]  }
  0x81   :  { %7183 = vmatprep.subr.bf16.mxu0 %v10500_v15  ;;  %7921 = vmatprep.subr.bf16.mxu1 %v10503_v16  ;;  %v10587_v15 = vld [vmem:[#allocation2 + $0x428] ss:$16 sps:$4 sm:$0xff]   ;;  %v10592_v16 = vld [vmem:[#allocation2 + $0x444] ss:$16 sps:$4 sm:$0xff]  }
  0x84   :  { %7184 = vmatpush1.bf16.msra.mxu0 %v10498_v17  ;;  %7922 = vmatpush1.bf16.msra.mxu1 %v10501_v18  ;;  %v10595_v17 = vld [vmem:[#allocation2 + $0x44c] ss:$16 sps:$4 sm:$0xff]   ;;  %v10590_v18 = vld [vmem:[#allocation2 + $0x440] ss:$16 sps:$4 sm:$0xff]  }
  0x85   :  { %7185 = vmatprep.subr.bf16.mxu0 %v10506_v19  ;;  %7923 = vmatprep.subr.bf16.mxu1 %v10509_v20  ;;  %v10593_v19 = vld [vmem:[#allocation2 + $0x448] ss:$16 sps:$4 sm:$0xff]   ;;  %v10598_v20 = vld [vmem:[#allocation2 + $0x464] ss:$16 sps:$4 sm:$0xff]  }
  0x88   :  { %7186 = vmatpush1.bf16.msra.mxu0 %v10504_v21  ;;  %7924 = vmatpush1.bf16.msra.mxu1 %v10507_v22  ;;  %v10601_v21 = vld [vmem:[#allocation2 + $0x46c] ss:$16 sps:$4 sm:$0xff]   ;;  %v10596_v22 = vld [vmem:[#allocation2 + $0x460] ss:$16 sps:$4 sm:$0xff]  }
  0x89   :  { %7187 = vmatprep.subr.bf16.mxu0 %v10512_v23  ;;  %7925 = vmatprep.subr.bf16.mxu1 %v10515_v24  ;;  %v10599_v23 = vld [vmem:[#allocation2 + $0x468] ss:$16 sps:$4 sm:$0xff]   ;;  %v10604_v24 = vld [vmem:[#allocation2 + $0x484] ss:$16 sps:$4 sm:$0xff]  }
  0x8c   :  { %7188 = vmatpush1.bf16.msra.mxu0 %v10510_v25  ;;  %7926 = vmatpush1.bf16.msra.mxu1 %v10513_v26  ;;  %v10607_v25 = vld [vmem:[#allocation2 + $0x48c] ss:$16 sps:$4 sm:$0xff]   ;;  %v10602_v26 = vld [vmem:[#allocation2 + $0x480] ss:$16 sps:$4 sm:$0xff]  }
  0x8d   :  { %7189 = vmatprep.subr.bf16.mxu0 %v10518_v27  ;;  %7927 = vmatprep.subr.bf16.mxu1 %v10521_v28  ;;  %v10605_v27 = vld [vmem:[#allocation2 + $0x488] ss:$16 sps:$4 sm:$0xff]   ;;  %v10610_v28 = vld [vmem:[#allocation2 + $0x4a4] ss:$16 sps:$4 sm:$0xff]  }
  0x90   :  { %7190 = vmatpush1.bf16.msra.mxu0 %v10516_v31  ;;  %7928 = vmatpush1.bf16.msra.mxu1 %v10519_v32  ;;  %v10611_v31 = vld [vmem:[#allocation2 + $0x4a8] ss:$16 sps:$4 sm:$0xff]   ;;  %v10616_v32 = vld [vmem:[#allocation2 + $0x4c4] ss:$16 sps:$4 sm:$0xff]  }
  0x91   :  { %7191 = vmatprep.subr.bf16.mxu0 %v10524_v33  ;;  %7929 = vmatprep.subr.bf16.mxu1 %v10527_v34  ;;  %v10619_v33 = vld [vmem:[#allocation2 + $0x4cc] ss:$16 sps:$4 sm:$0xff]   ;;  %v10614_v34 = vld [vmem:[#allocation2 + $0x4c0] ss:$16 sps:$4 sm:$0xff]  }
  0x94   :  { %7192 = vmatpush1.bf16.msra.mxu0 %v10522_v35  ;;  %7930 = vmatpush1.bf16.msra.mxu1 %v10525_v36  ;;  %v10617_v35 = vld [vmem:[#allocation2 + $0x4c8] ss:$16 sps:$4 sm:$0xff]   ;;  %v10622_v36 = vld [vmem:[#allocation2 + $0x4e4] ss:$16 sps:$4 sm:$0xff]  }
  0x95   :  { %7193 = vmatprep.subr.bf16.mxu0 %v10530_v37  ;;  %7931 = vmatprep.subr.bf16.mxu1 %v10533_v38  ;;  %v10625_v37 = vld [vmem:[#allocation2 + $0x4ec] ss:$16 sps:$4 sm:$0xff]   ;;  %v10620_v38 = vld [vmem:[#allocation2 + $0x4e0] ss:$16 sps:$4 sm:$0xff]  }
  0x98   :  { %7194 = vmatpush1.bf16.msra.mxu0 %v10528_v39  ;;  %7932 = vmatpush1.bf16.msra.mxu1 %v10531_v40  ;;  %v10623_v39 = vld [vmem:[#allocation2 + $0x4e8] ss:$16 sps:$4 sm:$0xff]   ;;  %v10628_v40 = vld [vmem:[#allocation2 + $0x504] ss:$16 sps:$4 sm:$0xff]  }
  0x99   :  { %7195 = vmatprep.subr.bf16.mxu0 %v10536_v41  ;;  %7933 = vmatprep.subr.bf16.mxu1 %v10539_v42  ;;  %v10631_v41 = vld [vmem:[#allocation2 + $0x50c] ss:$16 sps:$4 sm:$0xff]   ;;  %v10626_v42 = vld [vmem:[#allocation2 + $0x500] ss:$16 sps:$4 sm:$0xff]  }
  0x9c   :  { %7196 = vmatpush1.bf16.msra.mxu0 %v10534_v43  ;;  %7934 = vmatpush1.bf16.msra.mxu1 %v10537_v44  ;;  %v10629_v43 = vld [vmem:[#allocation2 + $0x508] ss:$16 sps:$4 sm:$0xff]   ;;  %v10634_v44 = vld [vmem:[#allocation2 + $0x524] ss:$16 sps:$4 sm:$0xff]  }
  0x9d   :  { %7197 = vmatprep.subr.bf16.mxu0 %v10542_v45  ;;  %7935 = vmatprep.subr.bf16.mxu1 %v10545_v46  ;;  %v10637_v45 = vld [vmem:[#allocation2 + $0x52c] ss:$16 sps:$4 sm:$0xff]   ;;  %v10632_v46 = vld [vmem:[#allocation2 + $0x520] ss:$16 sps:$4 sm:$0xff]  }
  0xa0   :  { %7198 = vmatpush1.bf16.msra.mxu0 %v10540_v47  ;;  %7936 = vmatpush1.bf16.msra.mxu1 %v10543_v48  ;;  %v10635_v47 = vld [vmem:[#allocation2 + $0x528] ss:$16 sps:$4 sm:$0xff]   ;;  %v10640_v48 = vld [vmem:[#allocation2 + $0x544] ss:$16 sps:$4 sm:$0xff]  }
  0xa1   :  { %7199 = vmatprep.subr.bf16.mxu0 %v10548_v49  ;;  %7937 = vmatprep.subr.bf16.mxu1 %v10551_v50  ;;  %v10643_v49 = vld [vmem:[#allocation2 + $0x54c] ss:$16 sps:$4 sm:$0xff]   ;;  %v10638_v50 = vld [vmem:[#allocation2 + $0x540] ss:$16 sps:$4 sm:$0xff]  }
  0xa4   :  { %7200 = vmatpush1.bf16.msra.mxu0 %v10546_v51  ;;  %7938 = vmatpush1.bf16.msra.mxu1 %v10549_v52  ;;  %v10641_v51 = vld [vmem:[#allocation2 + $0x548] ss:$16 sps:$4 sm:$0xff]   ;;  %v10646_v52 = vld [vmem:[#allocation2 + $0x564] ss:$16 sps:$4 sm:$0xff]  }
  0xa5   :  { %7201 = vmatprep.subr.bf16.mxu0 %v10554_v53  ;;  %7939 = vmatprep.subr.bf16.mxu1 %v10557_v54  ;;  %v10649_v53 = vld [vmem:[#allocation2 + $0x56c] ss:$16 sps:$4 sm:$0xff]   ;;  %v10644_v54 = vld [vmem:[#allocation2 + $0x560] ss:$16 sps:$4 sm:$0xff]  }
  0xa8   :  { %7202 = vmatpush1.bf16.msra.mxu0 %v10552_v55  ;;  %7940 = vmatpush1.bf16.msra.mxu1 %v10555_v56  ;;  %v10647_v55 = vld [vmem:[#allocation2 + $0x568] ss:$16 sps:$4 sm:$0xff]   ;;  %v10652_v56 = vld [vmem:[#allocation2 + $0x584] ss:$16 sps:$4 sm:$0xff]  }
  0xa9   :  { %7203 = vmatprep.subr.bf16.mxu0 %v10560_v57  ;;  %7941 = vmatprep.subr.bf16.mxu1 %v10563_v58  ;;  %v10655_v57 = vld [vmem:[#allocation2 + $0x58c] ss:$16 sps:$4 sm:$0xff]   ;;  %v10650_v58 = vld [vmem:[#allocation2 + $0x580] ss:$16 sps:$4 sm:$0xff]  }
  0xac   :  { %7204 = vmatpush1.bf16.msra.mxu0 %v10558_v59  ;;  %7942 = vmatpush1.bf16.msra.mxu1 %v10561_v60  ;;  %v10653_v59 = vld [vmem:[#allocation2 + $0x588] ss:$16 sps:$4 sm:$0xff]   ;;  %v10658_v60 = vld [vmem:[#allocation2 + $0x5a4] ss:$16 sps:$4 sm:$0xff]  }
  0xad   :  { %7205 = vmatprep.subr.bf16.mxu0 %v10566_v61  ;;  %7943 = vmatprep.subr.bf16.mxu1 %v10569_v62  ;;  %v10661_v61 = vld [vmem:[#allocation2 + $0x5ac] ss:$16 sps:$4 sm:$0xff]   ;;  %v10656_v62 = vld [vmem:[#allocation2 + $0x5a0] ss:$16 sps:$4 sm:$0xff]  }
  0xb0   :  { %7206 = vmatpush1.bf16.msra.mxu0 %v10564_v63  ;;  %7944 = vmatpush1.bf16.msra.mxu1 %v10567_v0  ;;  %v10659_v63 = vld [vmem:[#allocation2 + $0x5a8] ss:$16 sps:$4 sm:$0xff]   ;;  %v10664_v0 = vld [vmem:[#allocation2 + $0x5c4] ss:$16 sps:$4 sm:$0xff]  }
  0xb1   :  { %7207 = vmatprep.subr.bf16.mxu0 %v10572_v1  ;;  %7945 = vmatprep.subr.bf16.mxu1 %v10575_v2  ;;  %v10667_v1 = vld [vmem:[#allocation2 + $0x5cc] ss:$16 sps:$4 sm:$0xff]   ;;  %v10662_v2 = vld [vmem:[#allocation2 + $0x5c0] ss:$16 sps:$4 sm:$0xff]  }
  0xb4   :  { %7208 = vmatpush1.bf16.msra.mxu0 %v10570_v3  ;;  %7946 = vmatpush1.bf16.msra.mxu1 %v10573_v4  ;;  %v10665_v3 = vld [vmem:[#allocation2 + $0x5c8] ss:$16 sps:$4 sm:$0xff]   ;;  %v10670_v4 = vld [vmem:[#allocation2 + $0x5e4] ss:$16 sps:$4 sm:$0xff]  }
  0xb5   :  { %7218 = vmatprep.subr.bf16.mxu0 %v10580_v5  ;;  %7956 = vmatprep.subr.bf16.mxu1 %v10583_v6  ;;  %v10673_v5 = vld [vmem:[#allocation2 + $0x5ec] ss:$16 sps:$4 sm:$0xff]   ;;  %v10668_v6 = vld [vmem:[#allocation2 + $0x5e0] ss:$16 sps:$4 sm:$0xff]  }
  0xb7   :  { %7210 = vmatmul.mubr.bf16.vlgmr.msra.gmra.mrb[0].mxu0 %v8974_v7  ;;  %7948 = vmatmul.mubr.bf16.vlgmr.msra.gmra.mrb[0].mxu1 %v8974_v7  ;;  %v10671_v7 = vld [vmem:[#allocation2 + $0x5e8] ss:$16 sps:$4 sm:$0xff]  }
  0xb8   :  { %7219 = vmatpush1.bf16.msra.mxu0 %v10578_v8  ;;  %7957 = vmatpush1.bf16.msra.mxu1 %v10581_v9  ;;  %v10678_v8 = vld [vmem:[#allocation2 + $0x604] ss:$16 sps:$4 sm:$0xff]   ;;  %v10681_v9 = vld [vmem:[#allocation2 + $0x60c] ss:$16 sps:$4 sm:$0xff]  }
  0xb9   :  { %7220 = vmatprep.subr.bf16.mxu0 %v10586_v10  ;;  %7958 = vmatprep.subr.bf16.mxu1 %v10589_v12  ;;  %v10676_v10 = vld [vmem:[#allocation2 + $0x600] ss:$16 sps:$4 sm:$0xff]   ;;  %v8976_v12 = vcombine.low %v12341_v11, %v12341_v11  ;;  %v10690_v11 = vld [vmem:[#allocation2 + $0x644] ss:$16 sps:$4 sm:$0xff]  }
  0xba   :  { %7250 = vmatprep.mubr.bf16.mxu0 %v8977_v13  ;;  %7988 = vmatprep.mubr.bf16.mxu1 %v8977_v13  ;;  %v10679_v13 = vld [vmem:[#allocation2 + $0x608] ss:$16 sps:$4 sm:$0xff]  }
  0xbc   :  { %7221 = vmatpush1.bf16.msra.mxu0 %v10584_v14  ;;  %7959 = vmatpush1.bf16.msra.mxu1 %v10587_v15  ;;  %v12350_v14 = vld [vmem:[%s12581_s0 + $0x18] sm:$0xff]  ;;  %v10684_v15 = vld [vmem:[#allocation2 + $0x624] ss:$16 sps:$4 sm:$0xff]  }
  0xbd   :  { %7222 = vmatprep.subr.bf16.mxu0 %v10592_v16  ;;  %7960 = vmatprep.subr.bf16.mxu1 %v10595_v17  ;;  %v10687_v16 = vld [vmem:[#allocation2 + $0x62c] ss:$16 sps:$4 sm:$0xff]   ;;  %v8979_v17 = vcombine.high %v12350_v14, %v12350_v14 }
  0xc0   :  { %7223 = vmatpush1.bf16.msra.mxu0 %v10590_v18  ;;  %7961 = vmatpush1.bf16.msra.mxu1 %v10593_v19  ;;  %v10682_v18 = vld [vmem:[#allocation2 + $0x620] ss:$16 sps:$4 sm:$0xff]   ;;  %v10685_v19 = vld [vmem:[#allocation2 + $0x628] ss:$16 sps:$4 sm:$0xff]  }
  0xc1   :  { %7224 = vmatprep.subr.bf16.mxu0 %v10598_v20  ;;  %7962 = vmatprep.subr.bf16.mxu1 %v10601_v21  ;;  %v10693_v20 = vld [vmem:[#allocation2 + $0x64c] ss:$16 sps:$4 sm:$0xff]   ;;  %v10688_v21 = vld [vmem:[#allocation2 + $0x640] ss:$16 sps:$4 sm:$0xff]  }
  0xc4   :  { %7225 = vmatpush1.bf16.msra.mxu0 %v10596_v22  ;;  %7963 = vmatpush1.bf16.msra.mxu1 %v10599_v23  ;;  %v10691_v22 = vld [vmem:[#allocation2 + $0x648] ss:$16 sps:$4 sm:$0xff]   ;;  %v10696_v23 = vld [vmem:[#allocation2 + $0x664] ss:$16 sps:$4 sm:$0xff]  }
  0xc5   :  { %7226 = vmatprep.subr.bf16.mxu0 %v10604_v24  ;;  %7964 = vmatprep.subr.bf16.mxu1 %v10607_v25  ;;  %v10699_v24 = vld [vmem:[#allocation2 + $0x66c] ss:$16 sps:$4 sm:$0xff]   ;;  %v10694_v25 = vld [vmem:[#allocation2 + $0x660] ss:$16 sps:$4 sm:$0xff]  }
  0xc8   :  { %7227 = vmatpush1.bf16.msra.mxu0 %v10602_v26  ;;  %7965 = vmatpush1.bf16.msra.mxu1 %v10605_v27  ;;  %v10697_v26 = vld [vmem:[#allocation2 + $0x668] ss:$16 sps:$4 sm:$0xff]   ;;  %v10702_v27 = vld [vmem:[#allocation2 + $0x684] ss:$16 sps:$4 sm:$0xff]  }
  0xc9   :  { %7228 = vmatprep.subr.bf16.mxu0 %v10610_v28  ;;  %7966 = vmatprep.subr.bf16.mxu1 %v10613_v29  ;;  %v10705_v28 = vld [vmem:[#allocation2 + $0x68c] ss:$16 sps:$4 sm:$0xff]   ;;  %v10700_v29 = vld [vmem:[#allocation2 + $0x680] ss:$16 sps:$4 sm:$0xff]  }
  0xcc   :  { %7229 = vmatpush1.bf16.msra.mxu0 %v10608_v30  ;;  %7967 = vmatpush1.bf16.msra.mxu1 %v10611_v31  ;;  %v10703_v30 = vld [vmem:[#allocation2 + $0x688] ss:$16 sps:$4 sm:$0xff]   ;;  %v10708_v31 = vld [vmem:[#allocation2 + $0x6a4] ss:$16 sps:$4 sm:$0xff]  }
  0xcd   :  { %7230 = vmatprep.subr.bf16.mxu0 %v10616_v32  ;;  %7968 = vmatprep.subr.bf16.mxu1 %v10619_v33  ;;  %v10711_v32 = vld [vmem:[#allocation2 + $0x6ac] ss:$16 sps:$4 sm:$0xff]   ;;  %v10706_v33 = vld [vmem:[#allocation2 + $0x6a0] ss:$16 sps:$4 sm:$0xff]  }
  0xd0   :  { %7231 = vmatpush1.bf16.msra.mxu0 %v10614_v34  ;;  %7969 = vmatpush1.bf16.msra.mxu1 %v10617_v35  ;;  %v10709_v34 = vld [vmem:[#allocation2 + $0x6a8] ss:$16 sps:$4 sm:$0xff]   ;;  %v10714_v35 = vld [vmem:[#allocation2 + $0x6c4] ss:$16 sps:$4 sm:$0xff]  }
  0xd1   :  { %7232 = vmatprep.subr.bf16.mxu0 %v10622_v36  ;;  %7970 = vmatprep.subr.bf16.mxu1 %v10625_v37  ;;  %v10717_v36 = vld [vmem:[#allocation2 + $0x6cc] ss:$16 sps:$4 sm:$0xff]   ;;  %v10712_v37 = vld [vmem:[#allocation2 + $0x6c0] ss:$16 sps:$4 sm:$0xff]  }
  0xd4   :  { %7233 = vmatpush1.bf16.msra.mxu0 %v10620_v38  ;;  %7971 = vmatpush1.bf16.msra.mxu1 %v10623_v39  ;;  %v10715_v38 = vld [vmem:[#allocation2 + $0x6c8] ss:$16 sps:$4 sm:$0xff]   ;;  %v10720_v39 = vld [vmem:[#allocation2 + $0x6e4] ss:$16 sps:$4 sm:$0xff]  }
  0xd5   :  { %7234 = vmatprep.subr.bf16.mxu0 %v10628_v40  ;;  %7972 = vmatprep.subr.bf16.mxu1 %v10631_v41  ;;  %v10723_v40 = vld [vmem:[#allocation2 + $0x6ec] ss:$16 sps:$4 sm:$0xff]   ;;  %v10718_v41 = vld [vmem:[#allocation2 + $0x6e0] ss:$16 sps:$4 sm:$0xff]  }
  0xd8   :  { %7235 = vmatpush1.bf16.msra.mxu0 %v10626_v42  ;;  %7973 = vmatpush1.bf16.msra.mxu1 %v10629_v43  ;;  %v10721_v42 = vld [vmem:[#allocation2 + $0x6e8] ss:$16 sps:$4 sm:$0xff]   ;;  %v10726_v43 = vld [vmem:[#allocation2 + $0x704] ss:$16 sps:$4 sm:$0xff]  }
  0xd9   :  { %7236 = vmatprep.subr.bf16.mxu0 %v10634_v44  ;;  %7974 = vmatprep.subr.bf16.mxu1 %v10637_v45  ;;  %v10729_v44 = vld [vmem:[#allocation2 + $0x70c] ss:$16 sps:$4 sm:$0xff]   ;;  %v10724_v45 = vld [vmem:[#allocation2 + $0x700] ss:$16 sps:$4 sm:$0xff]  }
  0xdc   :  { %7237 = vmatpush1.bf16.msra.mxu0 %v10632_v46  ;;  %7975 = vmatpush1.bf16.msra.mxu1 %v10635_v47  ;;  %v10727_v46 = vld [vmem:[#allocation2 + $0x708] ss:$16 sps:$4 sm:$0xff]   ;;  %v10732_v47 = vld [vmem:[#allocation2 + $0x724] ss:$16 sps:$4 sm:$0xff]  }
  0xdd   :  { %7238 = vmatprep.subr.bf16.mxu0 %v10640_v48  ;;  %7976 = vmatprep.subr.bf16.mxu1 %v10643_v49  ;;  %v10735_v48 = vld [vmem:[#allocation2 + $0x72c] ss:$16 sps:$4 sm:$0xff]   ;;  %v10730_v49 = vld [vmem:[#allocation2 + $0x720] ss:$16 sps:$4 sm:$0xff]  }
  0xe0   :  { %7239 = vmatpush1.bf16.msra.mxu0 %v10638_v50  ;;  %7977 = vmatpush1.bf16.msra.mxu1 %v10641_v51  ;;  %v10733_v50 = vld [vmem:[#allocation2 + $0x728] ss:$16 sps:$4 sm:$0xff]   ;;  %v10738_v51 = vld [vmem:[#allocation2 + $0x744] ss:$16 sps:$4 sm:$0xff]  }
  0xe1   :  { %7240 = vmatprep.subr.bf16.mxu0 %v10646_v52  ;;  %7978 = vmatprep.subr.bf16.mxu1 %v10649_v53  ;;  %v10741_v52 = vld [vmem:[#allocation2 + $0x74c] ss:$16 sps:$4 sm:$0xff]   ;;  %v10736_v53 = vld [vmem:[#allocation2 + $0x740] ss:$16 sps:$4 sm:$0xff]  }
  0xe4   :  { %7241 = vmatpush1.bf16.msra.mxu0 %v10644_v54  ;;  %7979 = vmatpush1.bf16.msra.mxu1 %v10647_v55  ;;  %v10739_v54 = vld [vmem:[#allocation2 + $0x748] ss:$16 sps:$4 sm:$0xff]   ;;  %v10744_v55 = vld [vmem:[#allocation2 + $0x764] ss:$16 sps:$4 sm:$0xff]  }
  0xe5   :  { %7242 = vmatprep.subr.bf16.mxu0 %v10652_v56  ;;  %7980 = vmatprep.subr.bf16.mxu1 %v10655_v57  ;;  %v10747_v56 = vld [vmem:[#allocation2 + $0x76c] ss:$16 sps:$4 sm:$0xff]   ;;  %v10742_v57 = vld [vmem:[#allocation2 + $0x760] ss:$16 sps:$4 sm:$0xff]  }
  0xe8   :  { %7243 = vmatpush1.bf16.msra.mxu0 %v10650_v58  ;;  %7981 = vmatpush1.bf16.msra.mxu1 %v10653_v59  ;;  %v10745_v58 = vld [vmem:[#allocation2 + $0x768] ss:$16 sps:$4 sm:$0xff]   ;;  %v10750_v59 = vld [vmem:[#allocation2 + $0x784] ss:$16 sps:$4 sm:$0xff]  }
  0xe9   :  { %7244 = vmatprep.subr.bf16.mxu0 %v10658_v60  ;;  %7982 = vmatprep.subr.bf16.mxu1 %v10661_v61  ;;  %v10753_v60 = vld [vmem:[#allocation2 + $0x78c] ss:$16 sps:$4 sm:$0xff]   ;;  %v10748_v61 = vld [vmem:[#allocation2 + $0x780] ss:$16 sps:$4 sm:$0xff]  }
  0xec   :  { %7245 = vmatpush1.bf16.msra.mxu0 %v10656_v62  ;;  %7983 = vmatpush1.bf16.msra.mxu1 %v10659_v63  ;;  %v10751_v62 = vld [vmem:[#allocation2 + $0x788] ss:$16 sps:$4 sm:$0xff]   ;;  %v10756_v63 = vld [vmem:[#allocation2 + $0x7a4] ss:$16 sps:$4 sm:$0xff]  }
  0xed   :  { %7246 = vmatprep.subr.bf16.mxu0 %v10664_v0  ;;  %7984 = vmatprep.subr.bf16.mxu1 %v10667_v1  ;;  %v10759_v0 = vld [vmem:[#allocation2 + $0x7ac] ss:$16 sps:$4 sm:$0xff]   ;;  %v10754_v1 = vld [vmem:[#allocation2 + $0x7a0] ss:$16 sps:$4 sm:$0xff]  }
  0xf0   :  { %7247 = vmatpush1.bf16.msra.mxu0 %v10662_v2  ;;  %7985 = vmatpush1.bf16.msra.mxu1 %v10665_v3  ;;  %v10757_v2 = vld [vmem:[#allocation2 + $0x7a8] ss:$16 sps:$4 sm:$0xff]   ;;  %v10762_v3 = vld [vmem:[#allocation2 + $0x7c4] ss:$16 sps:$4 sm:$0xff]  }
  0xf1   :  { %7248 = vmatprep.subr.bf16.mxu0 %v10670_v4  ;;  %7986 = vmatprep.subr.bf16.mxu1 %v10673_v5  ;;  %v10765_v4 = vld [vmem:[#allocation2 + $0x7cc] ss:$16 sps:$4 sm:$0xff]   ;;  %v10760_v5 = vld [vmem:[#allocation2 + $0x7c0] ss:$16 sps:$4 sm:$0xff]  }
  0xf4   :  { %7249 = vmatpush1.bf16.msra.mxu0 %v10668_v6  ;;  %7987 = vmatpush1.bf16.msra.mxu1 %v10671_v7  ;;  %v10763_v6 = vld [vmem:[#allocation2 + $0x7c8] ss:$16 sps:$4 sm:$0xff]   ;;  %v10768_v7 = vld [vmem:[#allocation2 + $0x7e4] ss:$16 sps:$4 sm:$0xff]  }
  0xf5   :  { %7259 = vmatprep.subr.bf16.mxu0 %v10678_v8  ;;  %7997 = vmatprep.subr.bf16.mxu1 %v10681_v9  ;;  %v10771_v8 = vld [vmem:[#allocation2 + $0x7ec] ss:$16 sps:$4 sm:$0xff]   ;;  %v10766_v9 = vld [vmem:[#allocation2 + $0x7e0] ss:$16 sps:$4 sm:$0xff]  }
  0xf7   :  { %7251 = vmatmul.mubr.bf16.vlgmr.msra.gmra.mrb[0].mxu0 %v8976_v12  ;;  %7989 = vmatmul.mubr.bf16.vlgmr.msra.gmra.mrb[0].mxu1 %v8976_v12  ;;  %v10776_v12 = vld [vmem:[#allocation2 + $0x804] ss:$16 sps:$4 sm:$0xff]  }
  0xf8   :  { %7260 = vmatpush1.bf16.msra.mxu0 %v10676_v10  ;;  %7998 = vmatpush1.bf16.msra.mxu1 %v10679_v13  ;;  %v10769_v10 = vld [vmem:[#allocation2 + $0x7e8] ss:$16 sps:$4 sm:$0xff]   ;;  %v10779_v13 = vld [vmem:[#allocation2 + $0x80c] ss:$16 sps:$4 sm:$0xff]  }
  0xf9   :  { %7261 = vmatprep.subr.bf16.mxu0 %v10684_v15  ;;  %7999 = vmatprep.subr.bf16.mxu1 %v10687_v16  ;;  %v10774_v15 = vld [vmem:[#allocation2 + $0x800] ss:$16 sps:$4 sm:$0xff]   ;;  %v8978_v16 = vcombine.low %v12350_v14, %v12350_v14 }
  0xfa   :  { %7291 = vmatprep.mubr.bf16.mxu0 %v8979_v17  ;;  %8029 = vmatprep.mubr.bf16.mxu1 %v8979_v17  ;;  %v12359_v17 = vld [vmem:[%s12581_s0 + $0x20] sm:$0xff] }
  0xfb   :  { %v10780_v14 = vld [vmem:[#allocation2 + $0x820] ss:$16 sps:$4 sm:$0xff]  }
  0xfc   :  { %7262 = vmatpush1.bf16.msra.mxu0 %v10682_v18  ;;  %8000 = vmatpush1.bf16.msra.mxu1 %v10685_v19  ;;  %v10777_v18 = vld [vmem:[#allocation2 + $0x808] ss:$16 sps:$4 sm:$0xff]   ;;  %v10782_v19 = vld [vmem:[#allocation2 + $0x824] ss:$16 sps:$4 sm:$0xff]  }
  0xfd   :  { %7263 = vmatprep.subr.bf16.mxu0 %v10690_v11  ;;  %8001 = vmatprep.subr.bf16.mxu1 %v10693_v20  ;;  %v10785_v11 = vld [vmem:[#allocation2 + $0x82c] ss:$16 sps:$4 sm:$0xff]   ;;  %v8981_v20 = vcombine.high %v12359_v17, %v12359_v17 }
 0x100   :  { %7264 = vmatpush1.bf16.msra.mxu0 %v10688_v21  ;;  %8002 = vmatpush1.bf16.msra.mxu1 %v10691_v22  ;;  %v10783_v21 = vld [vmem:[#allocation2 + $0x828] ss:$16 sps:$4 sm:$0xff]   ;;  %v10788_v22 = vld [vmem:[#allocation2 + $0x844] ss:$16 sps:$4 sm:$0xff]  }
 0x101   :  { %7265 = vmatprep.subr.bf16.mxu0 %v10696_v23  ;;  %8003 = vmatprep.subr.bf16.mxu1 %v10699_v24  ;;  %v10791_v23 = vld [vmem:[#allocation2 + $0x84c] ss:$16 sps:$4 sm:$0xff]   ;;  %v10786_v24 = vld [vmem:[#allocation2 + $0x840] ss:$16 sps:$4 sm:$0xff]  }
 0x104   :  { %7266 = vmatpush1.bf16.msra.mxu0 %v10694_v25  ;;  %8004 = vmatpush1.bf16.msra.mxu1 %v10697_v26  ;;  %v10789_v25 = vld [vmem:[#allocation2 + $0x848] ss:$16 sps:$4 sm:$0xff]   ;;  %v10794_v26 = vld [vmem:[#allocation2 + $0x864] ss:$16 sps:$4 sm:$0xff]  }
 0x105   :  { %7267 = vmatprep.subr.bf16.mxu0 %v10702_v27  ;;  %8005 = vmatprep.subr.bf16.mxu1 %v10705_v28  ;;  %v10797_v27 = vld [vmem:[#allocation2 + $0x86c] ss:$16 sps:$4 sm:$0xff]   ;;  %v10792_v28 = vld [vmem:[#allocation2 + $0x860] ss:$16 sps:$4 sm:$0xff]  }
 0x108   :  { %7268 = vmatpush1.bf16.msra.mxu0 %v10700_v29  ;;  %8006 = vmatpush1.bf16.msra.mxu1 %v10703_v30  ;;  %v10795_v29 = vld [vmem:[#allocation2 + $0x868] ss:$16 sps:$4 sm:$0xff]   ;;  %v10800_v30 = vld [vmem:[#allocation2 + $0x884] ss:$16 sps:$4 sm:$0xff]  }
 0x109   :  { %7269 = vmatprep.subr.bf16.mxu0 %v10708_v31  ;;  %8007 = vmatprep.subr.bf16.mxu1 %v10711_v32  ;;  %v10803_v31 = vld [vmem:[#allocation2 + $0x88c] ss:$16 sps:$4 sm:$0xff]   ;;  %v10798_v32 = vld [vmem:[#allocation2 + $0x880] ss:$16 sps:$4 sm:$0xff]  }
 0x10c   :  { %7270 = vmatpush1.bf16.msra.mxu0 %v10706_v33  ;;  %8008 = vmatpush1.bf16.msra.mxu1 %v10709_v34  ;;  %v10801_v33 = vld [vmem:[#allocation2 + $0x888] ss:$16 sps:$4 sm:$0xff]   ;;  %v10806_v34 = vld [vmem:[#allocation2 + $0x8a4] ss:$16 sps:$4 sm:$0xff]  }
 0x10d   :  { %7271 = vmatprep.subr.bf16.mxu0 %v10714_v35  ;;  %8009 = vmatprep.subr.bf16.mxu1 %v10717_v36  ;;  %v10809_v35 = vld [vmem:[#allocation2 + $0x8ac] ss:$16 sps:$4 sm:$0xff]   ;;  %v10804_v36 = vld [vmem:[#allocation2 + $0x8a0] ss:$16 sps:$4 sm:$0xff]  }
 0x110   :  { %7272 = vmatpush1.bf16.msra.mxu0 %v10712_v37  ;;  %8010 = vmatpush1.bf16.msra.mxu1 %v10715_v38  ;;  %v10807_v37 = vld [vmem:[#allocation2 + $0x8a8] ss:$16 sps:$4 sm:$0xff]   ;;  %v10812_v38 = vld [vmem:[#allocation2 + $0x8c4] ss:$16 sps:$4 sm:$0xff]  }
 0x111   :  { %7273 = vmatprep.subr.bf16.mxu0 %v10720_v39  ;;  %8011 = vmatprep.subr.bf16.mxu1 %v10723_v40  ;;  %v10815_v39 = vld [vmem:[#allocation2 + $0x8cc] ss:$16 sps:$4 sm:$0xff]   ;;  %v10810_v40 = vld [vmem:[#allocation2 + $0x8c0] ss:$16 sps:$4 sm:$0xff]  }
 0x114   :  { %7274 = vmatpush1.bf16.msra.mxu0 %v10718_v41  ;;  %8012 = vmatpush1.bf16.msra.mxu1 %v10721_v42  ;;  %v10813_v41 = vld [vmem:[#allocation2 + $0x8c8] ss:$16 sps:$4 sm:$0xff]   ;;  %v10818_v42 = vld [vmem:[#allocation2 + $0x8e4] ss:$16 sps:$4 sm:$0xff]  }
 0x115   :  { %7275 = vmatprep.subr.bf16.mxu0 %v10726_v43  ;;  %8013 = vmatprep.subr.bf16.mxu1 %v10729_v44  ;;  %v10821_v43 = vld [vmem:[#allocation2 + $0x8ec] ss:$16 sps:$4 sm:$0xff]   ;;  %v10816_v44 = vld [vmem:[#allocation2 + $0x8e0] ss:$16 sps:$4 sm:$0xff]  }
 0x118   :  { %7276 = vmatpush1.bf16.msra.mxu0 %v10724_v45  ;;  %8014 = vmatpush1.bf16.msra.mxu1 %v10727_v46  ;;  %v10819_v45 = vld [vmem:[#allocation2 + $0x8e8] ss:$16 sps:$4 sm:$0xff]   ;;  %v10824_v46 = vld [vmem:[#allocation2 + $0x904] ss:$16 sps:$4 sm:$0xff]  }
 0x119   :  { %7277 = vmatprep.subr.bf16.mxu0 %v10732_v47  ;;  %8015 = vmatprep.subr.bf16.mxu1 %v10735_v48  ;;  %v10827_v47 = vld [vmem:[#allocation2 + $0x90c] ss:$16 sps:$4 sm:$0xff]   ;;  %v10822_v48 = vld [vmem:[#allocation2 + $0x900] ss:$16 sps:$4 sm:$0xff]  }
 0x11c   :  { %7278 = vmatpush1.bf16.msra.mxu0 %v10730_v49  ;;  %8016 = vmatpush1.bf16.msra.mxu1 %v10733_v50  ;;  %v10825_v49 = vld [vmem:[#allocation2 + $0x908] ss:$16 sps:$4 sm:$0xff]   ;;  %v10830_v50 = vld [vmem:[#allocation2 + $0x924] ss:$16 sps:$4 sm:$0xff]  }
 0x11d   :  { %7279 = vmatprep.subr.bf16.mxu0 %v10738_v51  ;;  %8017 = vmatprep.subr.bf16.mxu1 %v10741_v52  ;;  %v10833_v51 = vld [vmem:[#allocation2 + $0x92c] ss:$16 sps:$4 sm:$0xff]   ;;  %v10828_v52 = vld [vmem:[#allocation2 + $0x920] ss:$16 sps:$4 sm:$0xff]  }
 0x120   :  { %7280 = vmatpush1.bf16.msra.mxu0 %v10736_v53  ;;  %8018 = vmatpush1.bf16.msra.mxu1 %v10739_v54  ;;  %v10831_v53 = vld [vmem:[#allocation2 + $0x928] ss:$16 sps:$4 sm:$0xff]   ;;  %v10836_v54 = vld [vmem:[#allocation2 + $0x944] ss:$16 sps:$4 sm:$0xff]  }
 0x121   :  { %7281 = vmatprep.subr.bf16.mxu0 %v10744_v55  ;;  %8019 = vmatprep.subr.bf16.mxu1 %v10747_v56  ;;  %v10839_v55 = vld [vmem:[#allocation2 + $0x94c] ss:$16 sps:$4 sm:$0xff]   ;;  %v10834_v56 = vld [vmem:[#allocation2 + $0x940] ss:$16 sps:$4 sm:$0xff]  }
 0x124   :  { %7282 = vmatpush1.bf16.msra.mxu0 %v10742_v57  ;;  %8020 = vmatpush1.bf16.msra.mxu1 %v10745_v58  ;;  %v10837_v57 = vld [vmem:[#allocation2 + $0x948] ss:$16 sps:$4 sm:$0xff]   ;;  %v10842_v58 = vld [vmem:[#allocation2 + $0x964] ss:$16 sps:$4 sm:$0xff]  }
 0x125   :  { %7283 = vmatprep.subr.bf16.mxu0 %v10750_v59  ;;  %8021 = vmatprep.subr.bf16.mxu1 %v10753_v60  ;;  %v10845_v59 = vld [vmem:[#allocation2 + $0x96c] ss:$16 sps:$4 sm:$0xff]   ;;  %v10840_v60 = vld [vmem:[#allocation2 + $0x960] ss:$16 sps:$4 sm:$0xff]  }
 0x128   :  { %7284 = vmatpush1.bf16.msra.mxu0 %v10748_v61  ;;  %8022 = vmatpush1.bf16.msra.mxu1 %v10751_v62  ;;  %v10843_v61 = vld [vmem:[#allocation2 + $0x968] ss:$16 sps:$4 sm:$0xff]   ;;  %v10848_v62 = vld [vmem:[#allocation2 + $0x984] ss:$16 sps:$4 sm:$0xff]  }
 0x129   :  { %7285 = vmatprep.subr.bf16.mxu0 %v10756_v63  ;;  %8023 = vmatprep.subr.bf16.mxu1 %v10759_v0  ;;  %v10851_v63 = vld [vmem:[#allocation2 + $0x98c] ss:$16 sps:$4 sm:$0xff]   ;;  %v10846_v0 = vld [vmem:[#allocation2 + $0x980] ss:$16 sps:$4 sm:$0xff]  }
 0x12c   :  { %7286 = vmatpush1.bf16.msra.mxu0 %v10754_v1  ;;  %8024 = vmatpush1.bf16.msra.mxu1 %v10757_v2  ;;  %v10849_v1 = vld [vmem:[#allocation2 + $0x988] ss:$16 sps:$4 sm:$0xff]   ;;  %v10854_v2 = vld [vmem:[#allocation2 + $0x9a4] ss:$16 sps:$4 sm:$0xff]  }
 0x12d   :  { %7287 = vmatprep.subr.bf16.mxu0 %v10762_v3  ;;  %8025 = vmatprep.subr.bf16.mxu1 %v10765_v4  ;;  %v10857_v3 = vld [vmem:[#allocation2 + $0x9ac] ss:$16 sps:$4 sm:$0xff]   ;;  %v10852_v4 = vld [vmem:[#allocation2 + $0x9a0] ss:$16 sps:$4 sm:$0xff]  }
 0x130   :  { %7288 = vmatpush1.bf16.msra.mxu0 %v10760_v5  ;;  %8026 = vmatpush1.bf16.msra.mxu1 %v10763_v6  ;;  %v10855_v5 = vld [vmem:[#allocation2 + $0x9a8] ss:$16 sps:$4 sm:$0xff]   ;;  %v10860_v6 = vld [vmem:[#allocation2 + $0x9c4] ss:$16 sps:$4 sm:$0xff]  }
 0x131   :  { %7289 = vmatprep.subr.bf16.mxu0 %v10768_v7  ;;  %8027 = vmatprep.subr.bf16.mxu1 %v10771_v8  ;;  %v10863_v7 = vld [vmem:[#allocation2 + $0x9cc] ss:$16 sps:$4 sm:$0xff]   ;;  %v10858_v8 = vld [vmem:[#allocation2 + $0x9c0] ss:$16 sps:$4 sm:$0xff]  }
 0x134   :  { %7290 = vmatpush1.bf16.msra.mxu0 %v10766_v9  ;;  %8028 = vmatpush1.bf16.msra.mxu1 %v10769_v10  ;;  %v10861_v9 = vld [vmem:[#allocation2 + $0x9c8] ss:$16 sps:$4 sm:$0xff]   ;;  %v10866_v10 = vld [vmem:[#allocation2 + $0x9e4] ss:$16 sps:$4 sm:$0xff]  }
 0x135   :  { %7300 = vmatprep.subr.bf16.mxu0 %v10776_v12  ;;  %8038 = vmatprep.subr.bf16.mxu1 %v10779_v13  ;;  %v10869_v12 = vld [vmem:[#allocation2 + $0x9ec] ss:$16 sps:$4 sm:$0xff]   ;;  %v10864_v13 = vld [vmem:[#allocation2 + $0x9e0] ss:$16 sps:$4 sm:$0xff]  }
 0x137   :  { %7292 = vmatmul.mubr.bf16.vlgmr.msra.gmra.mrb[0].mxu0 %v8978_v16  ;;  %8030 = vmatmul.mubr.bf16.vlgmr.msra.gmra.mrb[0].mxu1 %v8978_v16  ;;  %v10874_v16 = vld [vmem:[#allocation2 + $0xa04] ss:$16 sps:$4 sm:$0xff]  }
 0x138   :  { %7301 = vmatpush1.bf16.msra.mxu0 %v10774_v15  ;;  %8039 = vmatpush1.bf16.msra.mxu1 %v10777_v18  ;;  %v10867_v15 = vld [vmem:[#allocation2 + $0x9e8] ss:$16 sps:$4 sm:$0xff]   ;;  %v10877_v18 = vld [vmem:[#allocation2 + $0xa0c] ss:$16 sps:$4 sm:$0xff]  }
 0x139   :  { %7302 = vmatprep.subr.bf16.mxu0 %v10782_v19  ;;  %8040 = vmatprep.subr.bf16.mxu1 %v10785_v11  ;;  %v12366_v19 = vld [vmem:[%s12581_s0 + $0x28] sm:$0xff]  ;;  %v8980_v11 = vcombine.low %v12359_v17, %v12359_v17  ;;  %v10886_v17 = vld [vmem:[#allocation2 + $0xa44] ss:$16 sps:$4 sm:$0xff]  }
 0x13a   :  { %7332 = vmatprep.mubr.bf16.mxu0 %v8981_v20  ;;  %8070 = vmatprep.mubr.bf16.mxu1 %v8981_v20  ;;  %v10872_v20 = vld [vmem:[#allocation2 + $0xa00] ss:$16 sps:$4 sm:$0xff]  }
 0x13c   :  { %7303 = vmatpush1.bf16.msra.mxu0 %v10780_v14  ;;  %8041 = vmatpush1.bf16.msra.mxu1 %v10783_v21  ;;  %v10875_v14 = vld [vmem:[#allocation2 + $0xa08] ss:$16 sps:$4 sm:$0xff]   ;;  %v10880_v21 = vld [vmem:[#allocation2 + $0xa24] ss:$16 sps:$4 sm:$0xff]  }
 0x13d   :  { %7304 = vmatprep.subr.bf16.mxu0 %v10788_v22  ;;  %8042 = vmatprep.subr.bf16.mxu1 %v10791_v23  ;;  %v10883_v22 = vld [vmem:[#allocation2 + $0xa2c] ss:$16 sps:$4 sm:$0xff]   ;;  %v8983_v23 = vcombine.high %v12366_v19, %v12366_v19 }
 0x140   :  { %7305 = vmatpush1.bf16.msra.mxu0 %v10786_v24  ;;  %8043 = vmatpush1.bf16.msra.mxu1 %v10789_v25  ;;  %v10878_v24 = vld [vmem:[#allocation2 + $0xa20] ss:$16 sps:$4 sm:$0xff]   ;;  %v10881_v25 = vld [vmem:[#allocation2 + $0xa28] ss:$16 sps:$4 sm:$0xff]  }
 0x141   :  { %7306 = vmatprep.subr.bf16.mxu0 %v10794_v26  ;;  %8044 = vmatprep.subr.bf16.mxu1 %v10797_v27  ;;  %v10889_v26 = vld [vmem:[#allocation2 + $0xa4c] ss:$16 sps:$4 sm:$0xff]   ;;  %v10884_v27 = vld [vmem:[#allocation2 + $0xa40] ss:$16 sps:$4 sm:$0xff]  }
 0x144   :  { %7307 = vmatpush1.bf16.msra.mxu0 %v10792_v28  ;;  %8045 = vmatpush1.bf16.msra.mxu1 %v10795_v29  ;;  %v10887_v28 = vld [vmem:[#allocation2 + $0xa48] ss:$16 sps:$4 sm:$0xff]   ;;  %v10892_v29 = vld [vmem:[#allocation2 + $0xa64] ss:$16 sps:$4 sm:$0xff]  }
 0x145   :  { %7308 = vmatprep.subr.bf16.mxu0 %v10800_v30  ;;  %8046 = vmatprep.subr.bf16.mxu1 %v10803_v31  ;;  %v10895_v30 = vld [vmem:[#allocation2 + $0xa6c] ss:$16 sps:$4 sm:$0xff]   ;;  %v10890_v31 = vld [vmem:[#allocation2 + $0xa60] ss:$16 sps:$4 sm:$0xff]  }
 0x148   :  { %7309 = vmatpush1.bf16.msra.mxu0 %v10798_v32  ;;  %8047 = vmatpush1.bf16.msra.mxu1 %v10801_v33  ;;  %v10893_v32 = vld [vmem:[#allocation2 + $0xa68] ss:$16 sps:$4 sm:$0xff]   ;;  %v10898_v33 = vld [vmem:[#allocation2 + $0xa84] ss:$16 sps:$4 sm:$0xff]  }
 0x149   :  { %7310 = vmatprep.subr.bf16.mxu0 %v10806_v34  ;;  %8048 = vmatprep.subr.bf16.mxu1 %v10809_v35  ;;  %v10901_v34 = vld [vmem:[#allocation2 + $0xa8c] ss:$16 sps:$4 sm:$0xff]   ;;  %v10896_v35 = vld [vmem:[#allocation2 + $0xa80] ss:$16 sps:$4 sm:$0xff]  }
 0x14c   :  { %7311 = vmatpush1.bf16.msra.mxu0 %v10804_v36  ;;  %8049 = vmatpush1.bf16.msra.mxu1 %v10807_v37  ;;  %v10899_v36 = vld [vmem:[#allocation2 + $0xa88] ss:$16 sps:$4 sm:$0xff]   ;;  %v10904_v37 = vld [vmem:[#allocation2 + $0xaa4] ss:$16 sps:$4 sm:$0xff]  }
 0x14d   :  { %7312 = vmatprep.subr.bf16.mxu0 %v10812_v38  ;;  %8050 = vmatprep.subr.bf16.mxu1 %v10815_v39  ;;  %v10907_v38 = vld [vmem:[#allocation2 + $0xaac] ss:$16 sps:$4 sm:$0xff]   ;;  %v10902_v39 = vld [vmem:[#allocation2 + $0xaa0] ss:$16 sps:$4 sm:$0xff]  }
 0x150   :  { %7313 = vmatpush1.bf16.msra.mxu0 %v10810_v40  ;;  %8051 = vmatpush1.bf16.msra.mxu1 %v10813_v41  ;;  %v10905_v40 = vld [vmem:[#allocation2 + $0xaa8] ss:$16 sps:$4 sm:$0xff]   ;;  %v10910_v41 = vld [vmem:[#allocation2 + $0xac4] ss:$16 sps:$4 sm:$0xff]  }
 0x151   :  { %7314 = vmatprep.subr.bf16.mxu0 %v10818_v42  ;;  %8052 = vmatprep.subr.bf16.mxu1 %v10821_v43  ;;  %v10913_v42 = vld [vmem:[#allocation2 + $0xacc] ss:$16 sps:$4 sm:$0xff]   ;;  %v10908_v43 = vld [vmem:[#allocation2 + $0xac0] ss:$16 sps:$4 sm:$0xff]  }
 0x154   :  { %7315 = vmatpush1.bf16.msra.mxu0 %v10816_v44  ;;  %8053 = vmatpush1.bf16.msra.mxu1 %v10819_v45  ;;  %v10911_v44 = vld [vmem:[#allocation2 + $0xac8] ss:$16 sps:$4 sm:$0xff]   ;;  %v10916_v45 = vld [vmem:[#allocation2 + $0xae4] ss:$16 sps:$4 sm:$0xff]  }
 0x155   :  { %7316 = vmatprep.subr.bf16.mxu0 %v10824_v46  ;;  %8054 = vmatprep.subr.bf16.mxu1 %v10827_v47  ;;  %v10919_v46 = vld [vmem:[#allocation2 + $0xaec] ss:$16 sps:$4 sm:$0xff]   ;;  %v10914_v47 = vld [vmem:[#allocation2 + $0xae0] ss:$16 sps:$4 sm:$0xff]  }
 0x158   :  { %7317 = vmatpush1.bf16.msra.mxu0 %v10822_v48  ;;  %8055 = vmatpush1.bf16.msra.mxu1 %v10825_v49  ;;  %v10917_v48 = vld [vmem:[#allocation2 + $0xae8] ss:$16 sps:$4 sm:$0xff]   ;;  %v10922_v49 = vld [vmem:[#allocation2 + $0xb04] ss:$16 sps:$4 sm:$0xff]  }
 0x159   :  { %7318 = vmatprep.subr.bf16.mxu0 %v10830_v50  ;;  %8056 = vmatprep.subr.bf16.mxu1 %v10833_v51  ;;  %v10925_v50 = vld [vmem:[#allocation2 + $0xb0c] ss:$16 sps:$4 sm:$0xff]   ;;  %v10920_v51 = vld [vmem:[#allocation2 + $0xb00] ss:$16 sps:$4 sm:$0xff]  }
 0x15c   :  { %7319 = vmatpush1.bf16.msra.mxu0 %v10828_v52  ;;  %8057 = vmatpush1.bf16.msra.mxu1 %v10831_v53  ;;  %v10923_v52 = vld [vmem:[#allocation2 + $0xb08] ss:$16 sps:$4 sm:$0xff]   ;;  %v10928_v53 = vld [vmem:[#allocation2 + $0xb24] ss:$16 sps:$4 sm:$0xff]  }
 0x15d   :  { %7320 = vmatprep.subr.bf16.mxu0 %v10836_v54  ;;  %8058 = vmatprep.subr.bf16.mxu1 %v10839_v55  ;;  %v10931_v54 = vld [vmem:[#allocation2 + $0xb2c] ss:$16 sps:$4 sm:$0xff]   ;;  %v10926_v55 = vld [vmem:[#allocation2 + $0xb20] ss:$16 sps:$4 sm:$0xff]  }
 0x160   :  { %7321 = vmatpush1.bf16.msra.mxu0 %v10834_v56  ;;  %8059 = vmatpush1.bf16.msra.mxu1 %v10837_v57  ;;  %v10929_v56 = vld [vmem:[#allocation2 + $0xb28] ss:$16 sps:$4 sm:$0xff]   ;;  %v10934_v57 = vld [vmem:[#allocation2 + $0xb44] ss:$16 sps:$4 sm:$0xff]  }
 0x161   :  { %7322 = vmatprep.subr.bf16.mxu0 %v10842_v58  ;;  %8060 = vmatprep.subr.bf16.mxu1 %v10845_v59  ;;  %v10937_v58 = vld [vmem:[#allocation2 + $0xb4c] ss:$16 sps:$4 sm:$0xff]   ;;  %v10932_v59 = vld [vmem:[#allocation2 + $0xb40] ss:$16 sps:$4 sm:$0xff]  }
 0x164   :  { %7323 = vmatpush1.bf16.msra.mxu0 %v10840_v60  ;;  %8061 = vmatpush1.bf16.msra.mxu1 %v10843_v61  ;;  %v10935_v60 = vld [vmem:[#allocation2 + $0xb48] ss:$16 sps:$4 sm:$0xff]   ;;  %v10940_v61 = vld [vmem:[#allocation2 + $0xb64] ss:$16 sps:$4 sm:$0xff]  }
 0x165   :  { %7324 = vmatprep.subr.bf16.mxu0 %v10848_v62  ;;  %8062 = vmatprep.subr.bf16.mxu1 %v10851_v63  ;;  %v10943_v62 = vld [vmem:[#allocation2 + $0xb6c] ss:$16 sps:$4 sm:$0xff]   ;;  %v10938_v63 = vld [vmem:[#allocation2 + $0xb60] ss:$16 sps:$4 sm:$0xff]  }
 0x168   :  { %7325 = vmatpush1.bf16.msra.mxu0 %v10846_v0  ;;  %8063 = vmatpush1.bf16.msra.mxu1 %v10849_v1  ;;  %v10941_v0 = vld [vmem:[#allocation2 + $0xb68] ss:$16 sps:$4 sm:$0xff]   ;;  %v10946_v1 = vld [vmem:[#allocation2 + $0xb84] ss:$16 sps:$4 sm:$0xff]  }
 0x169   :  { %7326 = vmatprep.subr.bf16.mxu0 %v10854_v2  ;;  %8064 = vmatprep.subr.bf16.mxu1 %v10857_v3  ;;  %v10949_v2 = vld [vmem:[#allocation2 + $0xb8c] ss:$16 sps:$4 sm:$0xff]   ;;  %v10944_v3 = vld [vmem:[#allocation2 + $0xb80] ss:$16 sps:$4 sm:$0xff]  }
 0x16c   :  { %7327 = vmatpush1.bf16.msra.mxu0 %v10852_v4  ;;  %8065 = vmatpush1.bf16.msra.mxu1 %v10855_v5  ;;  %v10947_v4 = vld [vmem:[#allocation2 + $0xb88] ss:$16 sps:$4 sm:$0xff]   ;;  %v10952_v5 = vld [vmem:[#allocation2 + $0xba4] ss:$16 sps:$4 sm:$0xff]  }
 0x16d   :  { %7328 = vmatprep.subr.bf16.mxu0 %v10860_v6  ;;  %8066 = vmatprep.subr.bf16.mxu1 %v10863_v7  ;;  %v10955_v6 = vld [vmem:[#allocation2 + $0xbac] ss:$16 sps:$4 sm:$0xff]   ;;  %v10950_v7 = vld [vmem:[#allocation2 + $0xba0] ss:$16 sps:$4 sm:$0xff]  }
 0x170   :  { %7329 = vmatpush1.bf16.msra.mxu0 %v10858_v8  ;;  %8067 = vmatpush1.bf16.msra.mxu1 %v10861_v9  ;;  %v10953_v8 = vld [vmem:[#allocation2 + $0xba8] ss:$16 sps:$4 sm:$0xff]   ;;  %v10958_v9 = vld [vmem:[#allocation2 + $0xbc4] ss:$16 sps:$4 sm:$0xff]  }
 0x171   :  { %7330 = vmatprep.subr.bf16.mxu0 %v10866_v10  ;;  %8068 = vmatprep.subr.bf16.mxu1 %v10869_v12  ;;  %v10961_v10 = vld [vmem:[#allocation2 + $0xbcc] ss:$16 sps:$4 sm:$0xff]   ;;  %v10956_v12 = vld [vmem:[#allocation2 + $0xbc0] ss:$16 sps:$4 sm:$0xff]  }
 0x174   :  { %7331 = vmatpush1.bf16.msra.mxu0 %v10864_v13  ;;  %8069 = vmatpush1.bf16.msra.mxu1 %v10867_v15  ;;  %v10959_v13 = vld [vmem:[#allocation2 + $0xbc8] ss:$16 sps:$4 sm:$0xff]   ;;  %v10964_v15 = vld [vmem:[#allocation2 + $0xbe4] ss:$16 sps:$4 sm:$0xff]  }
 0x175   :  { %7341 = vmatprep.subr.bf16.mxu0 %v10874_v16  ;;  %8079 = vmatprep.subr.bf16.mxu1 %v10877_v18  ;;  %v10967_v16 = vld [vmem:[#allocation2 + $0xbec] ss:$16 sps:$4 sm:$0xff]   ;;  %v10962_v18 = vld [vmem:[#allocation2 + $0xbe0] ss:$16 sps:$4 sm:$0xff]  }
 0x177   :  { %7333 = vmatmul.mubr.bf16.vlgmr.msra.gmra.mrb[0].mxu0 %v8980_v11  ;;  %8071 = vmatmul.mubr.bf16.vlgmr.msra.gmra.mrb[0].mxu1 %v8980_v11  ;;  %v10965_v11 = vld [vmem:[#allocation2 + $0xbe8] ss:$16 sps:$4 sm:$0xff]  }
 0x178   :  { %7342 = vmatpush1.bf16.msra.mxu0 %v10872_v20  ;;  %8080 = vmatpush1.bf16.msra.mxu1 %v10875_v14  ;;  %v10972_v20 = vld [vmem:[#allocation2 + $0xc04] ss:$16 sps:$4 sm:$0xff]   ;;  %v10975_v14 = vld [vmem:[#allocation2 + $0xc0c] ss:$16 sps:$4 sm:$0xff]  }
 0x179   :  { %7343 = vmatprep.subr.bf16.mxu0 %v10880_v21  ;;  %8081 = vmatprep.subr.bf16.mxu1 %v10883_v22  ;;  %v12375_v21 = vld [vmem:[%s12581_s0 + $0x30] sm:$0xff]  ;;  %v8982_v22 = vcombine.low %v12366_v19, %v12366_v19 }
 0x17a   :  { %7373 = vmatprep.mubr.bf16.mxu0 %v8983_v23  ;;  %8111 = vmatprep.mubr.bf16.mxu1 %v8983_v23  ;;  %v10970_v23 = vld [vmem:[#allocation2 + $0xc00] ss:$16 sps:$4 sm:$0xff]   ;;  %v10984_v19 = vld [vmem:[#allocation2 + $0xc44] ss:$16 sps:$4 sm:$0xff]  }
 0x17c   :  { %7344 = vmatpush1.bf16.msra.mxu0 %v10878_v24  ;;  %8082 = vmatpush1.bf16.msra.mxu1 %v10881_v25  ;;  %v10973_v24 = vld [vmem:[#allocation2 + $0xc08] ss:$16 sps:$4 sm:$0xff]   ;;  %v10978_v25 = vld [vmem:[#allocation2 + $0xc24] ss:$16 sps:$4 sm:$0xff]  }
 0x17d   :  { %7345 = vmatprep.subr.bf16.mxu0 %v10886_v17  ;;  %8083 = vmatprep.subr.bf16.mxu1 %v10889_v26  ;;  %v10981_v17 = vld [vmem:[#allocation2 + $0xc2c] ss:$16 sps:$4 sm:$0xff]   ;;  %v8985_v26 = vcombine.high %v12375_v21, %v12375_v21 }
 0x180   :  { %7346 = vmatpush1.bf16.msra.mxu0 %v10884_v27  ;;  %8084 = vmatpush1.bf16.msra.mxu1 %v10887_v28  ;;  %v10976_v27 = vld [vmem:[#allocation2 + $0xc20] ss:$16 sps:$4 sm:$0xff]   ;;  %v10979_v28 = vld [vmem:[#allocation2 + $0xc28] ss:$16 sps:$4 sm:$0xff]  }
 0x181   :  { %7347 = vmatprep.subr.bf16.mxu0 %v10892_v29  ;;  %8085 = vmatprep.subr.bf16.mxu1 %v10895_v30  ;;  %v10987_v29 = vld [vmem:[#allocation2 + $0xc4c] ss:$16 sps:$4 sm:$0xff]   ;;  %v10982_v30 = vld [vmem:[#allocation2 + $0xc40] ss:$16 sps:$4 sm:$0xff]  }
 0x184   :  { %7348 = vmatpush1.bf16.msra.mxu0 %v10890_v31  ;;  %8086 = vmatpush1.bf16.msra.mxu1 %v10893_v32  ;;  %v10985_v31 = vld [vmem:[#allocation2 + $0xc48] ss:$16 sps:$4 sm:$0xff]   ;;  %v10990_v32 = vld [vmem:[#allocation2 + $0xc64] ss:$16 sps:$4 sm:$0xff]  }
 0x185   :  { %7349 = vmatprep.subr.bf16.mxu0 %v10898_v33  ;;  %8087 = vmatprep.subr.bf16.mxu1 %v10901_v34  ;;  %v10993_v33 = vld [vmem:[#allocation2 + $0xc6c] ss:$16 sps:$4 sm:$0xff]   ;;  %v10988_v34 = vld [vmem:[#allocation2 + $0xc60] ss:$16 sps:$4 sm:$0xff]  }
 0x188   :  { %7350 = vmatpush1.bf16.msra.mxu0 %v10896_v35  ;;  %8088 = vmatpush1.bf16.msra.mxu1 %v10899_v36  ;;  %v10991_v35 = vld [vmem:[#allocation2 + $0xc68] ss:$16 sps:$4 sm:$0xff]   ;;  %v10996_v36 = vld [vmem:[#allocation2 + $0xc84] ss:$16 sps:$4 sm:$0xff]  }
 0x189   :  { %7351 = vmatprep.subr.bf16.mxu0 %v10904_v37  ;;  %8089 = vmatprep.subr.bf16.mxu1 %v10907_v38  ;;  %v10999_v37 = vld [vmem:[#allocation2 + $0xc8c] ss:$16 sps:$4 sm:$0xff]   ;;  %v10994_v38 = vld [vmem:[#allocation2 + $0xc80] ss:$16 sps:$4 sm:$0xff]  }
 0x18c   :  { %7352 = vmatpush1.bf16.msra.mxu0 %v10902_v39  ;;  %8090 = vmatpush1.bf16.msra.mxu1 %v10905_v40  ;;  %v10997_v39 = vld [vmem:[#allocation2 + $0xc88] ss:$16 sps:$4 sm:$0xff]   ;;  %v11002_v40 = vld [vmem:[#allocation2 + $0xca4] ss:$16 sps:$4 sm:$0xff]  }
 0x18d   :  { %7353 = vmatprep.subr.bf16.mxu0 %v10910_v41  ;;  %8091 = vmatprep.subr.bf16.mxu1 %v10913_v42  ;;  %v11005_v41 = vld [vmem:[#allocation2 + $0xcac] ss:$16 sps:$4 sm:$0xff]   ;;  %v11000_v42 = vld [vmem:[#allocation2 + $0xca0] ss:$16 sps:$4 sm:$0xff]  }
 0x190   :  { %7354 = vmatpush1.bf16.msra.mxu0 %v10908_v43  ;;  %8092 = vmatpush1.bf16.msra.mxu1 %v10911_v44  ;;  %v11003_v43 = vld [vmem:[#allocation2 + $0xca8] ss:$16 sps:$4 sm:$0xff]   ;;  %v11008_v44 = vld [vmem:[#allocation2 + $0xcc4] ss:$16 sps:$4 sm:$0xff]  }
 0x191   :  { %7355 = vmatprep.subr.bf16.mxu0 %v10916_v45  ;;  %8093 = vmatprep.subr.bf16.mxu1 %v10919_v46  ;;  %v11011_v45 = vld [vmem:[#allocation2 + $0xccc] ss:$16 sps:$4 sm:$0xff]   ;;  %v11006_v46 = vld [vmem:[#allocation2 + $0xcc0] ss:$16 sps:$4 sm:$0xff]  }
 0x194   :  { %7356 = vmatpush1.bf16.msra.mxu0 %v10914_v47  ;;  %8094 = vmatpush1.bf16.msra.mxu1 %v10917_v48  ;;  %v11009_v47 = vld [vmem:[#allocation2 + $0xcc8] ss:$16 sps:$4 sm:$0xff]   ;;  %v11014_v48 = vld [vmem:[#allocation2 + $0xce4] ss:$16 sps:$4 sm:$0xff]  }
 0x195   :  { %7357 = vmatprep.subr.bf16.mxu0 %v10922_v49  ;;  %8095 = vmatprep.subr.bf16.mxu1 %v10925_v50  ;;  %v11017_v49 = vld [vmem:[#allocation2 + $0xcec] ss:$16 sps:$4 sm:$0xff]   ;;  %v11012_v50 = vld [vmem:[#allocation2 + $0xce0] ss:$16 sps:$4 sm:$0xff]  }
 0x198   :  { %7358 = vmatpush1.bf16.msra.mxu0 %v10920_v51  ;;  %8096 = vmatpush1.bf16.msra.mxu1 %v10923_v52  ;;  %v11015_v51 = vld [vmem:[#allocation2 + $0xce8] ss:$16 sps:$4 sm:$0xff]   ;;  %v11020_v52 = vld [vmem:[#allocation2 + $0xd04] ss:$16 sps:$4 sm:$0xff]  }
 0x199   :  { %7359 = vmatprep.subr.bf16.mxu0 %v10928_v53  ;;  %8097 = vmatprep.subr.bf16.mxu1 %v10931_v54  ;;  %v11023_v53 = vld [vmem:[#allocation2 + $0xd0c] ss:$16 sps:$4 sm:$0xff]   ;;  %v11018_v54 = vld [vmem:[#allocation2 + $0xd00] ss:$16 sps:$4 sm:$0xff]  }
 0x19c   :  { %7360 = vmatpush1.bf16.msra.mxu0 %v10926_v55  ;;  %8098 = vmatpush1.bf16.msra.mxu1 %v10929_v56  ;;  %v11021_v55 = vld [vmem:[#allocation2 + $0xd08] ss:$16 sps:$4 sm:$0xff]   ;;  %v11026_v56 = vld [vmem:[#allocation2 + $0xd24] ss:$16 sps:$4 sm:$0xff]  }
 0x19d   :  { %7361 = vmatprep.subr.bf16.mxu0 %v10934_v57  ;;  %8099 = vmatprep.subr.bf16.mxu1 %v10937_v58  ;;  %v11029_v57 = vld [vmem:[#allocation2 + $0xd2c] ss:$16 sps:$4 sm:$0xff]   ;;  %v11024_v58 = vld [vmem:[#allocation2 + $0xd20] ss:$16 sps:$4 sm:$0xff]  }
 0x1a0   :  { %7362 = vmatpush1.bf16.msra.mxu0 %v10932_v59  ;;  %8100 = vmatpush1.bf16.msra.mxu1 %v10935_v60  ;;  %v11027_v59 = vld [vmem:[#allocation2 + $0xd28] ss:$16 sps:$4 sm:$0xff]   ;;  %v11032_v60 = vld [vmem:[#allocation2 + $0xd44] ss:$16 sps:$4 sm:$0xff]  }
 0x1a1   :  { %7363 = vmatprep.subr.bf16.mxu0 %v10940_v61  ;;  %8101 = vmatprep.subr.bf16.mxu1 %v10943_v62  ;;  %v11035_v61 = vld [vmem:[#allocation2 + $0xd4c] ss:$16 sps:$4 sm:$0xff]   ;;  %v11030_v62 = vld [vmem:[#allocation2 + $0xd40] ss:$16 sps:$4 sm:$0xff]  }
 0x1a4   :  { %7364 = vmatpush1.bf16.msra.mxu0 %v10938_v63  ;;  %8102 = vmatpush1.bf16.msra.mxu1 %v10941_v0  ;;  %v11033_v63 = vld [vmem:[#allocation2 + $0xd48] ss:$16 sps:$4 sm:$0xff]   ;;  %v11038_v0 = vld [vmem:[#allocation2 + $0xd64] ss:$16 sps:$4 sm:$0xff]  }
 0x1a5   :  { %7365 = vmatprep.subr.bf16.mxu0 %v10946_v1  ;;  %8103 = vmatprep.subr.bf16.mxu1 %v10949_v2  ;;  %v11041_v1 = vld [vmem:[#allocation2 + $0xd6c] ss:$16 sps:$4 sm:$0xff]   ;;  %v11036_v2 = vld [vmem:[#allocation2 + $0xd60] ss:$16 sps:$4 sm:$0xff]  }
 0x1a8   :  { %7366 = vmatpush1.bf16.msra.mxu0 %v10944_v3  ;;  %8104 = vmatpush1.bf16.msra.mxu1 %v10947_v4  ;;  %v11039_v3 = vld [vmem:[#allocation2 + $0xd68] ss:$16 sps:$4 sm:$0xff]   ;;  %v11044_v4 = vld [vmem:[#allocation2 + $0xd84] ss:$16 sps:$4 sm:$0xff]  }
 0x1a9   :  { %7367 = vmatprep.subr.bf16.mxu0 %v10952_v5  ;;  %8105 = vmatprep.subr.bf16.mxu1 %v10955_v6  ;;  %v11047_v5 = vld [vmem:[#allocation2 + $0xd8c] ss:$16 sps:$4 sm:$0xff]   ;;  %v11042_v6 = vld [vmem:[#allocation2 + $0xd80] ss:$16 sps:$4 sm:$0xff]  }
 0x1ac   :  { %7368 = vmatpush1.bf16.msra.mxu0 %v10950_v7  ;;  %8106 = vmatpush1.bf16.msra.mxu1 %v10953_v8  ;;  %v11045_v7 = vld [vmem:[#allocation2 + $0xd88] ss:$16 sps:$4 sm:$0xff]   ;;  %v11050_v8 = vld [vmem:[#allocation2 + $0xda4] ss:$16 sps:$4 sm:$0xff]  }
 0x1ad   :  { %7369 = vmatprep.subr.bf16.mxu0 %v10958_v9  ;;  %8107 = vmatprep.subr.bf16.mxu1 %v10961_v10  ;;  %v11053_v9 = vld [vmem:[#allocation2 + $0xdac] ss:$16 sps:$4 sm:$0xff]   ;;  %v11048_v10 = vld [vmem:[#allocation2 + $0xda0] ss:$16 sps:$4 sm:$0xff]  }
 0x1b0   :  { %7370 = vmatpush1.bf16.msra.mxu0 %v10956_v12  ;;  %8108 = vmatpush1.bf16.msra.mxu1 %v10959_v13  ;;  %v11051_v12 = vld [vmem:[#allocation2 + $0xda8] ss:$16 sps:$4 sm:$0xff]   ;;  %v11056_v13 = vld [vmem:[#allocation2 + $0xdc4] ss:$16 sps:$4 sm:$0xff]  }
 0x1b1   :  { %7371 = vmatprep.subr.bf16.mxu0 %v10964_v15  ;;  %8109 = vmatprep.subr.bf16.mxu1 %v10967_v16  ;;  %v11059_v15 = vld [vmem:[#allocation2 + $0xdcc] ss:$16 sps:$4 sm:$0xff]   ;;  %v11054_v16 = vld [vmem:[#allocation2 + $0xdc0] ss:$16 sps:$4 sm:$0xff]  }
 0x1b4   :  { %7372 = vmatpush1.bf16.msra.mxu0 %v10962_v18  ;;  %8110 = vmatpush1.bf16.msra.mxu1 %v10965_v11  ;;  %v11057_v18 = vld [vmem:[#allocation2 + $0xdc8] ss:$16 sps:$4 sm:$0xff]   ;;  %v11062_v11 = vld [vmem:[#allocation2 + $0xde4] ss:$16 sps:$4 sm:$0xff]  }
 0x1b5   :  { %7382 = vmatprep.subr.bf16.mxu0 %v10972_v20  ;;  %8120 = vmatprep.subr.bf16.mxu1 %v10975_v14  ;;  %v11065_v20 = vld [vmem:[#allocation2 + $0xdec] ss:$16 sps:$4 sm:$0xff]   ;;  %v11060_v14 = vld [vmem:[#allocation2 + $0xde0] ss:$16 sps:$4 sm:$0xff]  }
 0x1b7   :  { %7374 = vmatmul.mubr.bf16.vlgmr.msra.gmra.mrb[0].mxu0 %v8982_v22  ;;  %8112 = vmatmul.mubr.bf16.vlgmr.msra.gmra.mrb[0].mxu1 %v8982_v22  ;;  %v11063_v22 = vld [vmem:[#allocation2 + $0xde8] ss:$16 sps:$4 sm:$0xff]  }
 0x1b8   :  { %7383 = vmatpush1.bf16.msra.mxu0 %v10970_v23  ;;  %8121 = vmatpush1.bf16.msra.mxu1 %v10973_v24  ;;  %v11070_v23 = vld [vmem:[#allocation2 + $0xe04] ss:$16 sps:$4 sm:$0xff]   ;;  %v11073_v24 = vld [vmem:[#allocation2 + $0xe0c] ss:$16 sps:$4 sm:$0xff]  }
 0x1b9   :  { %7384 = vmatprep.subr.bf16.mxu0 %v10978_v25  ;;  %8122 = vmatprep.subr.bf16.mxu1 %v10981_v17  ;;  %v12384_v25 = vld [vmem:[%s12581_s0 + $0x38] sm:$0xff]  ;;  %v8984_v17 = vcombine.low %v12375_v21, %v12375_v21  ;;  %v11082_v21 = vld [vmem:[#allocation2 + $0xe44] ss:$16 sps:$4 sm:$0xff]  }
 0x1ba   :  { %7414 = vmatprep.mubr.bf16.mxu0 %v8985_v26  ;;  %8152 = vmatprep.mubr.bf16.mxu1 %v8985_v26  ;;  %v11068_v26 = vld [vmem:[#allocation2 + $0xe00] ss:$16 sps:$4 sm:$0xff]  }
 0x1bc   :  { %7385 = vmatpush1.bf16.msra.mxu0 %v10976_v27  ;;  %8123 = vmatpush1.bf16.msra.mxu1 %v10979_v28  ;;  %v11071_v27 = vld [vmem:[#allocation2 + $0xe08] ss:$16 sps:$4 sm:$0xff]   ;;  %v11076_v28 = vld [vmem:[#allocation2 + $0xe24] ss:$16 sps:$4 sm:$0xff]  }
 0x1bd   :  { %7386 = vmatprep.subr.bf16.mxu0 %v10984_v19  ;;  %8124 = vmatprep.subr.bf16.mxu1 %v10987_v29  ;;  %v11079_v19 = vld [vmem:[#allocation2 + $0xe2c] ss:$16 sps:$4 sm:$0xff]   ;;  %v8987_v29 = vcombine.high %v12384_v25, %v12384_v25 }
 0x1c0   :  { %7387 = vmatpush1.bf16.msra.mxu0 %v10982_v30  ;;  %8125 = vmatpush1.bf16.msra.mxu1 %v10985_v31  ;;  %v11074_v30 = vld [vmem:[#allocation2 + $0xe20] ss:$16 sps:$4 sm:$0xff]   ;;  %v11077_v31 = vld [vmem:[#allocation2 + $0xe28] ss:$16 sps:$4 sm:$0xff]  }
 0x1c1   :  { %7388 = vmatprep.subr.bf16.mxu0 %v10990_v32  ;;  %8126 = vmatprep.subr.bf16.mxu1 %v10993_v33  ;;  %v11085_v32 = vld [vmem:[#allocation2 + $0xe4c] ss:$16 sps:$4 sm:$0xff]   ;;  %v11080_v33 = vld [vmem:[#allocation2 + $0xe40] ss:$16 sps:$4 sm:$0xff]  }
 0x1c4   :  { %7389 = vmatpush1.bf16.msra.mxu0 %v10988_v34  ;;  %8127 = vmatpush1.bf16.msra.mxu1 %v10991_v35  ;;  %v11083_v34 = vld [vmem:[#allocation2 + $0xe48] ss:$16 sps:$4 sm:$0xff]   ;;  %v11088_v35 = vld [vmem:[#allocation2 + $0xe64] ss:$16 sps:$4 sm:$0xff]  }
 0x1c5   :  { %7390 = vmatprep.subr.bf16.mxu0 %v10996_v36  ;;  %8128 = vmatprep.subr.bf16.mxu1 %v10999_v37  ;;  %v11091_v36 = vld [vmem:[#allocation2 + $0xe6c] ss:$16 sps:$4 sm:$0xff]   ;;  %v11086_v37 = vld [vmem:[#allocation2 + $0xe60] ss:$16 sps:$4 sm:$0xff]  }
 0x1c8   :  { %7391 = vmatpush1.bf16.msra.mxu0 %v10994_v38  ;;  %8129 = vmatpush1.bf16.msra.mxu1 %v10997_v39  ;;  %v11089_v38 = vld [vmem:[#allocation2 + $0xe68] ss:$16 sps:$4 sm:$0xff]   ;;  %v11094_v39 = vld [vmem:[#allocation2 + $0xe84] ss:$16 sps:$4 sm:$0xff]  }
 0x1c9   :  { %7392 = vmatprep.subr.bf16.mxu0 %v11002_v40  ;;  %8130 = vmatprep.subr.bf16.mxu1 %v11005_v41  ;;  %v11097_v40 = vld [vmem:[#allocation2 + $0xe8c] ss:$16 sps:$4 sm:$0xff]   ;;  %v11092_v41 = vld [vmem:[#allocation2 + $0xe80] ss:$16 sps:$4 sm:$0xff]  }
 0x1cc   :  { %7393 = vmatpush1.bf16.msra.mxu0 %v11000_v42  ;;  %8131 = vmatpush1.bf16.msra.mxu1 %v11003_v43  ;;  %v11095_v42 = vld [vmem:[#allocation2 + $0xe88] ss:$16 sps:$4 sm:$0xff]   ;;  %v11100_v43 = vld [vmem:[#allocation2 + $0xea4] ss:$16 sps:$4 sm:$0xff]  }
 0x1cd   :  { %7394 = vmatprep.subr.bf16.mxu0 %v11008_v44  ;;  %8132 = vmatprep.subr.bf16.mxu1 %v11011_v45  ;;  %v11103_v44 = vld [vmem:[#allocation2 + $0xeac] ss:$16 sps:$4 sm:$0xff]   ;;  %v11098_v45 = vld [vmem:[#allocation2 + $0xea0] ss:$16 sps:$4 sm:$0xff]  }
 0x1d0   :  { %7395 = vmatpush1.bf16.msra.mxu0 %v11006_v46  ;;  %8133 = vmatpush1.bf16.msra.mxu1 %v11009_v47  ;;  %v11101_v46 = vld [vmem:[#allocation2 + $0xea8] ss:$16 sps:$4 sm:$0xff]   ;;  %v11106_v47 = vld [vmem:[#allocation2 + $0xec4] ss:$16 sps:$4 sm:$0xff]  }
 0x1d1   :  { %7396 = vmatprep.subr.bf16.mxu0 %v11014_v48  ;;  %8134 = vmatprep.subr.bf16.mxu1 %v11017_v49  ;;  %v11109_v48 = vld [vmem:[#allocation2 + $0xecc] ss:$16 sps:$4 sm:$0xff]   ;;  %v11104_v49 = vld [vmem:[#allocation2 + $0xec0] ss:$16 sps:$4 sm:$0xff]  }
 0x1d4   :  { %7397 = vmatpush1.bf16.msra.mxu0 %v11012_v50  ;;  %8135 = vmatpush1.bf16.msra.mxu1 %v11015_v51  ;;  %v11107_v50 = vld [vmem:[#allocation2 + $0xec8] ss:$16 sps:$4 sm:$0xff]   ;;  %v11112_v51 = vld [vmem:[#allocation2 + $0xee4] ss:$16 sps:$4 sm:$0xff]  }
 0x1d5   :  { %7398 = vmatprep.subr.bf16.mxu0 %v11020_v52  ;;  %8136 = vmatprep.subr.bf16.mxu1 %v11023_v53  ;;  %v11115_v52 = vld [vmem:[#allocation2 + $0xeec] ss:$16 sps:$4 sm:$0xff]   ;;  %v11110_v53 = vld [vmem:[#allocation2 + $0xee0] ss:$16 sps:$4 sm:$0xff]  }
 0x1d8   :  { %7399 = vmatpush1.bf16.msra.mxu0 %v11018_v54  ;;  %8137 = vmatpush1.bf16.msra.mxu1 %v11021_v55  ;;  %v11113_v54 = vld [vmem:[#allocation2 + $0xee8] ss:$16 sps:$4 sm:$0xff]   ;;  %v11118_v55 = vld [vmem:[#allocation2 + $0xf04] ss:$16 sps:$4 sm:$0xff]  }
 0x1d9   :  { %7400 = vmatprep.subr.bf16.mxu0 %v11026_v56  ;;  %8138 = vmatprep.subr.bf16.mxu1 %v11029_v57  ;;  %v11121_v56 = vld [vmem:[#allocation2 + $0xf0c] ss:$16 sps:$4 sm:$0xff]   ;;  %v11116_v57 = vld [vmem:[#allocation2 + $0xf00] ss:$16 sps:$4 sm:$0xff]  }
 0x1dc   :  { %7401 = vmatpush1.bf16.msra.mxu0 %v11024_v58  ;;  %8139 = vmatpush1.bf16.msra.mxu1 %v11027_v59  ;;  %v11119_v58 = vld [vmem:[#allocation2 + $0xf08] ss:$16 sps:$4 sm:$0xff]   ;;  %v11124_v59 = vld [vmem:[#allocation2 + $0xf24] ss:$16 sps:$4 sm:$0xff]  }
 0x1dd   :  { %7402 = vmatprep.subr.bf16.mxu0 %v11032_v60  ;;  %8140 = vmatprep.subr.bf16.mxu1 %v11035_v61  ;;  %v11127_v60 = vld [vmem:[#allocation2 + $0xf2c] ss:$16 sps:$4 sm:$0xff]   ;;  %v11122_v61 = vld [vmem:[#allocation2 + $0xf20] ss:$16 sps:$4 sm:$0xff]  }
 0x1e0   :  { %7403 = vmatpush1.bf16.msra.mxu0 %v11030_v62  ;;  %8141 = vmatpush1.bf16.msra.mxu1 %v11033_v63  ;;  %v11125_v62 = vld [vmem:[#allocation2 + $0xf28] ss:$16 sps:$4 sm:$0xff]   ;;  %v11130_v63 = vld [vmem:[#allocation2 + $0xf44] ss:$16 sps:$4 sm:$0xff]  }
 0x1e1   :  { %7404 = vmatprep.subr.bf16.mxu0 %v11038_v0  ;;  %8142 = vmatprep.subr.bf16.mxu1 %v11041_v1  ;;  %v11133_v0 = vld [vmem:[#allocation2 + $0xf4c] ss:$16 sps:$4 sm:$0xff]   ;;  %v11128_v1 = vld [vmem:[#allocation2 + $0xf40] ss:$16 sps:$4 sm:$0xff]  }
 0x1e4   :  { %7405 = vmatpush1.bf16.msra.mxu0 %v11036_v2  ;;  %8143 = vmatpush1.bf16.msra.mxu1 %v11039_v3  ;;  %v11131_v2 = vld [vmem:[#allocation2 + $0xf48] ss:$16 sps:$4 sm:$0xff]   ;;  %v11136_v3 = vld [vmem:[#allocation2 + $0xf64] ss:$16 sps:$4 sm:$0xff]  }
 0x1e5   :  { %7406 = vmatprep.subr.bf16.mxu0 %v11044_v4  ;;  %8144 = vmatprep.subr.bf16.mxu1 %v11047_v5  ;;  %v11139_v4 = vld [vmem:[#allocation2 + $0xf6c] ss:$16 sps:$4 sm:$0xff]   ;;  %v11134_v5 = vld [vmem:[#allocation2 + $0xf60] ss:$16 sps:$4 sm:$0xff]  }
 0x1e8   :  { %7407 = vmatpush1.bf16.msra.mxu0 %v11042_v6  ;;  %8145 = vmatpush1.bf16.msra.mxu1 %v11045_v7  ;;  %v11137_v6 = vld [vmem:[#allocation2 + $0xf68] ss:$16 sps:$4 sm:$0xff]   ;;  %v11142_v7 = vld [vmem:[#allocation2 + $0xf84] ss:$16 sps:$4 sm:$0xff]  }
 0x1e9   :  { %7408 = vmatprep.subr.bf16.mxu0 %v11050_v8  ;;  %8146 = vmatprep.subr.bf16.mxu1 %v11053_v9  ;;  %v11145_v8 = vld [vmem:[#allocation2 + $0xf8c] ss:$16 sps:$4 sm:$0xff]   ;;  %v11140_v9 = vld [vmem:[#allocation2 + $0xf80] ss:$16 sps:$4 sm:$0xff]  }
 0x1ec   :  { %7409 = vmatpush1.bf16.msra.mxu0 %v11048_v10  ;;  %8147 = vmatpush1.bf16.msra.mxu1 %v11051_v12  ;;  %v11143_v10 = vld [vmem:[#allocation2 + $0xf88] ss:$16 sps:$4 sm:$0xff]   ;;  %v11148_v12 = vld [vmem:[#allocation2 + $0xfa4] ss:$16 sps:$4 sm:$0xff]  }
 0x1ed   :  { %7410 = vmatprep.subr.bf16.mxu0 %v11056_v13  ;;  %8148 = vmatprep.subr.bf16.mxu1 %v11059_v15  ;;  %v11151_v13 = vld [vmem:[#allocation2 + $0xfac] ss:$16 sps:$4 sm:$0xff]   ;;  %v11146_v15 = vld [vmem:[#allocation2 + $0xfa0] ss:$16 sps:$4 sm:$0xff]  }
 0x1f0   :  { %7411 = vmatpush1.bf16.msra.mxu0 %v11054_v16  ;;  %8149 = vmatpush1.bf16.msra.mxu1 %v11057_v18  ;;  %v11149_v16 = vld [vmem:[#allocation2 + $0xfa8] ss:$16 sps:$4 sm:$0xff]   ;;  %v11154_v18 = vld [vmem:[#allocation2 + $0xfc4] ss:$16 sps:$4 sm:$0xff]  }
 0x1f1   :  { %7412 = vmatprep.subr.bf16.mxu0 %v11062_v11  ;;  %8150 = vmatprep.subr.bf16.mxu1 %v11065_v20  ;;  %v11157_v11 = vld [vmem:[#allocation2 + $0xfcc] ss:$16 sps:$4 sm:$0xff]   ;;  %v11152_v20 = vld [vmem:[#allocation2 + $0xfc0] ss:$16 sps:$4 sm:$0xff]  }
 0x1f4   :  { %7413 = vmatpush1.bf16.msra.mxu0 %v11060_v14  ;;  %8151 = vmatpush1.bf16.msra.mxu1 %v11063_v22  ;;  %v11155_v14 = vld [vmem:[#allocation2 + $0xfc8] ss:$16 sps:$4 sm:$0xff]   ;;  %v11160_v22 = vld [vmem:[#allocation2 + $0xfe4] ss:$16 sps:$4 sm:$0xff]  }
 0x1f5   :  { %7423 = vmatprep.subr.bf16.mxu0 %v11070_v23  ;;  %8161 = vmatprep.subr.bf16.mxu1 %v11073_v24  ;;  %v11163_v23 = vld [vmem:[#allocation2 + $0xfec] ss:$16 sps:$4 sm:$0xff]   ;;  %v11158_v24 = vld [vmem:[#allocation2 + $0xfe0] ss:$16 sps:$4 sm:$0xff]  }
 0x1f7   :  { %7415 = vmatmul.mubr.bf16.vlgmr.msra.gmra.mrb[0].mxu0 %v8984_v17  ;;  %8153 = vmatmul.mubr.bf16.vlgmr.msra.gmra.mrb[0].mxu1 %v8984_v17  ;;  %v11161_v17 = vld [vmem:[#allocation2 + $0xfe8] ss:$16 sps:$4 sm:$0xff]  }
 0x1f8   :  { %7424 = vmatpush1.bf16.msra.mxu0 %v11068_v26  ;;  %8162 = vmatpush1.bf16.msra.mxu1 %v11071_v27  ;;  %v11168_v26 = vld [vmem:[#allocation2 + $0x1004] ss:$16 sps:$4 sm:$0xff]   ;;  %v11171_v27 = vld [vmem:[#allocation2 + $0x100c] ss:$16 sps:$4 sm:$0xff]  }
 0x1f9   :  { %7425 = vmatprep.subr.bf16.mxu0 %v11076_v28  ;;  %8163 = vmatprep.subr.bf16.mxu1 %v11079_v19  ;;  %v12393_v28 = vld [vmem:[%s12581_s0 + $0x40] sm:$0xff]  ;;  %v8986_v19 = vcombine.low %v12384_v25, %v12384_v25 }
 0x1fa   :  { %7455 = vmatprep.mubr.bf16.mxu0 %v8987_v29  ;;  %8193 = vmatprep.mubr.bf16.mxu1 %v8987_v29  ;;  %v11166_v29 = vld [vmem:[#allocation2 + $0x1000] ss:$16 sps:$4 sm:$0xff]   ;;  %v11180_v25 = vld [vmem:[#allocation2 + $0x1044] ss:$16 sps:$4 sm:$0xff]  }
 0x1fc   :  { %7426 = vmatpush1.bf16.msra.mxu0 %v11074_v30  ;;  %8164 = vmatpush1.bf16.msra.mxu1 %v11077_v31  ;;  %v11169_v30 = vld [vmem:[#allocation2 + $0x1008] ss:$16 sps:$4 sm:$0xff]   ;;  %v11174_v31 = vld [vmem:[#allocation2 + $0x1024] ss:$16 sps:$4 sm:$0xff]  }
 0x1fd   :  { %7427 = vmatprep.subr.bf16.mxu0 %v11082_v21  ;;  %8165 = vmatprep.subr.bf16.mxu1 %v11085_v32  ;;  %v11177_v21 = vld [vmem:[#allocation2 + $0x102c] ss:$16 sps:$4 sm:$0xff]   ;;  %v8989_v32 = vcombine.high %v12393_v28, %v12393_v28 }
 0x200   :  { %7428 = vmatpush1.bf16.msra.mxu0 %v11080_v33  ;;  %8166 = vmatpush1.bf16.msra.mxu1 %v11083_v34  ;;  %v11172_v33 = vld [vmem:[#allocation2 + $0x1020] ss:$16 sps:$4 sm:$0xff]   ;;  %v11175_v34 = vld [vmem:[#allocation2 + $0x1028] ss:$16 sps:$4 sm:$0xff]  }
 0x201   :  { %7429 = vmatprep.subr.bf16.mxu0 %v11088_v35  ;;  %8167 = vmatprep.subr.bf16.mxu1 %v11091_v36  ;;  %v11183_v35 = vld [vmem:[#allocation2 + $0x104c] ss:$16 sps:$4 sm:$0xff]   ;;  %v11178_v36 = vld [vmem:[#allocation2 + $0x1040] ss:$16 sps:$4 sm:$0xff]  }
 0x204   :  { %7430 = vmatpush1.bf16.msra.mxu0 %v11086_v37  ;;  %8168 = vmatpush1.bf16.msra.mxu1 %v11089_v38  ;;  %v11181_v37 = vld [vmem:[#allocation2 + $0x1048] ss:$16 sps:$4 sm:$0xff]   ;;  %v11186_v38 = vld [vmem:[#allocation2 + $0x1064] ss:$16 sps:$4 sm:$0xff]  }
 0x205   :  { %7431 = vmatprep.subr.bf16.mxu0 %v11094_v39  ;;  %8169 = vmatprep.subr.bf16.mxu1 %v11097_v40  ;;  %v11189_v39 = vld [vmem:[#allocation2 + $0x106c] ss:$16 sps:$4 sm:$0xff]   ;;  %v11184_v40 = vld [vmem:[#allocation2 + $0x1060] ss:$16 sps:$4 sm:$0xff]  }
 0x208   :  { %7432 = vmatpush1.bf16.msra.mxu0 %v11092_v41  ;;  %8170 = vmatpush1.bf16.msra.mxu1 %v11095_v42  ;;  %v11187_v41 = vld [vmem:[#allocation2 + $0x1068] ss:$16 sps:$4 sm:$0xff]   ;;  %v11192_v42 = vld [vmem:[#allocation2 + $0x1084] ss:$16 sps:$4 sm:$0xff]  }
 0x209   :  { %7433 = vmatprep.subr.bf16.mxu0 %v11100_v43  ;;  %8171 = vmatprep.subr.bf16.mxu1 %v11103_v44  ;;  %v11195_v43 = vld [vmem:[#allocation2 + $0x108c] ss:$16 sps:$4 sm:$0xff]   ;;  %v11190_v44 = vld [vmem:[#allocation2 + $0x1080] ss:$16 sps:$4 sm:$0xff]  }
 0x20c   :  { %7434 = vmatpush1.bf16.msra.mxu0 %v11098_v45  ;;  %8172 = vmatpush1.bf16.msra.mxu1 %v11101_v46  ;;  %v11193_v45 = vld [vmem:[#allocation2 + $0x1088] ss:$16 sps:$4 sm:$0xff]   ;;  %v11198_v46 = vld [vmem:[#allocation2 + $0x10a4] ss:$16 sps:$4 sm:$0xff]  }
 0x20d   :  { %7435 = vmatprep.subr.bf16.mxu0 %v11106_v47  ;;  %8173 = vmatprep.subr.bf16.mxu1 %v11109_v48  ;;  %v11201_v47 = vld [vmem:[#allocation2 + $0x10ac] ss:$16 sps:$4 sm:$0xff]   ;;  %v11196_v48 = vld [vmem:[#allocation2 + $0x10a0] ss:$16 sps:$4 sm:$0xff]  }
 0x210   :  { %7436 = vmatpush1.bf16.msra.mxu0 %v11104_v49  ;;  %8174 = vmatpush1.bf16.msra.mxu1 %v11107_v50  ;;  %v11199_v49 = vld [vmem:[#allocation2 + $0x10a8] ss:$16 sps:$4 sm:$0xff]   ;;  %v11204_v50 = vld [vmem:[#allocation2 + $0x10c4] ss:$16 sps:$4 sm:$0xff]  }
 0x211   :  { %7437 = vmatprep.subr.bf16.mxu0 %v11112_v51  ;;  %8175 = vmatprep.subr.bf16.mxu1 %v11115_v52  ;;  %v11207_v51 = vld [vmem:[#allocation2 + $0x10cc] ss:$16 sps:$4 sm:$0xff]   ;;  %v11202_v52 = vld [vmem:[#allocation2 + $0x10c0] ss:$16 sps:$4 sm:$0xff]  }
 0x214   :  { %7438 = vmatpush1.bf16.msra.mxu0 %v11110_v53  ;;  %8176 = vmatpush1.bf16.msra.mxu1 %v11113_v54  ;;  %v11205_v53 = vld [vmem:[#allocation2 + $0x10c8] ss:$16 sps:$4 sm:$0xff]   ;;  %v11210_v54 = vld [vmem:[#allocation2 + $0x10e4] ss:$16 sps:$4 sm:$0xff]  }
 0x215   :  { %7439 = vmatprep.subr.bf16.mxu0 %v11118_v55  ;;  %8177 = vmatprep.subr.bf16.mxu1 %v11121_v56  ;;  %v11213_v55 = vld [vmem:[#allocation2 + $0x10ec] ss:$16 sps:$4 sm:$0xff]   ;;  %v11208_v56 = vld [vmem:[#allocation2 + $0x10e0] ss:$16 sps:$4 sm:$0xff]  }
 0x218   :  { %7440 = vmatpush1.bf16.msra.mxu0 %v11116_v57  ;;  %8178 = vmatpush1.bf16.msra.mxu1 %v11119_v58  ;;  %v11211_v57 = vld [vmem:[#allocation2 + $0x10e8] ss:$16 sps:$4 sm:$0xff]   ;;  %v11216_v58 = vld [vmem:[#allocation2 + $0x1104] ss:$16 sps:$4 sm:$0xff]  }
 0x219   :  { %7441 = vmatprep.subr.bf16.mxu0 %v11124_v59  ;;  %8179 = vmatprep.subr.bf16.mxu1 %v11127_v60  ;;  %v11219_v59 = vld [vmem:[#allocation2 + $0x110c] ss:$16 sps:$4 sm:$0xff]   ;;  %v11214_v60 = vld [vmem:[#allocation2 + $0x1100] ss:$16 sps:$4 sm:$0xff]  }
 0x21c   :  { %7442 = vmatpush1.bf16.msra.mxu0 %v11122_v61  ;;  %8180 = vmatpush1.bf16.msra.mxu1 %v11125_v62  ;;  %v11217_v61 = vld [vmem:[#allocation2 + $0x1108] ss:$16 sps:$4 sm:$0xff]   ;;  %v11222_v62 = vld [vmem:[#allocation2 + $0x1124] ss:$16 sps:$4 sm:$0xff]  }
 0x21d   :  { %7443 = vmatprep.subr.bf16.mxu0 %v11130_v63  ;;  %8181 = vmatprep.subr.bf16.mxu1 %v11133_v0  ;;  %v11225_v63 = vld [vmem:[#allocation2 + $0x112c] ss:$16 sps:$4 sm:$0xff]   ;;  %v11220_v0 = vld [vmem:[#allocation2 + $0x1120] ss:$16 sps:$4 sm:$0xff]  }
 0x220   :  { %7444 = vmatpush1.bf16.msra.mxu0 %v11128_v1  ;;  %8182 = vmatpush1.bf16.msra.mxu1 %v11131_v2  ;;  %v11223_v1 = vld [vmem:[#allocation2 + $0x1128] ss:$16 sps:$4 sm:$0xff]   ;;  %v11228_v2 = vld [vmem:[#allocation2 + $0x1144] ss:$16 sps:$4 sm:$0xff]  }
 0x221   :  { %7445 = vmatprep.subr.bf16.mxu0 %v11136_v3  ;;  %8183 = vmatprep.subr.bf16.mxu1 %v11139_v4  ;;  %v11231_v3 = vld [vmem:[#allocation2 + $0x114c] ss:$16 sps:$4 sm:$0xff]   ;;  %v11226_v4 = vld [vmem:[#allocation2 + $0x1140] ss:$16 sps:$4 sm:$0xff]  }
 0x224   :  { %7446 = vmatpush1.bf16.msra.mxu0 %v11134_v5  ;;  %8184 = vmatpush1.bf16.msra.mxu1 %v11137_v6  ;;  %v11229_v5 = vld [vmem:[#allocation2 + $0x1148] ss:$16 sps:$4 sm:$0xff]   ;;  %v11234_v6 = vld [vmem:[#allocation2 + $0x1164] ss:$16 sps:$4 sm:$0xff]  }
 0x225   :  { %7447 = vmatprep.subr.bf16.mxu0 %v11142_v7  ;;  %8185 = vmatprep.subr.bf16.mxu1 %v11145_v8  ;;  %v11237_v7 = vld [vmem:[#allocation2 + $0x116c] ss:$16 sps:$4 sm:$0xff]   ;;  %v11232_v8 = vld [vmem:[#allocation2 + $0x1160] ss:$16 sps:$4 sm:$0xff]  }
 0x228   :  { %7448 = vmatpush1.bf16.msra.mxu0 %v11140_v9  ;;  %8186 = vmatpush1.bf16.msra.mxu1 %v11143_v10  ;;  %v11235_v9 = vld [vmem:[#allocation2 + $0x1168] ss:$16 sps:$4 sm:$0xff]   ;;  %v11240_v10 = vld [vmem:[#allocation2 + $0x1184] ss:$16 sps:$4 sm:$0xff]  }
 0x229   :  { %7449 = vmatprep.subr.bf16.mxu0 %v11148_v12  ;;  %8187 = vmatprep.subr.bf16.mxu1 %v11151_v13  ;;  %v11243_v12 = vld [vmem:[#allocation2 + $0x118c] ss:$16 sps:$4 sm:$0xff]   ;;  %v11238_v13 = vld [vmem:[#allocation2 + $0x1180] ss:$16 sps:$4 sm:$0xff]  }
 0x22c   :  { %7450 = vmatpush1.bf16.msra.mxu0 %v11146_v15  ;;  %8188 = vmatpush1.bf16.msra.mxu1 %v11149_v16  ;;  %v11241_v15 = vld [vmem:[#allocation2 + $0x1188] ss:$16 sps:$4 sm:$0xff]   ;;  %v11246_v16 = vld [vmem:[#allocation2 + $0x11a4] ss:$16 sps:$4 sm:$0xff]  }
 0x22d   :  { %7451 = vmatprep.subr.bf16.mxu0 %v11154_v18  ;;  %8189 = vmatprep.subr.bf16.mxu1 %v11157_v11  ;;  %v11249_v18 = vld [vmem:[#allocation2 + $0x11ac] ss:$16 sps:$4 sm:$0xff]   ;;  %v11244_v11 = vld [vmem:[#allocation2 + $0x11a0] ss:$16 sps:$4 sm:$0xff]  }
 0x230   :  { %7452 = vmatpush1.bf16.msra.mxu0 %v11152_v20  ;;  %8190 = vmatpush1.bf16.msra.mxu1 %v11155_v14  ;;  %v11247_v20 = vld [vmem:[#allocation2 + $0x11a8] ss:$16 sps:$4 sm:$0xff]   ;;  %v11252_v14 = vld [vmem:[#allocation2 + $0x11c4] ss:$16 sps:$4 sm:$0xff]  }
 0x231   :  { %7453 = vmatprep.subr.bf16.mxu0 %v11160_v22  ;;  %8191 = vmatprep.subr.bf16.mxu1 %v11163_v23  ;;  %v11255_v22 = vld [vmem:[#allocation2 + $0x11cc] ss:$16 sps:$4 sm:$0xff]   ;;  %v11250_v23 = vld [vmem:[#allocation2 + $0x11c0] ss:$16 sps:$4 sm:$0xff]  }
 0x234   :  { %7454 = vmatpush1.bf16.msra.mxu0 %v11158_v24  ;;  %8192 = vmatpush1.bf16.msra.mxu1 %v11161_v17  ;;  %v11253_v24 = vld [vmem:[#allocation2 + $0x11c8] ss:$16 sps:$4 sm:$0xff]   ;;  %v11258_v17 = vld [vmem:[#allocation2 + $0x11e4] ss:$16 sps:$4 sm:$0xff]  }
 0x235   :  { %7464 = vmatprep.subr.bf16.mxu0 %v11168_v26  ;;  %8202 = vmatprep.subr.bf16.mxu1 %v11171_v27  ;;  %v11261_v26 = vld [vmem:[#allocation2 + $0x11ec] ss:$16 sps:$4 sm:$0xff]   ;;  %v11256_v27 = vld [vmem:[#allocation2 + $0x11e0] ss:$16 sps:$4 sm:$0xff]  }
 0x237   :  { %7456 = vmatmul.mubr.bf16.vlgmr.msra.gmra.mrb[0].mxu0 %v8986_v19  ;;  %8194 = vmatmul.mubr.bf16.vlgmr.msra.gmra.mrb[0].mxu1 %v8986_v19  ;;  %v11259_v19 = vld [vmem:[#allocation2 + $0x11e8] ss:$16 sps:$4 sm:$0xff]  }
 0x238   :  { %7465 = vmatpush1.bf16.msra.mxu0 %v11166_v29  ;;  %8203 = vmatpush1.bf16.msra.mxu1 %v11169_v30  ;;  %v11266_v29 = vld [vmem:[#allocation2 + $0x1204] ss:$16 sps:$4 sm:$0xff]   ;;  %v11269_v30 = vld [vmem:[#allocation2 + $0x120c] ss:$16 sps:$4 sm:$0xff]  }
 0x239   :  { %7466 = vmatprep.subr.bf16.mxu0 %v11174_v31  ;;  %8204 = vmatprep.subr.bf16.mxu1 %v11177_v21  ;;  %v12402_v31 = vld [vmem:[%s12581_s0 + $0x48] sm:$0xff]  ;;  %v8988_v21 = vcombine.low %v12393_v28, %v12393_v28  ;;  %v11278_v28 = vld [vmem:[#allocation2 + $0x1244] ss:$16 sps:$4 sm:$0xff]  }
 0x23a   :  { %7496 = vmatprep.mubr.bf16.mxu0 %v8989_v32  ;;  %8234 = vmatprep.mubr.bf16.mxu1 %v8989_v32  ;;  %v11264_v32 = vld [vmem:[#allocation2 + $0x1200] ss:$16 sps:$4 sm:$0xff]  }
 0x23c   :  { %7467 = vmatpush1.bf16.msra.mxu0 %v11172_v33  ;;  %8205 = vmatpush1.bf16.msra.mxu1 %v11175_v34  ;;  %v11267_v33 = vld [vmem:[#allocation2 + $0x1208] ss:$16 sps:$4 sm:$0xff]   ;;  %v11272_v34 = vld [vmem:[#allocation2 + $0x1224] ss:$16 sps:$4 sm:$0xff]  }
 0x23d   :  { %7468 = vmatprep.subr.bf16.mxu0 %v11180_v25  ;;  %8206 = vmatprep.subr.bf16.mxu1 %v11183_v35  ;;  %v11275_v25 = vld [vmem:[#allocation2 + $0x122c] ss:$16 sps:$4 sm:$0xff]   ;;  %v8991_v35 = vcombine.high %v12402_v31, %v12402_v31 }
 0x240   :  { %7469 = vmatpush1.bf16.msra.mxu0 %v11178_v36  ;;  %8207 = vmatpush1.bf16.msra.mxu1 %v11181_v37  ;;  %v11270_v36 = vld [vmem:[#allocation2 + $0x1220] ss:$16 sps:$4 sm:$0xff]   ;;  %v11273_v37 = vld [vmem:[#allocation2 + $0x1228] ss:$16 sps:$4 sm:$0xff]  }
 0x241   :  { %7470 = vmatprep.subr.bf16.mxu0 %v11186_v38  ;;  %8208 = vmatprep.subr.bf16.mxu1 %v11189_v39  ;;  %v11281_v38 = vld [vmem:[#allocation2 + $0x124c] ss:$16 sps:$4 sm:$0xff]   ;;  %v11276_v39 = vld [vmem:[#allocation2 + $0x1240] ss:$16 sps:$4 sm:$0xff]  }
 0x244   :  { %7471 = vmatpush1.bf16.msra.mxu0 %v11184_v40  ;;  %8209 = vmatpush1.bf16.msra.mxu1 %v11187_v41  ;;  %v11279_v40 = vld [vmem:[#allocation2 + $0x1248] ss:$16 sps:$4 sm:$0xff]   ;;  %v11284_v41 = vld [vmem:[#allocation2 + $0x1264] ss:$16 sps:$4 sm:$0xff]  }
 0x245   :  { %7472 = vmatprep.subr.bf16.mxu0 %v11192_v42  ;;  %8210 = vmatprep.subr.bf16.mxu1 %v11195_v43  ;;  %v11287_v42 = vld [vmem:[#allocation2 + $0x126c] ss:$16 sps:$4 sm:$0xff]   ;;  %v11282_v43 = vld [vmem:[#allocation2 + $0x1260] ss:$16 sps:$4 sm:$0xff]  }
 0x248   :  { %7473 = vmatpush1.bf16.msra.mxu0 %v11190_v44  ;;  %8211 = vmatpush1.bf16.msra.mxu1 %v11193_v45  ;;  %v11285_v44 = vld [vmem:[#allocation2 + $0x1268] ss:$16 sps:$4 sm:$0xff]   ;;  %v11290_v45 = vld [vmem:[#allocation2 + $0x1284] ss:$16 sps:$4 sm:$0xff]  }
 0x249   :  { %7474 = vmatprep.subr.bf16.mxu0 %v11198_v46  ;;  %8212 = vmatprep.subr.bf16.mxu1 %v11201_v47  ;;  %v11293_v46 = vld [vmem:[#allocation2 + $0x128c] ss:$16 sps:$4 sm:$0xff]   ;;  %v11288_v47 = vld [vmem:[#allocation2 + $0x1280] ss:$16 sps:$4 sm:$0xff]  }
 0x24c   :  { %7475 = vmatpush1.bf16.msra.mxu0 %v11196_v48  ;;  %8213 = vmatpush1.bf16.msra.mxu1 %v11199_v49  ;;  %v11291_v48 = vld [vmem:[#allocation2 + $0x1288] ss:$16 sps:$4 sm:$0xff]   ;;  %v11296_v49 = vld [vmem:[#allocation2 + $0x12a4] ss:$16 sps:$4 sm:$0xff]  }
 0x24d   :  { %7476 = vmatprep.subr.bf16.mxu0 %v11204_v50  ;;  %8214 = vmatprep.subr.bf16.mxu1 %v11207_v51  ;;  %v11299_v50 = vld [vmem:[#allocation2 + $0x12ac] ss:$16 sps:$4 sm:$0xff]   ;;  %v11294_v51 = vld [vmem:[#allocation2 + $0x12a0] ss:$16 sps:$4 sm:$0xff]  }
 0x250   :  { %7477 = vmatpush1.bf16.msra.mxu0 %v11202_v52  ;;  %8215 = vmatpush1.bf16.msra.mxu1 %v11205_v53  ;;  %v11297_v52 = vld [vmem:[#allocation2 + $0x12a8] ss:$16 sps:$4 sm:$0xff]   ;;  %v11302_v53 = vld [vmem:[#allocation2 + $0x12c4] ss:$16 sps:$4 sm:$0xff]  }
 0x251   :  { %7478 = vmatprep.subr.bf16.mxu0 %v11210_v54  ;;  %8216 = vmatprep.subr.bf16.mxu1 %v11213_v55  ;;  %v11305_v54 = vld [vmem:[#allocation2 + $0x12cc] ss:$16 sps:$4 sm:$0xff]   ;;  %v11300_v55 = vld [vmem:[#allocation2 + $0x12c0] ss:$16 sps:$4 sm:$0xff]  }
 0x254   :  { %7479 = vmatpush1.bf16.msra.mxu0 %v11208_v56  ;;  %8217 = vmatpush1.bf16.msra.mxu1 %v11211_v57  ;;  %v11303_v56 = vld [vmem:[#allocation2 + $0x12c8] ss:$16 sps:$4 sm:$0xff]   ;;  %v11308_v57 = vld [vmem:[#allocation2 + $0x12e4] ss:$16 sps:$4 sm:$0xff]  }
 0x255   :  { %7480 = vmatprep.subr.bf16.mxu0 %v11216_v58  ;;  %8218 = vmatprep.subr.bf16.mxu1 %v11219_v59  ;;  %v11311_v58 = vld [vmem:[#allocation2 + $0x12ec] ss:$16 sps:$4 sm:$0xff]   ;;  %v11306_v59 = vld [vmem:[#allocation2 + $0x12e0] ss:$16 sps:$4 sm:$0xff]  }
 0x258   :  { %7481 = vmatpush1.bf16.msra.mxu0 %v11214_v60  ;;  %8219 = vmatpush1.bf16.msra.mxu1 %v11217_v61  ;;  %v11309_v60 = vld [vmem:[#allocation2 + $0x12e8] ss:$16 sps:$4 sm:$0xff]   ;;  %v11314_v61 = vld [vmem:[#allocation2 + $0x1304] ss:$16 sps:$4 sm:$0xff]  }
 0x259   :  { %7482 = vmatprep.subr.bf16.mxu0 %v11222_v62  ;;  %8220 = vmatprep.subr.bf16.mxu1 %v11225_v63  ;;  %v11317_v62 = vld [vmem:[#allocation2 + $0x130c] ss:$16 sps:$4 sm:$0xff]   ;;  %v11312_v63 = vld [vmem:[#allocation2 + $0x1300] ss:$16 sps:$4 sm:$0xff]  }
 0x25c   :  { %7483 = vmatpush1.bf16.msra.mxu0 %v11220_v0  ;;  %8221 = vmatpush1.bf16.msra.mxu1 %v11223_v1  ;;  %v11315_v0 = vld [vmem:[#allocation2 + $0x1308] ss:$16 sps:$4 sm:$0xff]   ;;  %v11320_v1 = vld [vmem:[#allocation2 + $0x1324] ss:$16 sps:$4 sm:$0xff]  }
 0x25d   :  { %7484 = vmatprep.subr.bf16.mxu0 %v11228_v2  ;;  %8222 = vmatprep.subr.bf16.mxu1 %v11231_v3  ;;  %v11323_v2 = vld [vmem:[#allocation2 + $0x132c] ss:$16 sps:$4 sm:$0xff]   ;;  %v11318_v3 = vld [vmem:[#allocation2 + $0x1320] ss:$16 sps:$4 sm:$0xff]  }
 0x260   :  { %7485 = vmatpush1.bf16.msra.mxu0 %v11226_v4  ;;  %8223 = vmatpush1.bf16.msra.mxu1 %v11229_v5  ;;  %v11321_v4 = vld [vmem:[#allocation2 + $0x1328] ss:$16 sps:$4 sm:$0xff]   ;;  %v11326_v5 = vld [vmem:[#allocation2 + $0x1344] ss:$16 sps:$4 sm:$0xff]  }
 0x261   :  { %7486 = vmatprep.subr.bf16.mxu0 %v11234_v6  ;;  %8224 = vmatprep.subr.bf16.mxu1 %v11237_v7  ;;  %v11329_v6 = vld [vmem:[#allocation2 + $0x134c] ss:$16 sps:$4 sm:$0xff]   ;;  %v11324_v7 = vld [vmem:[#allocation2 + $0x1340] ss:$16 sps:$4 sm:$0xff]  }
 0x264   :  { %7487 = vmatpush1.bf16.msra.mxu0 %v11232_v8  ;;  %8225 = vmatpush1.bf16.msra.mxu1 %v11235_v9  ;;  %v11327_v8 = vld [vmem:[#allocation2 + $0x1348] ss:$16 sps:$4 sm:$0xff]   ;;  %v11332_v9 = vld [vmem:[#allocation2 + $0x1364] ss:$16 sps:$4 sm:$0xff]  }
 0x265   :  { %7488 = vmatprep.subr.bf16.mxu0 %v11240_v10  ;;  %8226 = vmatprep.subr.bf16.mxu1 %v11243_v12  ;;  %v11335_v10 = vld [vmem:[#allocation2 + $0x136c] ss:$16 sps:$4 sm:$0xff]   ;;  %v11330_v12 = vld [vmem:[#allocation2 + $0x1360] ss:$16 sps:$4 sm:$0xff]  }
 0x268   :  { %7489 = vmatpush1.bf16.msra.mxu0 %v11238_v13  ;;  %8227 = vmatpush1.bf16.msra.mxu1 %v11241_v15  ;;  %v11333_v13 = vld [vmem:[#allocation2 + $0x1368] ss:$16 sps:$4 sm:$0xff]   ;;  %v11338_v15 = vld [vmem:[#allocation2 + $0x1384] ss:$16 sps:$4 sm:$0xff]  }
 0x269   :  { %7490 = vmatprep.subr.bf16.mxu0 %v11246_v16  ;;  %8228 = vmatprep.subr.bf16.mxu1 %v11249_v18  ;;  %v11341_v16 = vld [vmem:[#allocation2 + $0x138c] ss:$16 sps:$4 sm:$0xff]   ;;  %v11336_v18 = vld [vmem:[#allocation2 + $0x1380] ss:$16 sps:$4 sm:$0xff]  }
 0x26c   :  { %7491 = vmatpush1.bf16.msra.mxu0 %v11244_v11  ;;  %8229 = vmatpush1.bf16.msra.mxu1 %v11247_v20  ;;  %v11339_v11 = vld [vmem:[#allocation2 + $0x1388] ss:$16 sps:$4 sm:$0xff]   ;;  %v11344_v20 = vld [vmem:[#allocation2 + $0x13a4] ss:$16 sps:$4 sm:$0xff]  }
 0x26d   :  { %7492 = vmatprep.subr.bf16.mxu0 %v11252_v14  ;;  %8230 = vmatprep.subr.bf16.mxu1 %v11255_v22  ;;  %v11347_v14 = vld [vmem:[#allocation2 + $0x13ac] ss:$16 sps:$4 sm:$0xff]   ;;  %v11342_v22 = vld [vmem:[#allocation2 + $0x13a0] ss:$16 sps:$4 sm:$0xff]  }
 0x270   :  { %7493 = vmatpush1.bf16.msra.mxu0 %v11250_v23  ;;  %8231 = vmatpush1.bf16.msra.mxu1 %v11253_v24  ;;  %v11345_v23 = vld [vmem:[#allocation2 + $0x13a8] ss:$16 sps:$4 sm:$0xff]   ;;  %v11350_v24 = vld [vmem:[#allocation2 + $0x13c4] ss:$16 sps:$4 sm:$0xff]  }
 0x271   :  { %7494 = vmatprep.subr.bf16.mxu0 %v11258_v17  ;;  %8232 = vmatprep.subr.bf16.mxu1 %v11261_v26  ;;  %v11353_v17 = vld [vmem:[#allocation2 + $0x13cc] ss:$16 sps:$4 sm:$0xff]   ;;  %v11348_v26 = vld [vmem:[#allocation2 + $0x13c0] ss:$16 sps:$4 sm:$0xff]  }
 0x274   :  { %7495 = vmatpush1.bf16.msra.mxu0 %v11256_v27  ;;  %8233 = vmatpush1.bf16.msra.mxu1 %v11259_v19  ;;  %v11351_v27 = vld [vmem:[#allocation2 + $0x13c8] ss:$16 sps:$4 sm:$0xff]   ;;  %v11356_v19 = vld [vmem:[#allocation2 + $0x13e4] ss:$16 sps:$4 sm:$0xff]  }
 0x275   :  { %7505 = vmatprep.subr.bf16.mxu0 %v11266_v29  ;;  %8243 = vmatprep.subr.bf16.mxu1 %v11269_v30  ;;  %v11359_v29 = vld [vmem:[#allocation2 + $0x13ec] ss:$16 sps:$4 sm:$0xff]   ;;  %v11354_v30 = vld [vmem:[#allocation2 + $0x13e0] ss:$16 sps:$4 sm:$0xff]  }
 0x277   :  { %7497 = vmatmul.mubr.bf16.vlgmr.msra.gmra.mrb[0].mxu0 %v8988_v21  ;;  %8235 = vmatmul.mubr.bf16.vlgmr.msra.gmra.mrb[0].mxu1 %v8988_v21  ;;  %v11357_v21 = vld [vmem:[#allocation2 + $0x13e8] ss:$16 sps:$4 sm:$0xff]  }
 0x278   :  { %7506 = vmatpush1.bf16.msra.mxu0 %v11264_v32  ;;  %8244 = vmatpush1.bf16.msra.mxu1 %v11267_v33  ;;  %v11364_v32 = vld [vmem:[#allocation2 + $0x1404] ss:$16 sps:$4 sm:$0xff]   ;;  %v11367_v33 = vld [vmem:[#allocation2 + $0x140c] ss:$16 sps:$4 sm:$0xff]  }
 0x279   :  { %7507 = vmatprep.subr.bf16.mxu0 %v11272_v34  ;;  %8245 = vmatprep.subr.bf16.mxu1 %v11275_v25  ;;  %v12411_v34 = vld [vmem:[%s12581_s0 + $0x50] sm:$0xff]  ;;  %v8990_v25 = vcombine.low %v12402_v31, %v12402_v31 }
 0x27a   :  { %7537 = vmatprep.mubr.bf16.mxu0 %v8991_v35  ;;  %8275 = vmatprep.mubr.bf16.mxu1 %v8991_v35  ;;  %v11362_v35 = vld [vmem:[#allocation2 + $0x1400] ss:$16 sps:$4 sm:$0xff]   ;;  %v11376_v31 = vld [vmem:[#allocation2 + $0x1444] ss:$16 sps:$4 sm:$0xff]  }
 0x27c   :  { %7508 = vmatpush1.bf16.msra.mxu0 %v11270_v36  ;;  %8246 = vmatpush1.bf16.msra.mxu1 %v11273_v37  ;;  %v11365_v36 = vld [vmem:[#allocation2 + $0x1408] ss:$16 sps:$4 sm:$0xff]   ;;  %v11370_v37 = vld [vmem:[#allocation2 + $0x1424] ss:$16 sps:$4 sm:$0xff]  }
 0x27d   :  { %7509 = vmatprep.subr.bf16.mxu0 %v11278_v28  ;;  %8247 = vmatprep.subr.bf16.mxu1 %v11281_v38  ;;  %v11373_v28 = vld [vmem:[#allocation2 + $0x142c] ss:$16 sps:$4 sm:$0xff]   ;;  %v8993_v38 = vcombine.high %v12411_v34, %v12411_v34 }
 0x280   :  { %7510 = vmatpush1.bf16.msra.mxu0 %v11276_v39  ;;  %8248 = vmatpush1.bf16.msra.mxu1 %v11279_v40  ;;  %v11368_v39 = vld [vmem:[#allocation2 + $0x1420] ss:$16 sps:$4 sm:$0xff]   ;;  %v11371_v40 = vld [vmem:[#allocation2 + $0x1428] ss:$16 sps:$4 sm:$0xff]  }
 0x281   :  { %7511 = vmatprep.subr.bf16.mxu0 %v11284_v41  ;;  %8249 = vmatprep.subr.bf16.mxu1 %v11287_v42  ;;  %v11379_v41 = vld [vmem:[#allocation2 + $0x144c] ss:$16 sps:$4 sm:$0xff]   ;;  %v11374_v42 = vld [vmem:[#allocation2 + $0x1440] ss:$16 sps:$4 sm:$0xff]  }
 0x284   :  { %7512 = vmatpush1.bf16.msra.mxu0 %v11282_v43  ;;  %8250 = vmatpush1.bf16.msra.mxu1 %v11285_v44  ;;  %v11377_v43 = vld [vmem:[#allocation2 + $0x1448] ss:$16 sps:$4 sm:$0xff]   ;;  %v11382_v44 = vld [vmem:[#allocation2 + $0x1464] ss:$16 sps:$4 sm:$0xff]  }
 0x285   :  { %7513 = vmatprep.subr.bf16.mxu0 %v11290_v45  ;;  %8251 = vmatprep.subr.bf16.mxu1 %v11293_v46  ;;  %v11385_v45 = vld [vmem:[#allocation2 + $0x146c] ss:$16 sps:$4 sm:$0xff]   ;;  %v11380_v46 = vld [vmem:[#allocation2 + $0x1460] ss:$16 sps:$4 sm:$0xff]  }
 0x288   :  { %7514 = vmatpush1.bf16.msra.mxu0 %v11288_v47  ;;  %8252 = vmatpush1.bf16.msra.mxu1 %v11291_v48  ;;  %v11383_v47 = vld [vmem:[#allocation2 + $0x1468] ss:$16 sps:$4 sm:$0xff]   ;;  %v11388_v48 = vld [vmem:[#allocation2 + $0x1484] ss:$16 sps:$4 sm:$0xff]  }
 0x289   :  { %7515 = vmatprep.subr.bf16.mxu0 %v11296_v49  ;;  %8253 = vmatprep.subr.bf16.mxu1 %v11299_v50  ;;  %v11391_v49 = vld [vmem:[#allocation2 + $0x148c] ss:$16 sps:$4 sm:$0xff]   ;;  %v11386_v50 = vld [vmem:[#allocation2 + $0x1480] ss:$16 sps:$4 sm:$0xff]  }
 0x28c   :  { %7516 = vmatpush1.bf16.msra.mxu0 %v11294_v51  ;;  %8254 = vmatpush1.bf16.msra.mxu1 %v11297_v52  ;;  %v11389_v51 = vld [vmem:[#allocation2 + $0x1488] ss:$16 sps:$4 sm:$0xff]   ;;  %v11394_v52 = vld [vmem:[#allocation2 + $0x14a4] ss:$16 sps:$4 sm:$0xff]  }
 0x28d   :  { %7517 = vmatprep.subr.bf16.mxu0 %v11302_v53  ;;  %8255 = vmatprep.subr.bf16.mxu1 %v11305_v54  ;;  %v11397_v53 = vld [vmem:[#allocation2 + $0x14ac] ss:$16 sps:$4 sm:$0xff]   ;;  %v11392_v54 = vld [vmem:[#allocation2 + $0x14a0] ss:$16 sps:$4 sm:$0xff]  }
 0x290   :  { %7518 = vmatpush1.bf16.msra.mxu0 %v11300_v55  ;;  %8256 = vmatpush1.bf16.msra.mxu1 %v11303_v56  ;;  %v11395_v55 = vld [vmem:[#allocation2 + $0x14a8] ss:$16 sps:$4 sm:$0xff]   ;;  %v11400_v56 = vld [vmem:[#allocation2 + $0x14c4] ss:$16 sps:$4 sm:$0xff]  }
 0x291   :  { %7519 = vmatprep.subr.bf16.mxu0 %v11308_v57  ;;  %8257 = vmatprep.subr.bf16.mxu1 %v11311_v58  ;;  %v11403_v57 = vld [vmem:[#allocation2 + $0x14cc] ss:$16 sps:$4 sm:$0xff]   ;;  %v11398_v58 = vld [vmem:[#allocation2 + $0x14c0] ss:$16 sps:$4 sm:$0xff]  }
 0x294   :  { %7520 = vmatpush1.bf16.msra.mxu0 %v11306_v59  ;;  %8258 = vmatpush1.bf16.msra.mxu1 %v11309_v60  ;;  %v11401_v59 = vld [vmem:[#allocation2 + $0x14c8] ss:$16 sps:$4 sm:$0xff]   ;;  %v11406_v60 = vld [vmem:[#allocation2 + $0x14e4] ss:$16 sps:$4 sm:$0xff]  }
 0x295   :  { %7521 = vmatprep.subr.bf16.mxu0 %v11314_v61  ;;  %8259 = vmatprep.subr.bf16.mxu1 %v11317_v62  ;;  %v11409_v61 = vld [vmem:[#allocation2 + $0x14ec] ss:$16 sps:$4 sm:$0xff]   ;;  %v11404_v62 = vld [vmem:[#allocation2 + $0x14e0] ss:$16 sps:$4 sm:$0xff]  }
 0x298   :  { %7522 = vmatpush1.bf16.msra.mxu0 %v11312_v63  ;;  %8260 = vmatpush1.bf16.msra.mxu1 %v11315_v0  ;;  %v11407_v63 = vld [vmem:[#allocation2 + $0x14e8] ss:$16 sps:$4 sm:$0xff]   ;;  %v11412_v0 = vld [vmem:[#allocation2 + $0x1504] ss:$16 sps:$4 sm:$0xff]  }
 0x299   :  { %7523 = vmatprep.subr.bf16.mxu0 %v11320_v1  ;;  %8261 = vmatprep.subr.bf16.mxu1 %v11323_v2  ;;  %v11415_v1 = vld [vmem:[#allocation2 + $0x150c] ss:$16 sps:$4 sm:$0xff]   ;;  %v11410_v2 = vld [vmem:[#allocation2 + $0x1500] ss:$16 sps:$4 sm:$0xff]  }
 0x29c   :  { %7524 = vmatpush1.bf16.msra.mxu0 %v11318_v3  ;;  %8262 = vmatpush1.bf16.msra.mxu1 %v11321_v4  ;;  %v11413_v3 = vld [vmem:[#allocation2 + $0x1508] ss:$16 sps:$4 sm:$0xff]   ;;  %v11418_v4 = vld [vmem:[#allocation2 + $0x1524] ss:$16 sps:$4 sm:$0xff]  }
 0x29d   :  { %7525 = vmatprep.subr.bf16.mxu0 %v11326_v5  ;;  %8263 = vmatprep.subr.bf16.mxu1 %v11329_v6  ;;  %v11421_v5 = vld [vmem:[#allocation2 + $0x152c] ss:$16 sps:$4 sm:$0xff]   ;;  %v11416_v6 = vld [vmem:[#allocation2 + $0x1520] ss:$16 sps:$4 sm:$0xff]  }
 0x2a0   :  { %7526 = vmatpush1.bf16.msra.mxu0 %v11324_v7  ;;  %8264 = vmatpush1.bf16.msra.mxu1 %v11327_v8  ;;  %v11419_v7 = vld [vmem:[#allocation2 + $0x1528] ss:$16 sps:$4 sm:$0xff]   ;;  %v11424_v8 = vld [vmem:[#allocation2 + $0x1544] ss:$16 sps:$4 sm:$0xff]  }
 0x2a1   :  { %7527 = vmatprep.subr.bf16.mxu0 %v11332_v9  ;;  %8265 = vmatprep.subr.bf16.mxu1 %v11335_v10  ;;  %v11427_v9 = vld [vmem:[#allocation2 + $0x154c] ss:$16 sps:$4 sm:$0xff]   ;;  %v11422_v10 = vld [vmem:[#allocation2 + $0x1540] ss:$16 sps:$4 sm:$0xff]  }
 0x2a4   :  { %7528 = vmatpush1.bf16.msra.mxu0 %v11330_v12  ;;  %8266 = vmatpush1.bf16.msra.mxu1 %v11333_v13  ;;  %v11425_v12 = vld [vmem:[#allocation2 + $0x1548] ss:$16 sps:$4 sm:$0xff]   ;;  %v11430_v13 = vld [vmem:[#allocation2 + $0x1564] ss:$16 sps:$4 sm:$0xff]  }
 0x2a5   :  { %7529 = vmatprep.subr.bf16.mxu0 %v11338_v15  ;;  %8267 = vmatprep.subr.bf16.mxu1 %v11341_v16  ;;  %v11433_v15 = vld [vmem:[#allocation2 + $0x156c] ss:$16 sps:$4 sm:$0xff]   ;;  %v11428_v16 = vld [vmem:[#allocation2 + $0x1560] ss:$16 sps:$4 sm:$0xff]  }
 0x2a8   :  { %7530 = vmatpush1.bf16.msra.mxu0 %v11336_v18  ;;  %8268 = vmatpush1.bf16.msra.mxu1 %v11339_v11  ;;  %v11431_v18 = vld [vmem:[#allocation2 + $0x1568] ss:$16 sps:$4 sm:$0xff]   ;;  %v11436_v11 = vld [vmem:[#allocation2 + $0x1584] ss:$16 sps:$4 sm:$0xff]  }
 0x2a9   :  { %7531 = vmatprep.subr.bf16.mxu0 %v11344_v20  ;;  %8269 = vmatprep.subr.bf16.mxu1 %v11347_v14  ;;  %v11439_v20 = vld [vmem:[#allocation2 + $0x158c] ss:$16 sps:$4 sm:$0xff]   ;;  %v11434_v14 = vld [vmem:[#allocation2 + $0x1580] ss:$16 sps:$4 sm:$0xff]  }
 0x2ac   :  { %7532 = vmatpush1.bf16.msra.mxu0 %v11342_v22  ;;  %8270 = vmatpush1.bf16.msra.mxu1 %v11345_v23  ;;  %v11437_v22 = vld [vmem:[#allocation2 + $0x1588] ss:$16 sps:$4 sm:$0xff]   ;;  %v11442_v23 = vld [vmem:[#allocation2 + $0x15a4] ss:$16 sps:$4 sm:$0xff]  }
 0x2ad   :  { %7533 = vmatprep.subr.bf16.mxu0 %v11350_v24  ;;  %8271 = vmatprep.subr.bf16.mxu1 %v11353_v17  ;;  %v11445_v24 = vld [vmem:[#allocation2 + $0x15ac] ss:$16 sps:$4 sm:$0xff]   ;;  %v11440_v17 = vld [vmem:[#allocation2 + $0x15a0] ss:$16 sps:$4 sm:$0xff]  }
 0x2b0   :  { %7534 = vmatpush1.bf16.msra.mxu0 %v11348_v26  ;;  %8272 = vmatpush1.bf16.msra.mxu1 %v11351_v27  ;;  %v11443_v26 = vld [vmem:[#allocation2 + $0x15a8] ss:$16 sps:$4 sm:$0xff]   ;;  %v11448_v27 = vld [vmem:[#allocation2 + $0x15c4] ss:$16 sps:$4 sm:$0xff]  }
 0x2b1   :  { %7535 = vmatprep.subr.bf16.mxu0 %v11356_v19  ;;  %8273 = vmatprep.subr.bf16.mxu1 %v11359_v29  ;;  %v11451_v19 = vld [vmem:[#allocation2 + $0x15cc] ss:$16 sps:$4 sm:$0xff]   ;;  %v11446_v29 = vld [vmem:[#allocation2 + $0x15c0] ss:$16 sps:$4 sm:$0xff]  }
 0x2b4   :  { %7536 = vmatpush1.bf16.msra.mxu0 %v11354_v30  ;;  %8274 = vmatpush1.bf16.msra.mxu1 %v11357_v21  ;;  %v11449_v30 = vld [vmem:[#allocation2 + $0x15c8] ss:$16 sps:$4 sm:$0xff]   ;;  %v11454_v21 = vld [vmem:[#allocation2 + $0x15e4] ss:$16 sps:$4 sm:$0xff]  }
 0x2b5   :  { %7546 = vmatprep.subr.bf16.mxu0 %v11364_v32  ;;  %8284 = vmatprep.subr.bf16.mxu1 %v11367_v33  ;;  %v11457_v32 = vld [vmem:[#allocation2 + $0x15ec] ss:$16 sps:$4 sm:$0xff]   ;;  %v11452_v33 = vld [vmem:[#allocation2 + $0x15e0] ss:$16 sps:$4 sm:$0xff]  }
 0x2b7   :  { %7538 = vmatmul.mubr.bf16.vlgmr.msra.gmra.mrb[0].mxu0 %v8990_v25  ;;  %8276 = vmatmul.mubr.bf16.vlgmr.msra.gmra.mrb[0].mxu1 %v8990_v25  ;;  %v11455_v25 = vld [vmem:[#allocation2 + $0x15e8] ss:$16 sps:$4 sm:$0xff]  }
 0x2b8   :  { %7547 = vmatpush1.bf16.msra.mxu0 %v11362_v35  ;;  %8285 = vmatpush1.bf16.msra.mxu1 %v11365_v36  ;;  %v11462_v35 = vld [vmem:[#allocation2 + $0x1604] ss:$16 sps:$4 sm:$0xff]   ;;  %v11465_v36 = vld [vmem:[#allocation2 + $0x160c] ss:$16 sps:$4 sm:$0xff]  }
 0x2b9   :  { %7548 = vmatprep.subr.bf16.mxu0 %v11370_v37  ;;  %8286 = vmatprep.subr.bf16.mxu1 %v11373_v28  ;;  %v8992_v37 = vcombine.low %v12411_v34, %v12411_v34  ;;  %v12422_v28 = vld [vmem:[%s12581_s0 + $0x58] sm:$0xff]  ;;  %v11466_v34 = vld [vmem:[#allocation2 + $0x1620] ss:$16 sps:$4 sm:$0xff]  }
 0x2ba   :  { %7578 = vmatprep.mubr.bf16.mxu0 %v8993_v38  ;;  %8316 = vmatprep.mubr.bf16.mxu1 %v8993_v38  ;;  %v11460_v38 = vld [vmem:[#allocation2 + $0x1600] ss:$16 sps:$4 sm:$0xff]  }
 0x2bc   :  { %7549 = vmatpush1.bf16.msra.mxu0 %v11368_v39  ;;  %8287 = vmatpush1.bf16.msra.mxu1 %v11371_v40  ;;  %v11463_v39 = vld [vmem:[#allocation2 + $0x1608] ss:$16 sps:$4 sm:$0xff]   ;;  %v11468_v40 = vld [vmem:[#allocation2 + $0x1624] ss:$16 sps:$4 sm:$0xff]  }
 0x2bd   :  { %7550 = vmatprep.subr.bf16.mxu0 %v11376_v31  ;;  %8288 = vmatprep.subr.bf16.mxu1 %v11379_v41  ;;  %v11471_v31 = vld [vmem:[#allocation2 + $0x162c] ss:$16 sps:$4 sm:$0xff]   ;;  %v8995_v41 = vcombine.high %v12422_v28, %v12422_v28 }
 0x2c0   :  { %7551 = vmatpush1.bf16.msra.mxu0 %v11374_v42  ;;  %8289 = vmatpush1.bf16.msra.mxu1 %v11377_v43  ;;  %v11469_v42 = vld [vmem:[#allocation2 + $0x1628] ss:$16 sps:$4 sm:$0xff]   ;;  %v11474_v43 = vld [vmem:[#allocation2 + $0x1644] ss:$16 sps:$4 sm:$0xff]  }
 0x2c1   :  { %7552 = vmatprep.subr.bf16.mxu0 %v11382_v44  ;;  %8290 = vmatprep.subr.bf16.mxu1 %v11385_v45  ;;  %v11477_v44 = vld [vmem:[#allocation2 + $0x164c] ss:$16 sps:$4 sm:$0xff]   ;;  %v11472_v45 = vld [vmem:[#allocation2 + $0x1640] ss:$16 sps:$4 sm:$0xff]  }
 0x2c4   :  { %7553 = vmatpush1.bf16.msra.mxu0 %v11380_v46  ;;  %8291 = vmatpush1.bf16.msra.mxu1 %v11383_v47  ;;  %v11475_v46 = vld [vmem:[#allocation2 + $0x1648] ss:$16 sps:$4 sm:$0xff]   ;;  %v11480_v47 = vld [vmem:[#allocation2 + $0x1664] ss:$16 sps:$4 sm:$0xff]  }
 0x2c5   :  { %7554 = vmatprep.subr.bf16.mxu0 %v11388_v48  ;;  %8292 = vmatprep.subr.bf16.mxu1 %v11391_v49  ;;  %v11483_v48 = vld [vmem:[#allocation2 + $0x166c] ss:$16 sps:$4 sm:$0xff]   ;;  %v11478_v49 = vld [vmem:[#allocation2 + $0x1660] ss:$16 sps:$4 sm:$0xff]  }
 0x2c8   :  { %7555 = vmatpush1.bf16.msra.mxu0 %v11386_v50  ;;  %8293 = vmatpush1.bf16.msra.mxu1 %v11389_v51  ;;  %v11481_v50 = vld [vmem:[#allocation2 + $0x1668] ss:$16 sps:$4 sm:$0xff]   ;;  %v11486_v51 = vld [vmem:[#allocation2 + $0x1684] ss:$16 sps:$4 sm:$0xff]  }
 0x2c9   :  { %7556 = vmatprep.subr.bf16.mxu0 %v11394_v52  ;;  %8294 = vmatprep.subr.bf16.mxu1 %v11397_v53  ;;  %v11489_v52 = vld [vmem:[#allocation2 + $0x168c] ss:$16 sps:$4 sm:$0xff]   ;;  %v11484_v53 = vld [vmem:[#allocation2 + $0x1680] ss:$16 sps:$4 sm:$0xff]  }
 0x2cc   :  { %7557 = vmatpush1.bf16.msra.mxu0 %v11392_v54  ;;  %8295 = vmatpush1.bf16.msra.mxu1 %v11395_v55  ;;  %v11487_v54 = vld [vmem:[#allocation2 + $0x1688] ss:$16 sps:$4 sm:$0xff]   ;;  %v11492_v55 = vld [vmem:[#allocation2 + $0x16a4] ss:$16 sps:$4 sm:$0xff]  }
 0x2cd   :  { %7558 = vmatprep.subr.bf16.mxu0 %v11400_v56  ;;  %8296 = vmatprep.subr.bf16.mxu1 %v11403_v57  ;;  %v11495_v56 = vld [vmem:[#allocation2 + $0x16ac] ss:$16 sps:$4 sm:$0xff]   ;;  %v11490_v57 = vld [vmem:[#allocation2 + $0x16a0] ss:$16 sps:$4 sm:$0xff]  }
 0x2d0   :  { %7559 = vmatpush1.bf16.msra.mxu0 %v11398_v58  ;;  %8297 = vmatpush1.bf16.msra.mxu1 %v11401_v59  ;;  %v11493_v58 = vld [vmem:[#allocation2 + $0x16a8] ss:$16 sps:$4 sm:$0xff]   ;;  %v11498_v59 = vld [vmem:[#allocation2 + $0x16c4] ss:$16 sps:$4 sm:$0xff]  }
 0x2d1   :  { %7560 = vmatprep.subr.bf16.mxu0 %v11406_v60  ;;  %8298 = vmatprep.subr.bf16.mxu1 %v11409_v61  ;;  %v11501_v60 = vld [vmem:[#allocation2 + $0x16cc] ss:$16 sps:$4 sm:$0xff]   ;;  %v11496_v61 = vld [vmem:[#allocation2 + $0x16c0] ss:$16 sps:$4 sm:$0xff]  }
 0x2d4   :  { %7561 = vmatpush1.bf16.msra.mxu0 %v11404_v62  ;;  %8299 = vmatpush1.bf16.msra.mxu1 %v11407_v63  ;;  %v11499_v62 = vld [vmem:[#allocation2 + $0x16c8] ss:$16 sps:$4 sm:$0xff]   ;;  %v11504_v63 = vld [vmem:[#allocation2 + $0x16e4] ss:$16 sps:$4 sm:$0xff]  }
 0x2d5   :  { %7562 = vmatprep.subr.bf16.mxu0 %v11412_v0  ;;  %8300 = vmatprep.subr.bf16.mxu1 %v11415_v1  ;;  %v11507_v0 = vld [vmem:[#allocation2 + $0x16ec] ss:$16 sps:$4 sm:$0xff]   ;;  %v11502_v1 = vld [vmem:[#allocation2 + $0x16e0] ss:$16 sps:$4 sm:$0xff]  }
 0x2d8   :  { %7563 = vmatpush1.bf16.msra.mxu0 %v11410_v2  ;;  %8301 = vmatpush1.bf16.msra.mxu1 %v11413_v3  ;;  %v11505_v2 = vld [vmem:[#allocation2 + $0x16e8] ss:$16 sps:$4 sm:$0xff]   ;;  %v11510_v3 = vld [vmem:[#allocation2 + $0x1704] ss:$16 sps:$4 sm:$0xff]  }
 0x2d9   :  { %7564 = vmatprep.subr.bf16.mxu0 %v11418_v4  ;;  %8302 = vmatprep.subr.bf16.mxu1 %v11421_v5  ;;  %v11513_v4 = vld [vmem:[#allocation2 + $0x170c] ss:$16 sps:$4 sm:$0xff]   ;;  %v11508_v5 = vld [vmem:[#allocation2 + $0x1700] ss:$16 sps:$4 sm:$0xff]  }
 0x2dc   :  { %7565 = vmatpush1.bf16.msra.mxu0 %v11416_v6  ;;  %8303 = vmatpush1.bf16.msra.mxu1 %v11419_v7  ;;  %v11511_v6 = vld [vmem:[#allocation2 + $0x1708] ss:$16 sps:$4 sm:$0xff]   ;;  %v11516_v7 = vld [vmem:[#allocation2 + $0x1724] ss:$16 sps:$4 sm:$0xff]  }
 0x2dd   :  { %7566 = vmatprep.subr.bf16.mxu0 %v11424_v8  ;;  %8304 = vmatprep.subr.bf16.mxu1 %v11427_v9  ;;  %v11519_v8 = vld [vmem:[#allocation2 + $0x172c] ss:$16 sps:$4 sm:$0xff]   ;;  %v11514_v9 = vld [vmem:[#allocation2 + $0x1720] ss:$16 sps:$4 sm:$0xff]  }
 0x2e0   :  { %7567 = vmatpush1.bf16.msra.mxu0 %v11422_v10  ;;  %8305 = vmatpush1.bf16.msra.mxu1 %v11425_v12  ;;  %v11517_v10 = vld [vmem:[#allocation2 + $0x1728] ss:$16 sps:$4 sm:$0xff]   ;;  %v11522_v12 = vld [vmem:[#allocation2 + $0x1744] ss:$16 sps:$4 sm:$0xff]  }
 0x2e1   :  { %7568 = vmatprep.subr.bf16.mxu0 %v11430_v13  ;;  %8306 = vmatprep.subr.bf16.mxu1 %v11433_v15  ;;  %v11525_v13 = vld [vmem:[#allocation2 + $0x174c] ss:$16 sps:$4 sm:$0xff]   ;;  %v11520_v15 = vld [vmem:[#allocation2 + $0x1740] ss:$16 sps:$4 sm:$0xff]  }
 0x2e4   :  { %7569 = vmatpush1.bf16.msra.mxu0 %v11428_v16  ;;  %8307 = vmatpush1.bf16.msra.mxu1 %v11431_v18  ;;  %v11523_v16 = vld [vmem:[#allocation2 + $0x1748] ss:$16 sps:$4 sm:$0xff]   ;;  %v11528_v18 = vld [vmem:[#allocation2 + $0x1764] ss:$16 sps:$4 sm:$0xff]  }
 0x2e5   :  { %7570 = vmatprep.subr.bf16.mxu0 %v11436_v11  ;;  %8308 = vmatprep.subr.bf16.mxu1 %v11439_v20  ;;  %v11531_v11 = vld [vmem:[#allocation2 + $0x176c] ss:$16 sps:$4 sm:$0xff]   ;;  %v11526_v20 = vld [vmem:[#allocation2 + $0x1760] ss:$16 sps:$4 sm:$0xff]  }
 0x2e8   :  { %7571 = vmatpush1.bf16.msra.mxu0 %v11434_v14  ;;  %8309 = vmatpush1.bf16.msra.mxu1 %v11437_v22  ;;  %v11529_v14 = vld [vmem:[#allocation2 + $0x1768] ss:$16 sps:$4 sm:$0xff]   ;;  %v11534_v22 = vld [vmem:[#allocation2 + $0x1784] ss:$16 sps:$4 sm:$0xff]  }
 0x2e9   :  { %7572 = vmatprep.subr.bf16.mxu0 %v11442_v23  ;;  %8310 = vmatprep.subr.bf16.mxu1 %v11445_v24  ;;  %v11537_v23 = vld [vmem:[#allocation2 + $0x178c] ss:$16 sps:$4 sm:$0xff]   ;;  %v11532_v24 = vld [vmem:[#allocation2 + $0x1780] ss:$16 sps:$4 sm:$0xff]  }
 0x2ec   :  { %7573 = vmatpush1.bf16.msra.mxu0 %v11440_v17  ;;  %8311 = vmatpush1.bf16.msra.mxu1 %v11443_v26  ;;  %v11535_v17 = vld [vmem:[#allocation2 + $0x1788] ss:$16 sps:$4 sm:$0xff]   ;;  %v11540_v26 = vld [vmem:[#allocation2 + $0x17a4] ss:$16 sps:$4 sm:$0xff]  }
 0x2ed   :  { %7574 = vmatprep.subr.bf16.mxu0 %v11448_v27  ;;  %8312 = vmatprep.subr.bf16.mxu1 %v11451_v19  ;;  %v11543_v27 = vld [vmem:[#allocation2 + $0x17ac] ss:$16 sps:$4 sm:$0xff]   ;;  %v11538_v19 = vld [vmem:[#allocation2 + $0x17a0] ss:$16 sps:$4 sm:$0xff]  }
 0x2f0   :  { %7575 = vmatpush1.bf16.msra.mxu0 %v11446_v29  ;;  %8313 = vmatpush1.bf16.msra.mxu1 %v11449_v30  ;;  %v11541_v29 = vld [vmem:[#allocation2 + $0x17a8] ss:$16 sps:$4 sm:$0xff]   ;;  %v11546_v30 = vld [vmem:[#allocation2 + $0x17c4] ss:$16 sps:$4 sm:$0xff]  }
 0x2f1   :  { %7576 = vmatprep.subr.bf16.mxu0 %v11454_v21  ;;  %8314 = vmatprep.subr.bf16.mxu1 %v11457_v32  ;;  %v11549_v21 = vld [vmem:[#allocation2 + $0x17cc] ss:$16 sps:$4 sm:$0xff]   ;;  %v11544_v32 = vld [vmem:[#allocation2 + $0x17c0] ss:$16 sps:$4 sm:$0xff]  }
 0x2f4   :  { %7577 = vmatpush1.bf16.msra.mxu0 %v11452_v33  ;;  %8315 = vmatpush1.bf16.msra.mxu1 %v11455_v25  ;;  %v11547_v33 = vld [vmem:[#allocation2 + $0x17c8] ss:$16 sps:$4 sm:$0xff]   ;;  %v11552_v25 = vld [vmem:[#allocation2 + $0x17e4] ss:$16 sps:$4 sm:$0xff]  }
 0x2f5   :  { %7587 = vmatprep.subr.bf16.mxu0 %v11462_v35  ;;  %8325 = vmatprep.subr.bf16.mxu1 %v11465_v36  ;;  %v11555_v35 = vld [vmem:[#allocation2 + $0x17ec] ss:$16 sps:$4 sm:$0xff]   ;;  %v11550_v36 = vld [vmem:[#allocation2 + $0x17e0] ss:$16 sps:$4 sm:$0xff]  }
 0x2f7   :  { %7579 = vmatmul.mubr.bf16.vlgmr.msra.gmra.mrb[0].mxu0 %v8992_v37  ;;  %8317 = vmatmul.mubr.bf16.vlgmr.msra.gmra.mrb[0].mxu1 %v8992_v37  ;;  %v11553_v37 = vld [vmem:[#allocation2 + $0x17e8] ss:$16 sps:$4 sm:$0xff]  }
 0x2f8   :  { %7588 = vmatpush1.bf16.msra.mxu0 %v11460_v38  ;;  %8326 = vmatpush1.bf16.msra.mxu1 %v11463_v39  ;;  %v11560_v38 = vld [vmem:[#allocation2 + $0x1804] ss:$16 sps:$4 sm:$0xff]   ;;  %v11563_v39 = vld [vmem:[#allocation2 + $0x180c] ss:$16 sps:$4 sm:$0xff]  }
 0x2f9   :  { %7589 = vmatprep.subr.bf16.mxu0 %v11468_v40  ;;  %8327 = vmatprep.subr.bf16.mxu1 %v11471_v31  ;;  %v8994_v40 = vcombine.low %v12422_v28, %v12422_v28  ;;  %v12431_v31 = vld [vmem:[%s12581_s0 + $0x60] sm:$0xff] }
 0x2fa   :  { %7619 = vmatprep.mubr.bf16.mxu0 %v8995_v41  ;;  %8357 = vmatprep.mubr.bf16.mxu1 %v8995_v41  ;;  %v11558_v41 = vld [vmem:[#allocation2 + $0x1800] ss:$16 sps:$4 sm:$0xff]  }
 0x2fb   :  { %v11564_v28 = vld [vmem:[#allocation2 + $0x1820] ss:$16 sps:$4 sm:$0xff]  }
 0x2fc   :  { %7590 = vmatpush1.bf16.msra.mxu0 %v11466_v34  ;;  %8328 = vmatpush1.bf16.msra.mxu1 %v11469_v42  ;;  %v11561_v34 = vld [vmem:[#allocation2 + $0x1808] ss:$16 sps:$4 sm:$0xff]   ;;  %v11566_v42 = vld [vmem:[#allocation2 + $0x1824] ss:$16 sps:$4 sm:$0xff]  }
 0x2fd   :  { %7591 = vmatprep.subr.bf16.mxu0 %v11474_v43  ;;  %8329 = vmatprep.subr.bf16.mxu1 %v11477_v44  ;;  %v11569_v43 = vld [vmem:[#allocation2 + $0x182c] ss:$16 sps:$4 sm:$0xff]   ;;  %v8997_v44 = vcombine.high %v12431_v31, %v12431_v31 }
 0x300   :  { %7592 = vmatpush1.bf16.msra.mxu0 %v11472_v45  ;;  %8330 = vmatpush1.bf16.msra.mxu1 %v11475_v46  ;;  %v11567_v45 = vld [vmem:[#allocation2 + $0x1828] ss:$16 sps:$4 sm:$0xff]   ;;  %v11572_v46 = vld [vmem:[#allocation2 + $0x1844] ss:$16 sps:$4 sm:$0xff]  }
 0x301   :  { %7593 = vmatprep.subr.bf16.mxu0 %v11480_v47  ;;  %8331 = vmatprep.subr.bf16.mxu1 %v11483_v48  ;;  %v11575_v47 = vld [vmem:[#allocation2 + $0x184c] ss:$16 sps:$4 sm:$0xff]   ;;  %v11570_v48 = vld [vmem:[#allocation2 + $0x1840] ss:$16 sps:$4 sm:$0xff]  }
 0x304   :  { %7594 = vmatpush1.bf16.msra.mxu0 %v11478_v49  ;;  %8332 = vmatpush1.bf16.msra.mxu1 %v11481_v50  ;;  %v11573_v49 = vld [vmem:[#allocation2 + $0x1848] ss:$16 sps:$4 sm:$0xff]   ;;  %v11578_v50 = vld [vmem:[#allocation2 + $0x1864] ss:$16 sps:$4 sm:$0xff]  }
 0x305   :  { %7595 = vmatprep.subr.bf16.mxu0 %v11486_v51  ;;  %8333 = vmatprep.subr.bf16.mxu1 %v11489_v52  ;;  %v11581_v51 = vld [vmem:[#allocation2 + $0x186c] ss:$16 sps:$4 sm:$0xff]   ;;  %v11576_v52 = vld [vmem:[#allocation2 + $0x1860] ss:$16 sps:$4 sm:$0xff]  }
 0x308   :  { %7596 = vmatpush1.bf16.msra.mxu0 %v11484_v53  ;;  %8334 = vmatpush1.bf16.msra.mxu1 %v11487_v54  ;;  %v11579_v53 = vld [vmem:[#allocation2 + $0x1868] ss:$16 sps:$4 sm:$0xff]   ;;  %v11584_v54 = vld [vmem:[#allocation2 + $0x1884] ss:$16 sps:$4 sm:$0xff]  }
 0x309   :  { %7597 = vmatprep.subr.bf16.mxu0 %v11492_v55  ;;  %8335 = vmatprep.subr.bf16.mxu1 %v11495_v56  ;;  %v11587_v55 = vld [vmem:[#allocation2 + $0x188c] ss:$16 sps:$4 sm:$0xff]   ;;  %v11582_v56 = vld [vmem:[#allocation2 + $0x1880] ss:$16 sps:$4 sm:$0xff]  }
 0x30c   :  { %7598 = vmatpush1.bf16.msra.mxu0 %v11490_v57  ;;  %8336 = vmatpush1.bf16.msra.mxu1 %v11493_v58  ;;  %v11585_v57 = vld [vmem:[#allocation2 + $0x1888] ss:$16 sps:$4 sm:$0xff]   ;;  %v11590_v58 = vld [vmem:[#allocation2 + $0x18a4] ss:$16 sps:$4 sm:$0xff]  }
 0x30d   :  { %7599 = vmatprep.subr.bf16.mxu0 %v11498_v59  ;;  %8337 = vmatprep.subr.bf16.mxu1 %v11501_v60  ;;  %v11593_v59 = vld [vmem:[#allocation2 + $0x18ac] ss:$16 sps:$4 sm:$0xff]   ;;  %v11588_v60 = vld [vmem:[#allocation2 + $0x18a0] ss:$16 sps:$4 sm:$0xff]  }
 0x310   :  { %7600 = vmatpush1.bf16.msra.mxu0 %v11496_v61  ;;  %8338 = vmatpush1.bf16.msra.mxu1 %v11499_v62  ;;  %v11591_v61 = vld [vmem:[#allocation2 + $0x18a8] ss:$16 sps:$4 sm:$0xff]   ;;  %v11596_v62 = vld [vmem:[#allocation2 + $0x18c4] ss:$16 sps:$4 sm:$0xff]  }
 0x311   :  { %7601 = vmatprep.subr.bf16.mxu0 %v11504_v63  ;;  %8339 = vmatprep.subr.bf16.mxu1 %v11507_v0  ;;  %v11599_v63 = vld [vmem:[#allocation2 + $0x18cc] ss:$16 sps:$4 sm:$0xff]   ;;  %v11594_v0 = vld [vmem:[#allocation2 + $0x18c0] ss:$16 sps:$4 sm:$0xff]  }
 0x314   :  { %7602 = vmatpush1.bf16.msra.mxu0 %v11502_v1  ;;  %8340 = vmatpush1.bf16.msra.mxu1 %v11505_v2  ;;  %v11597_v1 = vld [vmem:[#allocation2 + $0x18c8] ss:$16 sps:$4 sm:$0xff]   ;;  %v11602_v2 = vld [vmem:[#allocation2 + $0x18e4] ss:$16 sps:$4 sm:$0xff]  }
 0x315   :  { %7603 = vmatprep.subr.bf16.mxu0 %v11510_v3  ;;  %8341 = vmatprep.subr.bf16.mxu1 %v11513_v4  ;;  %v11605_v3 = vld [vmem:[#allocation2 + $0x18ec] ss:$16 sps:$4 sm:$0xff]   ;;  %v11600_v4 = vld [vmem:[#allocation2 + $0x18e0] ss:$16 sps:$4 sm:$0xff]  }
 0x318   :  { %7604 = vmatpush1.bf16.msra.mxu0 %v11508_v5  ;;  %8342 = vmatpush1.bf16.msra.mxu1 %v11511_v6  ;;  %v11603_v5 = vld [vmem:[#allocation2 + $0x18e8] ss:$16 sps:$4 sm:$0xff]   ;;  %v11608_v6 = vld [vmem:[#allocation2 + $0x1904] ss:$16 sps:$4 sm:$0xff]  }
 0x319   :  { %7605 = vmatprep.subr.bf16.mxu0 %v11516_v7  ;;  %8343 = vmatprep.subr.bf16.mxu1 %v11519_v8  ;;  %v11611_v7 = vld [vmem:[#allocation2 + $0x190c] ss:$16 sps:$4 sm:$0xff]   ;;  %v11606_v8 = vld [vmem:[#allocation2 + $0x1900] ss:$16 sps:$4 sm:$0xff]  }
 0x31c   :  { %7606 = vmatpush1.bf16.msra.mxu0 %v11514_v9  ;;  %8344 = vmatpush1.bf16.msra.mxu1 %v11517_v10  ;;  %v11609_v9 = vld [vmem:[#allocation2 + $0x1908] ss:$16 sps:$4 sm:$0xff]   ;;  %v11614_v10 = vld [vmem:[#allocation2 + $0x1924] ss:$16 sps:$4 sm:$0xff]  }
 0x31d   :  { %7607 = vmatprep.subr.bf16.mxu0 %v11522_v12  ;;  %8345 = vmatprep.subr.bf16.mxu1 %v11525_v13  ;;  %v11617_v12 = vld [vmem:[#allocation2 + $0x192c] ss:$16 sps:$4 sm:$0xff]   ;;  %v11612_v13 = vld [vmem:[#allocation2 + $0x1920] ss:$16 sps:$4 sm:$0xff]  }
 0x320   :  { %7608 = vmatpush1.bf16.msra.mxu0 %v11520_v15  ;;  %8346 = vmatpush1.bf16.msra.mxu1 %v11523_v16  ;;  %v11615_v15 = vld [vmem:[#allocation2 + $0x1928] ss:$16 sps:$4 sm:$0xff]   ;;  %v11620_v16 = vld [vmem:[#allocation2 + $0x1944] ss:$16 sps:$4 sm:$0xff]  }
 0x321   :  { %7609 = vmatprep.subr.bf16.mxu0 %v11528_v18  ;;  %8347 = vmatprep.subr.bf16.mxu1 %v11531_v11  ;;  %v11623_v18 = vld [vmem:[#allocation2 + $0x194c] ss:$16 sps:$4 sm:$0xff]   ;;  %v11618_v11 = vld [vmem:[#allocation2 + $0x1940] ss:$16 sps:$4 sm:$0xff]  }
 0x324   :  { %7610 = vmatpush1.bf16.msra.mxu0 %v11526_v20  ;;  %8348 = vmatpush1.bf16.msra.mxu1 %v11529_v14  ;;  %v11621_v20 = vld [vmem:[#allocation2 + $0x1948] ss:$16 sps:$4 sm:$0xff]   ;;  %v11626_v14 = vld [vmem:[#allocation2 + $0x1964] ss:$16 sps:$4 sm:$0xff]  }
 0x325   :  { %7611 = vmatprep.subr.bf16.mxu0 %v11534_v22  ;;  %8349 = vmatprep.subr.bf16.mxu1 %v11537_v23  ;;  %v11629_v22 = vld [vmem:[#allocation2 + $0x196c] ss:$16 sps:$4 sm:$0xff]   ;;  %v11624_v23 = vld [vmem:[#allocation2 + $0x1960] ss:$16 sps:$4 sm:$0xff]  }
 0x328   :  { %7612 = vmatpush1.bf16.msra.mxu0 %v11532_v24  ;;  %8350 = vmatpush1.bf16.msra.mxu1 %v11535_v17  ;;  %v11627_v24 = vld [vmem:[#allocation2 + $0x1968] ss:$16 sps:$4 sm:$0xff]   ;;  %v11632_v17 = vld [vmem:[#allocation2 + $0x1984] ss:$16 sps:$4 sm:$0xff]  }
 0x329   :  { %7613 = vmatprep.subr.bf16.mxu0 %v11540_v26  ;;  %8351 = vmatprep.subr.bf16.mxu1 %v11543_v27  ;;  %v11635_v26 = vld [vmem:[#allocation2 + $0x198c] ss:$16 sps:$4 sm:$0xff]   ;;  %v11630_v27 = vld [vmem:[#allocation2 + $0x1980] ss:$16 sps:$4 sm:$0xff]  }
 0x32c   :  { %7614 = vmatpush1.bf16.msra.mxu0 %v11538_v19  ;;  %8352 = vmatpush1.bf16.msra.mxu1 %v11541_v29  ;;  %v11633_v19 = vld [vmem:[#allocation2 + $0x1988] ss:$16 sps:$4 sm:$0xff]   ;;  %v11638_v29 = vld [vmem:[#allocation2 + $0x19a4] ss:$16 sps:$4 sm:$0xff]  }
 0x32d   :  { %7615 = vmatprep.subr.bf16.mxu0 %v11546_v30  ;;  %8353 = vmatprep.subr.bf16.mxu1 %v11549_v21  ;;  %v11641_v30 = vld [vmem:[#allocation2 + $0x19ac] ss:$16 sps:$4 sm:$0xff]   ;;  %v11636_v21 = vld [vmem:[#allocation2 + $0x19a0] ss:$16 sps:$4 sm:$0xff]  }
 0x330   :  { %7616 = vmatpush1.bf16.msra.mxu0 %v11544_v32  ;;  %8354 = vmatpush1.bf16.msra.mxu1 %v11547_v33  ;;  %v11639_v32 = vld [vmem:[#allocation2 + $0x19a8] ss:$16 sps:$4 sm:$0xff]   ;;  %v11644_v33 = vld [vmem:[#allocation2 + $0x19c4] ss:$16 sps:$4 sm:$0xff]  }
 0x331   :  { %7617 = vmatprep.subr.bf16.mxu0 %v11552_v25  ;;  %8355 = vmatprep.subr.bf16.mxu1 %v11555_v35  ;;  %v11647_v25 = vld [vmem:[#allocation2 + $0x19cc] ss:$16 sps:$4 sm:$0xff]   ;;  %v11642_v35 = vld [vmem:[#allocation2 + $0x19c0] ss:$16 sps:$4 sm:$0xff]  }
 0x334   :  { %7618 = vmatpush1.bf16.msra.mxu0 %v11550_v36  ;;  %8356 = vmatpush1.bf16.msra.mxu1 %v11553_v37  ;;  %v11645_v36 = vld [vmem:[#allocation2 + $0x19c8] ss:$16 sps:$4 sm:$0xff]   ;;  %v11650_v37 = vld [vmem:[#allocation2 + $0x19e4] ss:$16 sps:$4 sm:$0xff]  }
 0x335   :  { %7628 = vmatprep.subr.bf16.mxu0 %v11560_v38  ;;  %8366 = vmatprep.subr.bf16.mxu1 %v11563_v39  ;;  %v11653_v38 = vld [vmem:[#allocation2 + $0x19ec] ss:$16 sps:$4 sm:$0xff]   ;;  %v11648_v39 = vld [vmem:[#allocation2 + $0x19e0] ss:$16 sps:$4 sm:$0xff]  }
 0x337   :  { %7620 = vmatmul.mubr.bf16.vlgmr.msra.gmra.mrb[0].mxu0 %v8994_v40  ;;  %8358 = vmatmul.mubr.bf16.vlgmr.msra.gmra.mrb[0].mxu1 %v8994_v40  ;;  %v11651_v40 = vld [vmem:[#allocation2 + $0x19e8] ss:$16 sps:$4 sm:$0xff]  }
 0x338   :  { %7629 = vmatpush1.bf16.msra.mxu0 %v11558_v41  ;;  %8367 = vmatpush1.bf16.msra.mxu1 %v11561_v34  ;;  %v11658_v41 = vld [vmem:[#allocation2 + $0x1a04] ss:$16 sps:$4 sm:$0xff]   ;;  %v11661_v34 = vld [vmem:[#allocation2 + $0x1a0c] ss:$16 sps:$4 sm:$0xff]  }
 0x339   :  { %7630 = vmatprep.subr.bf16.mxu0 %v11566_v42  ;;  %8368 = vmatprep.subr.bf16.mxu1 %v11569_v43  ;;  %v8996_v42 = vcombine.low %v12431_v31, %v12431_v31  ;;  %v12440_v43 = vld [vmem:[%s12581_s0 + $0x68] sm:$0xff]  ;;  %v11662_v31 = vld [vmem:[#allocation2 + $0x1a20] ss:$16 sps:$4 sm:$0xff]  }
 0x33a   :  { %7660 = vmatprep.mubr.bf16.mxu0 %v8997_v44  ;;  %8398 = vmatprep.mubr.bf16.mxu1 %v8997_v44  ;;  %v11656_v44 = vld [vmem:[#allocation2 + $0x1a00] ss:$16 sps:$4 sm:$0xff]  }
 0x33c   :  { %7631 = vmatpush1.bf16.msra.mxu0 %v11564_v28  ;;  %8369 = vmatpush1.bf16.msra.mxu1 %v11567_v45  ;;  %v11659_v28 = vld [vmem:[#allocation2 + $0x1a08] ss:$16 sps:$4 sm:$0xff]   ;;  %v11664_v45 = vld [vmem:[#allocation2 + $0x1a24] ss:$16 sps:$4 sm:$0xff]  }
 0x33d   :  { %7632 = vmatprep.subr.bf16.mxu0 %v11572_v46  ;;  %8370 = vmatprep.subr.bf16.mxu1 %v11575_v47  ;;  %v11667_v46 = vld [vmem:[#allocation2 + $0x1a2c] ss:$16 sps:$4 sm:$0xff]   ;;  %v8999_v47 = vcombine.high %v12440_v43, %v12440_v43 }
 0x340   :  { %7633 = vmatpush1.bf16.msra.mxu0 %v11570_v48  ;;  %8371 = vmatpush1.bf16.msra.mxu1 %v11573_v49  ;;  %v11665_v48 = vld [vmem:[#allocation2 + $0x1a28] ss:$16 sps:$4 sm:$0xff]   ;;  %v11670_v49 = vld [vmem:[#allocation2 + $0x1a44] ss:$16 sps:$4 sm:$0xff]  }
 0x341   :  { %7634 = vmatprep.subr.bf16.mxu0 %v11578_v50  ;;  %8372 = vmatprep.subr.bf16.mxu1 %v11581_v51  ;;  %v11673_v50 = vld [vmem:[#allocation2 + $0x1a4c] ss:$16 sps:$4 sm:$0xff]   ;;  %v11668_v51 = vld [vmem:[#allocation2 + $0x1a40] ss:$16 sps:$4 sm:$0xff]  }
 0x344   :  { %7635 = vmatpush1.bf16.msra.mxu0 %v11576_v52  ;;  %8373 = vmatpush1.bf16.msra.mxu1 %v11579_v53  ;;  %v11671_v52 = vld [vmem:[#allocation2 + $0x1a48] ss:$16 sps:$4 sm:$0xff]   ;;  %v11676_v53 = vld [vmem:[#allocation2 + $0x1a64] ss:$16 sps:$4 sm:$0xff]  }
 0x345   :  { %7636 = vmatprep.subr.bf16.mxu0 %v11584_v54  ;;  %8374 = vmatprep.subr.bf16.mxu1 %v11587_v55  ;;  %v11679_v54 = vld [vmem:[#allocation2 + $0x1a6c] ss:$16 sps:$4 sm:$0xff]   ;;  %v11674_v55 = vld [vmem:[#allocation2 + $0x1a60] ss:$16 sps:$4 sm:$0xff]  }
 0x348   :  { %7637 = vmatpush1.bf16.msra.mxu0 %v11582_v56  ;;  %8375 = vmatpush1.bf16.msra.mxu1 %v11585_v57  ;;  %v11677_v56 = vld [vmem:[#allocation2 + $0x1a68] ss:$16 sps:$4 sm:$0xff]   ;;  %v11682_v57 = vld [vmem:[#allocation2 + $0x1a84] ss:$16 sps:$4 sm:$0xff]  }
 0x349   :  { %7638 = vmatprep.subr.bf16.mxu0 %v11590_v58  ;;  %8376 = vmatprep.subr.bf16.mxu1 %v11593_v59  ;;  %v11685_v58 = vld [vmem:[#allocation2 + $0x1a8c] ss:$16 sps:$4 sm:$0xff]   ;;  %v11680_v59 = vld [vmem:[#allocation2 + $0x1a80] ss:$16 sps:$4 sm:$0xff]  }
 0x34c   :  { %7639 = vmatpush1.bf16.msra.mxu0 %v11588_v60  ;;  %8377 = vmatpush1.bf16.msra.mxu1 %v11591_v61  ;;  %v11683_v60 = vld [vmem:[#allocation2 + $0x1a88] ss:$16 sps:$4 sm:$0xff]   ;;  %v11688_v61 = vld [vmem:[#allocation2 + $0x1aa4] ss:$16 sps:$4 sm:$0xff]  }
 0x34d   :  { %7640 = vmatprep.subr.bf16.mxu0 %v11596_v62  ;;  %8378 = vmatprep.subr.bf16.mxu1 %v11599_v63  ;;  %v11691_v62 = vld [vmem:[#allocation2 + $0x1aac] ss:$16 sps:$4 sm:$0xff]   ;;  %v11686_v63 = vld [vmem:[#allocation2 + $0x1aa0] ss:$16 sps:$4 sm:$0xff]  }
 0x350   :  { %7641 = vmatpush1.bf16.msra.mxu0 %v11594_v0  ;;  %8379 = vmatpush1.bf16.msra.mxu1 %v11597_v1  ;;  %v11689_v0 = vld [vmem:[#allocation2 + $0x1aa8] ss:$16 sps:$4 sm:$0xff]   ;;  %v11694_v1 = vld [vmem:[#allocation2 + $0x1ac4] ss:$16 sps:$4 sm:$0xff]  }
 0x351   :  { %7642 = vmatprep.subr.bf16.mxu0 %v11602_v2  ;;  %8380 = vmatprep.subr.bf16.mxu1 %v11605_v3  ;;  %v11697_v2 = vld [vmem:[#allocation2 + $0x1acc] ss:$16 sps:$4 sm:$0xff]   ;;  %v11692_v3 = vld [vmem:[#allocation2 + $0x1ac0] ss:$16 sps:$4 sm:$0xff]  }
 0x354   :  { %7643 = vmatpush1.bf16.msra.mxu0 %v11600_v4  ;;  %8381 = vmatpush1.bf16.msra.mxu1 %v11603_v5  ;;  %v11695_v4 = vld [vmem:[#allocation2 + $0x1ac8] ss:$16 sps:$4 sm:$0xff]   ;;  %v11700_v5 = vld [vmem:[#allocation2 + $0x1ae4] ss:$16 sps:$4 sm:$0xff]  }
 0x355   :  { %7644 = vmatprep.subr.bf16.mxu0 %v11608_v6  ;;  %8382 = vmatprep.subr.bf16.mxu1 %v11611_v7  ;;  %v11703_v6 = vld [vmem:[#allocation2 + $0x1aec] ss:$16 sps:$4 sm:$0xff]   ;;  %v11698_v7 = vld [vmem:[#allocation2 + $0x1ae0] ss:$16 sps:$4 sm:$0xff]  }
 0x358   :  { %7645 = vmatpush1.bf16.msra.mxu0 %v11606_v8  ;;  %8383 = vmatpush1.bf16.msra.mxu1 %v11609_v9  ;;  %v11701_v8 = vld [vmem:[#allocation2 + $0x1ae8] ss:$16 sps:$4 sm:$0xff]   ;;  %v11706_v9 = vld [vmem:[#allocation2 + $0x1b04] ss:$16 sps:$4 sm:$0xff]  }
 0x359   :  { %7646 = vmatprep.subr.bf16.mxu0 %v11614_v10  ;;  %8384 = vmatprep.subr.bf16.mxu1 %v11617_v12  ;;  %v11709_v10 = vld [vmem:[#allocation2 + $0x1b0c] ss:$16 sps:$4 sm:$0xff]   ;;  %v11704_v12 = vld [vmem:[#allocation2 + $0x1b00] ss:$16 sps:$4 sm:$0xff]  }
 0x35c   :  { %7647 = vmatpush1.bf16.msra.mxu0 %v11612_v13  ;;  %8385 = vmatpush1.bf16.msra.mxu1 %v11615_v15  ;;  %v11707_v13 = vld [vmem:[#allocation2 + $0x1b08] ss:$16 sps:$4 sm:$0xff]   ;;  %v11712_v15 = vld [vmem:[#allocation2 + $0x1b24] ss:$16 sps:$4 sm:$0xff]  }
 0x35d   :  { %7648 = vmatprep.subr.bf16.mxu0 %v11620_v16  ;;  %8386 = vmatprep.subr.bf16.mxu1 %v11623_v18  ;;  %v11715_v16 = vld [vmem:[#allocation2 + $0x1b2c] ss:$16 sps:$4 sm:$0xff]   ;;  %v11710_v18 = vld [vmem:[#allocation2 + $0x1b20] ss:$16 sps:$4 sm:$0xff]  }
 0x360   :  { %7649 = vmatpush1.bf16.msra.mxu0 %v11618_v11  ;;  %8387 = vmatpush1.bf16.msra.mxu1 %v11621_v20  ;;  %v11713_v11 = vld [vmem:[#allocation2 + $0x1b28] ss:$16 sps:$4 sm:$0xff]   ;;  %v11718_v20 = vld [vmem:[#allocation2 + $0x1b44] ss:$16 sps:$4 sm:$0xff]  }
 0x361   :  { %7650 = vmatprep.subr.bf16.mxu0 %v11626_v14  ;;  %8388 = vmatprep.subr.bf16.mxu1 %v11629_v22  ;;  %v11721_v14 = vld [vmem:[#allocation2 + $0x1b4c] ss:$16 sps:$4 sm:$0xff]   ;;  %v11716_v22 = vld [vmem:[#allocation2 + $0x1b40] ss:$16 sps:$4 sm:$0xff]  }
 0x364   :  { %7651 = vmatpush1.bf16.msra.mxu0 %v11624_v23  ;;  %8389 = vmatpush1.bf16.msra.mxu1 %v11627_v24  ;;  %v11719_v23 = vld [vmem:[#allocation2 + $0x1b48] ss:$16 sps:$4 sm:$0xff]   ;;  %v11724_v24 = vld [vmem:[#allocation2 + $0x1b64] ss:$16 sps:$4 sm:$0xff]  }
 0x365   :  { %7652 = vmatprep.subr.bf16.mxu0 %v11632_v17  ;;  %8390 = vmatprep.subr.bf16.mxu1 %v11635_v26  ;;  %v11727_v17 = vld [vmem:[#allocation2 + $0x1b6c] ss:$16 sps:$4 sm:$0xff]   ;;  %v11722_v26 = vld [vmem:[#allocation2 + $0x1b60] ss:$16 sps:$4 sm:$0xff]  }
 0x368   :  { %7653 = vmatpush1.bf16.msra.mxu0 %v11630_v27  ;;  %8391 = vmatpush1.bf16.msra.mxu1 %v11633_v19  ;;  %v11725_v27 = vld [vmem:[#allocation2 + $0x1b68] ss:$16 sps:$4 sm:$0xff]   ;;  %v11730_v19 = vld [vmem:[#allocation2 + $0x1b84] ss:$16 sps:$4 sm:$0xff]  }
 0x369   :  { %7654 = vmatprep.subr.bf16.mxu0 %v11638_v29  ;;  %8392 = vmatprep.subr.bf16.mxu1 %v11641_v30  ;;  %v11733_v29 = vld [vmem:[#allocation2 + $0x1b8c] ss:$16 sps:$4 sm:$0xff]   ;;  %v11728_v30 = vld [vmem:[#allocation2 + $0x1b80] ss:$16 sps:$4 sm:$0xff]  }
 0x36c   :  { %7655 = vmatpush1.bf16.msra.mxu0 %v11636_v21  ;;  %8393 = vmatpush1.bf16.msra.mxu1 %v11639_v32  ;;  %v11731_v21 = vld [vmem:[#allocation2 + $0x1b88] ss:$16 sps:$4 sm:$0xff]   ;;  %v11736_v32 = vld [vmem:[#allocation2 + $0x1ba4] ss:$16 sps:$4 sm:$0xff]  }
 0x36d   :  { %7656 = vmatprep.subr.bf16.mxu0 %v11644_v33  ;;  %8394 = vmatprep.subr.bf16.mxu1 %v11647_v25  ;;  %v11739_v33 = vld [vmem:[#allocation2 + $0x1bac] ss:$16 sps:$4 sm:$0xff]   ;;  %v11734_v25 = vld [vmem:[#allocation2 + $0x1ba0] ss:$16 sps:$4 sm:$0xff]  }
 0x370   :  { %7657 = vmatpush1.bf16.msra.mxu0 %v11642_v35  ;;  %8395 = vmatpush1.bf16.msra.mxu1 %v11645_v36  ;;  %v11737_v35 = vld [vmem:[#allocation2 + $0x1ba8] ss:$16 sps:$4 sm:$0xff]   ;;  %v11742_v36 = vld [vmem:[#allocation2 + $0x1bc4] ss:$16 sps:$4 sm:$0xff]  }
 0x371   :  { %7658 = vmatprep.subr.bf16.mxu0 %v11650_v37  ;;  %8396 = vmatprep.subr.bf16.mxu1 %v11653_v38  ;;  %v11745_v37 = vld [vmem:[#allocation2 + $0x1bcc] ss:$16 sps:$4 sm:$0xff]   ;;  %v11740_v38 = vld [vmem:[#allocation2 + $0x1bc0] ss:$16 sps:$4 sm:$0xff]  }
 0x374   :  { %7659 = vmatpush1.bf16.msra.mxu0 %v11648_v39  ;;  %8397 = vmatpush1.bf16.msra.mxu1 %v11651_v40  ;;  %v11743_v39 = vld [vmem:[#allocation2 + $0x1bc8] ss:$16 sps:$4 sm:$0xff]   ;;  %v11748_v40 = vld [vmem:[#allocation2 + $0x1be4] ss:$16 sps:$4 sm:$0xff]  }
 0x375   :  { %7669 = vmatprep.subr.bf16.mxu0 %v11658_v41  ;;  %8407 = vmatprep.subr.bf16.mxu1 %v11661_v34  ;;  %v11751_v41 = vld [vmem:[#allocation2 + $0x1bec] ss:$16 sps:$4 sm:$0xff]   ;;  %v11746_v34 = vld [vmem:[#allocation2 + $0x1be0] ss:$16 sps:$4 sm:$0xff]  }
 0x377   :  { %7661 = vmatmul.mubr.bf16.vlgmr.msra.gmra.mrb[0].mxu0 %v8996_v42  ;;  %8399 = vmatmul.mubr.bf16.vlgmr.msra.gmra.mrb[0].mxu1 %v8996_v42  ;;  %v11749_v42 = vld [vmem:[#allocation2 + $0x1be8] ss:$16 sps:$4 sm:$0xff]  }
 0x378   :  { %7670 = vmatpush1.bf16.msra.mxu0 %v11656_v44  ;;  %8408 = vmatpush1.bf16.msra.mxu1 %v11659_v28  ;;  %v11756_v44 = vld [vmem:[#allocation2 + $0x1c04] ss:$16 sps:$4 sm:$0xff]   ;;  %v11759_v28 = vld [vmem:[#allocation2 + $0x1c0c] ss:$16 sps:$4 sm:$0xff]  }
 0x379   :  { %7671 = vmatprep.subr.bf16.mxu0 %v11664_v45  ;;  %8409 = vmatprep.subr.bf16.mxu1 %v11667_v46  ;;  %v8998_v45 = vcombine.low %v12440_v43, %v12440_v43  ;;  %v12449_v46 = vld [vmem:[%s12581_s0 + $0x70] sm:$0xff] }
 0x37a   :  { %7701 = vmatprep.mubr.bf16.mxu0 %v8999_v47  ;;  %8439 = vmatprep.mubr.bf16.mxu1 %v8999_v47  ;;  %v11754_v47 = vld [vmem:[#allocation2 + $0x1c00] ss:$16 sps:$4 sm:$0xff]  }
 0x37b   :  { %v11760_v43 = vld [vmem:[#allocation2 + $0x1c20] ss:$16 sps:$4 sm:$0xff]  }
 0x37c   :  { %7672 = vmatpush1.bf16.msra.mxu0 %v11662_v31  ;;  %8410 = vmatpush1.bf16.msra.mxu1 %v11665_v48  ;;  %v11757_v31 = vld [vmem:[#allocation2 + $0x1c08] ss:$16 sps:$4 sm:$0xff]   ;;  %v11762_v48 = vld [vmem:[#allocation2 + $0x1c24] ss:$16 sps:$4 sm:$0xff]  }
 0x37d   :  { %7673 = vmatprep.subr.bf16.mxu0 %v11670_v49  ;;  %8411 = vmatprep.subr.bf16.mxu1 %v11673_v50  ;;  %v11765_v49 = vld [vmem:[#allocation2 + $0x1c2c] ss:$16 sps:$4 sm:$0xff]   ;;  %v9001_v50 = vcombine.high %v12449_v46, %v12449_v46 }
 0x380   :  { %7674 = vmatpush1.bf16.msra.mxu0 %v11668_v51  ;;  %8412 = vmatpush1.bf16.msra.mxu1 %v11671_v52  ;;  %v11763_v51 = vld [vmem:[#allocation2 + $0x1c28] ss:$16 sps:$4 sm:$0xff]   ;;  %v11768_v52 = vld [vmem:[#allocation2 + $0x1c44] ss:$16 sps:$4 sm:$0xff]  }
 0x381   :  { %7675 = vmatprep.subr.bf16.mxu0 %v11676_v53  ;;  %8413 = vmatprep.subr.bf16.mxu1 %v11679_v54  ;;  %v11771_v53 = vld [vmem:[#allocation2 + $0x1c4c] ss:$16 sps:$4 sm:$0xff]   ;;  %v11766_v54 = vld [vmem:[#allocation2 + $0x1c40] ss:$16 sps:$4 sm:$0xff]  }
 0x384   :  { %7676 = vmatpush1.bf16.msra.mxu0 %v11674_v55  ;;  %8414 = vmatpush1.bf16.msra.mxu1 %v11677_v56  ;;  %v11769_v55 = vld [vmem:[#allocation2 + $0x1c48] ss:$16 sps:$4 sm:$0xff]   ;;  %v11774_v56 = vld [vmem:[#allocation2 + $0x1c64] ss:$16 sps:$4 sm:$0xff]  }
 0x385   :  { %7677 = vmatprep.subr.bf16.mxu0 %v11682_v57  ;;  %8415 = vmatprep.subr.bf16.mxu1 %v11685_v58  ;;  %v11777_v57 = vld [vmem:[#allocation2 + $0x1c6c] ss:$16 sps:$4 sm:$0xff]   ;;  %v11772_v58 = vld [vmem:[#allocation2 + $0x1c60] ss:$16 sps:$4 sm:$0xff]  }
 0x388   :  { %7678 = vmatpush1.bf16.msra.mxu0 %v11680_v59  ;;  %8416 = vmatpush1.bf16.msra.mxu1 %v11683_v60  ;;  %v11775_v59 = vld [vmem:[#allocation2 + $0x1c68] ss:$16 sps:$4 sm:$0xff]   ;;  %v11780_v60 = vld [vmem:[#allocation2 + $0x1c84] ss:$16 sps:$4 sm:$0xff]  }
 0x389   :  { %7679 = vmatprep.subr.bf16.mxu0 %v11688_v61  ;;  %8417 = vmatprep.subr.bf16.mxu1 %v11691_v62  ;;  %v11783_v61 = vld [vmem:[#allocation2 + $0x1c8c] ss:$16 sps:$4 sm:$0xff]   ;;  %v11778_v62 = vld [vmem:[#allocation2 + $0x1c80] ss:$16 sps:$4 sm:$0xff]  }
 0x38c   :  { %7680 = vmatpush1.bf16.msra.mxu0 %v11686_v63  ;;  %8418 = vmatpush1.bf16.msra.mxu1 %v11689_v0  ;;  %v11781_v63 = vld [vmem:[#allocation2 + $0x1c88] ss:$16 sps:$4 sm:$0xff]   ;;  %v11786_v0 = vld [vmem:[#allocation2 + $0x1ca4] ss:$16 sps:$4 sm:$0xff]  }
 0x38d   :  { %7681 = vmatprep.subr.bf16.mxu0 %v11694_v1  ;;  %8419 = vmatprep.subr.bf16.mxu1 %v11697_v2  ;;  %v11789_v1 = vld [vmem:[#allocation2 + $0x1cac] ss:$16 sps:$4 sm:$0xff]   ;;  %v11784_v2 = vld [vmem:[#allocation2 + $0x1ca0] ss:$16 sps:$4 sm:$0xff]  }
 0x390   :  { %7682 = vmatpush1.bf16.msra.mxu0 %v11692_v3  ;;  %8420 = vmatpush1.bf16.msra.mxu1 %v11695_v4  ;;  %v11787_v3 = vld [vmem:[#allocation2 + $0x1ca8] ss:$16 sps:$4 sm:$0xff]   ;;  %v11792_v4 = vld [vmem:[#allocation2 + $0x1cc4] ss:$16 sps:$4 sm:$0xff]  }
 0x391   :  { %7683 = vmatprep.subr.bf16.mxu0 %v11700_v5  ;;  %8421 = vmatprep.subr.bf16.mxu1 %v11703_v6  ;;  %v11795_v5 = vld [vmem:[#allocation2 + $0x1ccc] ss:$16 sps:$4 sm:$0xff]   ;;  %v11790_v6 = vld [vmem:[#allocation2 + $0x1cc0] ss:$16 sps:$4 sm:$0xff]  }
 0x394   :  { %7684 = vmatpush1.bf16.msra.mxu0 %v11698_v7  ;;  %8422 = vmatpush1.bf16.msra.mxu1 %v11701_v8  ;;  %v11793_v7 = vld [vmem:[#allocation2 + $0x1cc8] ss:$16 sps:$4 sm:$0xff]   ;;  %v11798_v8 = vld [vmem:[#allocation2 + $0x1ce4] ss:$16 sps:$4 sm:$0xff]  }
 0x395   :  { %7685 = vmatprep.subr.bf16.mxu0 %v11706_v9  ;;  %8423 = vmatprep.subr.bf16.mxu1 %v11709_v10  ;;  %v11801_v9 = vld [vmem:[#allocation2 + $0x1cec] ss:$16 sps:$4 sm:$0xff]   ;;  %v11796_v10 = vld [vmem:[#allocation2 + $0x1ce0] ss:$16 sps:$4 sm:$0xff]  }
 0x398   :  { %7686 = vmatpush1.bf16.msra.mxu0 %v11704_v12  ;;  %8424 = vmatpush1.bf16.msra.mxu1 %v11707_v13  ;;  %v11799_v12 = vld [vmem:[#allocation2 + $0x1ce8] ss:$16 sps:$4 sm:$0xff]   ;;  %v11804_v13 = vld [vmem:[#allocation2 + $0x1d04] ss:$16 sps:$4 sm:$0xff]  }
 0x399   :  { %7687 = vmatprep.subr.bf16.mxu0 %v11712_v15  ;;  %8425 = vmatprep.subr.bf16.mxu1 %v11715_v16  ;;  %v11807_v15 = vld [vmem:[#allocation2 + $0x1d0c] ss:$16 sps:$4 sm:$0xff]   ;;  %v11802_v16 = vld [vmem:[#allocation2 + $0x1d00] ss:$16 sps:$4 sm:$0xff]  }
 0x39c   :  { %7688 = vmatpush1.bf16.msra.mxu0 %v11710_v18  ;;  %8426 = vmatpush1.bf16.msra.mxu1 %v11713_v11  ;;  %v11805_v18 = vld [vmem:[#allocation2 + $0x1d08] ss:$16 sps:$4 sm:$0xff]   ;;  %v11810_v11 = vld [vmem:[#allocation2 + $0x1d24] ss:$16 sps:$4 sm:$0xff]  }
 0x39d   :  { %7689 = vmatprep.subr.bf16.mxu0 %v11718_v20  ;;  %8427 = vmatprep.subr.bf16.mxu1 %v11721_v14  ;;  %v11813_v20 = vld [vmem:[#allocation2 + $0x1d2c] ss:$16 sps:$4 sm:$0xff]   ;;  %v11808_v14 = vld [vmem:[#allocation2 + $0x1d20] ss:$16 sps:$4 sm:$0xff]  }
 0x3a0   :  { %7690 = vmatpush1.bf16.msra.mxu0 %v11716_v22  ;;  %8428 = vmatpush1.bf16.msra.mxu1 %v11719_v23  ;;  %v11811_v22 = vld [vmem:[#allocation2 + $0x1d28] ss:$16 sps:$4 sm:$0xff]   ;;  %v11816_v23 = vld [vmem:[#allocation2 + $0x1d44] ss:$16 sps:$4 sm:$0xff]  }
 0x3a1   :  { %7691 = vmatprep.subr.bf16.mxu0 %v11724_v24  ;;  %8429 = vmatprep.subr.bf16.mxu1 %v11727_v17  ;;  %v11819_v24 = vld [vmem:[#allocation2 + $0x1d4c] ss:$16 sps:$4 sm:$0xff]   ;;  %v11814_v17 = vld [vmem:[#allocation2 + $0x1d40] ss:$16 sps:$4 sm:$0xff]  }
 0x3a4   :  { %7692 = vmatpush1.bf16.msra.mxu0 %v11722_v26  ;;  %8430 = vmatpush1.bf16.msra.mxu1 %v11725_v27  ;;  %v11817_v26 = vld [vmem:[#allocation2 + $0x1d48] ss:$16 sps:$4 sm:$0xff]   ;;  %v11822_v27 = vld [vmem:[#allocation2 + $0x1d64] ss:$16 sps:$4 sm:$0xff]  }
 0x3a5   :  { %7693 = vmatprep.subr.bf16.mxu0 %v11730_v19  ;;  %8431 = vmatprep.subr.bf16.mxu1 %v11733_v29  ;;  %v11825_v19 = vld [vmem:[#allocation2 + $0x1d6c] ss:$16 sps:$4 sm:$0xff]   ;;  %v11820_v29 = vld [vmem:[#allocation2 + $0x1d60] ss:$16 sps:$4 sm:$0xff]  }
 0x3a8   :  { %7694 = vmatpush1.bf16.msra.mxu0 %v11728_v30  ;;  %8432 = vmatpush1.bf16.msra.mxu1 %v11731_v21  ;;  %v11823_v30 = vld [vmem:[#allocation2 + $0x1d68] ss:$16 sps:$4 sm:$0xff]   ;;  %v11828_v21 = vld [vmem:[#allocation2 + $0x1d84] ss:$16 sps:$4 sm:$0xff]  }
 0x3a9   :  { %7695 = vmatprep.subr.bf16.mxu0 %v11736_v32  ;;  %8433 = vmatprep.subr.bf16.mxu1 %v11739_v33  ;;  %v11831_v32 = vld [vmem:[#allocation2 + $0x1d8c] ss:$16 sps:$4 sm:$0xff]   ;;  %v11826_v33 = vld [vmem:[#allocation2 + $0x1d80] ss:$16 sps:$4 sm:$0xff]  }
 0x3ac   :  { %7696 = vmatpush1.bf16.msra.mxu0 %v11734_v25  ;;  %8434 = vmatpush1.bf16.msra.mxu1 %v11737_v35  ;;  %v11829_v25 = vld [vmem:[#allocation2 + $0x1d88] ss:$16 sps:$4 sm:$0xff]   ;;  %v11834_v35 = vld [vmem:[#allocation2 + $0x1da4] ss:$16 sps:$4 sm:$0xff]  }
 0x3ad   :  { %7697 = vmatprep.subr.bf16.mxu0 %v11742_v36  ;;  %8435 = vmatprep.subr.bf16.mxu1 %v11745_v37  ;;  %v11837_v36 = vld [vmem:[#allocation2 + $0x1dac] ss:$16 sps:$4 sm:$0xff]   ;;  %v11832_v37 = vld [vmem:[#allocation2 + $0x1da0] ss:$16 sps:$4 sm:$0xff]  }
 0x3b0   :  { %7698 = vmatpush1.bf16.msra.mxu0 %v11740_v38  ;;  %8436 = vmatpush1.bf16.msra.mxu1 %v11743_v39  ;;  %v11835_v38 = vld [vmem:[#allocation2 + $0x1da8] ss:$16 sps:$4 sm:$0xff]   ;;  %v11840_v39 = vld [vmem:[#allocation2 + $0x1dc4] ss:$16 sps:$4 sm:$0xff]  }
 0x3b1   :  { %7699 = vmatprep.subr.bf16.mxu0 %v11748_v40  ;;  %8437 = vmatprep.subr.bf16.mxu1 %v11751_v41  ;;  %v11843_v40 = vld [vmem:[#allocation2 + $0x1dcc] ss:$16 sps:$4 sm:$0xff]   ;;  %v11838_v41 = vld [vmem:[#allocation2 + $0x1dc0] ss:$16 sps:$4 sm:$0xff]  }
 0x3b4   :  { %7700 = vmatpush1.bf16.msra.mxu0 %v11746_v34  ;;  %8438 = vmatpush1.bf16.msra.mxu1 %v11749_v42  ;;  %v11841_v34 = vld [vmem:[#allocation2 + $0x1dc8] ss:$16 sps:$4 sm:$0xff]   ;;  %v11846_v42 = vld [vmem:[#allocation2 + $0x1de4] ss:$16 sps:$4 sm:$0xff]  }
 0x3b5   :  { %7710 = vmatprep.subr.bf16.mxu0 %v11756_v44  ;;  %8448 = vmatprep.subr.bf16.mxu1 %v11759_v28  ;;  %v11849_v44 = vld [vmem:[#allocation2 + $0x1dec] ss:$16 sps:$4 sm:$0xff]   ;;  %v11844_v28 = vld [vmem:[#allocation2 + $0x1de0] ss:$16 sps:$4 sm:$0xff]  }
 0x3b7   :  { %7702 = vmatmul.mubr.bf16.vlgmr.msra.gmra.mrb[0].mxu0 %v8998_v45  ;;  %8440 = vmatmul.mubr.bf16.vlgmr.msra.gmra.mrb[0].mxu1 %v8998_v45  ;;  %v11847_v45 = vld [vmem:[#allocation2 + $0x1de8] ss:$16 sps:$4 sm:$0xff]  }
 0x3b8   :  { %7711 = vmatpush1.bf16.msra.mxu0 %v11754_v47  ;;  %8449 = vmatpush1.bf16.msra.mxu1 %v11757_v31  ;;  %v11854_v47 = vld [vmem:[#allocation2 + $0x1e04] ss:$16 sps:$4 sm:$0xff]   ;;  %v11857_v31 = vld [vmem:[#allocation2 + $0x1e0c] ss:$16 sps:$4 sm:$0xff]  }
 0x3b9   :  { %7712 = vmatprep.subr.bf16.mxu0 %v11762_v48  ;;  %8450 = vmatprep.subr.bf16.mxu1 %v11765_v49  ;;  %v9000_v48 = vcombine.low %v12449_v46, %v12449_v46  ;;  %v12458_v49 = vld [vmem:[%s12581_s0 + $0x78] sm:$0xff]  ;;  %v11858_v46 = vld [vmem:[#allocation2 + $0x1e20] ss:$16 sps:$4 sm:$0xff]  }
 0x3ba   :  { %7742 = vmatprep.mubr.bf16.mxu0 %v9001_v50  ;;  %8480 = vmatprep.mubr.bf16.mxu1 %v9001_v50  ;;  %v11852_v50 = vld [vmem:[#allocation2 + $0x1e00] ss:$16 sps:$4 sm:$0xff]  }
 0x3bc   :  { %7713 = vmatpush1.bf16.msra.mxu0 %v11760_v43  ;;  %8451 = vmatpush1.bf16.msra.mxu1 %v11763_v51  ;;  %v11855_v43 = vld [vmem:[#allocation2 + $0x1e08] ss:$16 sps:$4 sm:$0xff]   ;;  %v11860_v51 = vld [vmem:[#allocation2 + $0x1e24] ss:$16 sps:$4 sm:$0xff]  }
 0x3bd   :  { %7714 = vmatprep.subr.bf16.mxu0 %v11768_v52  ;;  %8452 = vmatprep.subr.bf16.mxu1 %v11771_v53  ;;  %v11863_v52 = vld [vmem:[#allocation2 + $0x1e2c] ss:$16 sps:$4 sm:$0xff]   ;;  %v9003_v53 = vcombine.high %v12458_v49, %v12458_v49 }
 0x3c0   :  { %7715 = vmatpush1.bf16.msra.mxu0 %v11766_v54  ;;  %8453 = vmatpush1.bf16.msra.mxu1 %v11769_v55  ;;  %v11861_v54 = vld [vmem:[#allocation2 + $0x1e28] ss:$16 sps:$4 sm:$0xff]   ;;  %v11866_v55 = vld [vmem:[#allocation2 + $0x1e44] ss:$16 sps:$4 sm:$0xff]  }
 0x3c1   :  { %7716 = vmatprep.subr.bf16.mxu0 %v11774_v56  ;;  %8454 = vmatprep.subr.bf16.mxu1 %v11777_v57  ;;  %v11869_v56 = vld [vmem:[#allocation2 + $0x1e4c] ss:$16 sps:$4 sm:$0xff]   ;;  %v11864_v57 = vld [vmem:[#allocation2 + $0x1e40] ss:$16 sps:$4 sm:$0xff]  }
 0x3c4   :  { %7717 = vmatpush1.bf16.msra.mxu0 %v11772_v58  ;;  %8455 = vmatpush1.bf16.msra.mxu1 %v11775_v59  ;;  %v11867_v58 = vld [vmem:[#allocation2 + $0x1e48] ss:$16 sps:$4 sm:$0xff]   ;;  %v11872_v59 = vld [vmem:[#allocation2 + $0x1e64] ss:$16 sps:$4 sm:$0xff]  }
 0x3c5   :  { %7718 = vmatprep.subr.bf16.mxu0 %v11780_v60  ;;  %8456 = vmatprep.subr.bf16.mxu1 %v11783_v61  ;;  %v11875_v60 = vld [vmem:[#allocation2 + $0x1e6c] ss:$16 sps:$4 sm:$0xff]   ;;  %v11870_v61 = vld [vmem:[#allocation2 + $0x1e60] ss:$16 sps:$4 sm:$0xff]  }
 0x3c8   :  { %7719 = vmatpush1.bf16.msra.mxu0 %v11778_v62  ;;  %8457 = vmatpush1.bf16.msra.mxu1 %v11781_v63  ;;  %v11873_v62 = vld [vmem:[#allocation2 + $0x1e68] ss:$16 sps:$4 sm:$0xff]   ;;  %v11878_v63 = vld [vmem:[#allocation2 + $0x1e84] ss:$16 sps:$4 sm:$0xff]  }
 0x3c9   :  { %7720 = vmatprep.subr.bf16.mxu0 %v11786_v0  ;;  %8458 = vmatprep.subr.bf16.mxu1 %v11789_v1  ;;  %v11881_v0 = vld [vmem:[#allocation2 + $0x1e8c] ss:$16 sps:$4 sm:$0xff]   ;;  %v11876_v1 = vld [vmem:[#allocation2 + $0x1e80] ss:$16 sps:$4 sm:$0xff]  }
 0x3cc   :  { %7721 = vmatpush1.bf16.msra.mxu0 %v11784_v2  ;;  %8459 = vmatpush1.bf16.msra.mxu1 %v11787_v3  ;;  %v11879_v2 = vld [vmem:[#allocation2 + $0x1e88] ss:$16 sps:$4 sm:$0xff]   ;;  %v11884_v3 = vld [vmem:[#allocation2 + $0x1ea4] ss:$16 sps:$4 sm:$0xff]  }
 0x3cd   :  { %7722 = vmatprep.subr.bf16.mxu0 %v11792_v4  ;;  %8460 = vmatprep.subr.bf16.mxu1 %v11795_v5  ;;  %v11887_v4 = vld [vmem:[#allocation2 + $0x1eac] ss:$16 sps:$4 sm:$0xff]   ;;  %v11882_v5 = vld [vmem:[#allocation2 + $0x1ea0] ss:$16 sps:$4 sm:$0xff]  }
 0x3d0   :  { %7723 = vmatpush1.bf16.msra.mxu0 %v11790_v6  ;;  %8461 = vmatpush1.bf16.msra.mxu1 %v11793_v7  ;;  %v11885_v6 = vld [vmem:[#allocation2 + $0x1ea8] ss:$16 sps:$4 sm:$0xff]   ;;  %v11890_v7 = vld [vmem:[#allocation2 + $0x1ec4] ss:$16 sps:$4 sm:$0xff]  }
 0x3d1   :  { %7724 = vmatprep.subr.bf16.mxu0 %v11798_v8  ;;  %8462 = vmatprep.subr.bf16.mxu1 %v11801_v9  ;;  %v11893_v8 = vld [vmem:[#allocation2 + $0x1ecc] ss:$16 sps:$4 sm:$0xff]   ;;  %v11888_v9 = vld [vmem:[#allocation2 + $0x1ec0] ss:$16 sps:$4 sm:$0xff]  }
 0x3d4   :  { %7725 = vmatpush1.bf16.msra.mxu0 %v11796_v10  ;;  %8463 = vmatpush1.bf16.msra.mxu1 %v11799_v12  ;;  %v11891_v10 = vld [vmem:[#allocation2 + $0x1ec8] ss:$16 sps:$4 sm:$0xff]   ;;  %v11896_v12 = vld [vmem:[#allocation2 + $0x1ee4] ss:$16 sps:$4 sm:$0xff]  }
 0x3d5   :  { %7726 = vmatprep.subr.bf16.mxu0 %v11804_v13  ;;  %8464 = vmatprep.subr.bf16.mxu1 %v11807_v15  ;;  %v11899_v13 = vld [vmem:[#allocation2 + $0x1eec] ss:$16 sps:$4 sm:$0xff]   ;;  %v11894_v15 = vld [vmem:[#allocation2 + $0x1ee0] ss:$16 sps:$4 sm:$0xff]  }
 0x3d8   :  { %7727 = vmatpush1.bf16.msra.mxu0 %v11802_v16  ;;  %8465 = vmatpush1.bf16.msra.mxu1 %v11805_v18  ;;  %v11897_v16 = vld [vmem:[#allocation2 + $0x1ee8] ss:$16 sps:$4 sm:$0xff]   ;;  %v11902_v18 = vld [vmem:[#allocation2 + $0x1f04] ss:$16 sps:$4 sm:$0xff]  }
 0x3d9   :  { %7728 = vmatprep.subr.bf16.mxu0 %v11810_v11  ;;  %8466 = vmatprep.subr.bf16.mxu1 %v11813_v20  ;;  %v11905_v11 = vld [vmem:[#allocation2 + $0x1f0c] ss:$16 sps:$4 sm:$0xff]   ;;  %v11900_v20 = vld [vmem:[#allocation2 + $0x1f00] ss:$16 sps:$4 sm:$0xff]  }
 0x3dc   :  { %7729 = vmatpush1.bf16.msra.mxu0 %v11808_v14  ;;  %8467 = vmatpush1.bf16.msra.mxu1 %v11811_v22  ;;  %v11903_v14 = vld [vmem:[#allocation2 + $0x1f08] ss:$16 sps:$4 sm:$0xff]   ;;  %v11908_v22 = vld [vmem:[#allocation2 + $0x1f24] ss:$16 sps:$4 sm:$0xff]  }
 0x3dd   :  { %7730 = vmatprep.subr.bf16.mxu0 %v11816_v23  ;;  %8468 = vmatprep.subr.bf16.mxu1 %v11819_v24  ;;  %v11911_v23 = vld [vmem:[#allocation2 + $0x1f2c] ss:$16 sps:$4 sm:$0xff]   ;;  %v11906_v24 = vld [vmem:[#allocation2 + $0x1f20] ss:$16 sps:$4 sm:$0xff]  }
 0x3e0   :  { %7731 = vmatpush1.bf16.msra.mxu0 %v11814_v17  ;;  %8469 = vmatpush1.bf16.msra.mxu1 %v11817_v26  ;;  %v11909_v17 = vld [vmem:[#allocation2 + $0x1f28] ss:$16 sps:$4 sm:$0xff]   ;;  %v11914_v26 = vld [vmem:[#allocation2 + $0x1f44] ss:$16 sps:$4 sm:$0xff]  }
 0x3e1   :  { %7732 = vmatprep.subr.bf16.mxu0 %v11822_v27  ;;  %8470 = vmatprep.subr.bf16.mxu1 %v11825_v19  ;;  %v11917_v27 = vld [vmem:[#allocation2 + $0x1f4c] ss:$16 sps:$4 sm:$0xff]   ;;  %v11912_v19 = vld [vmem:[#allocation2 + $0x1f40] ss:$16 sps:$4 sm:$0xff]  }
 0x3e4   :  { %7733 = vmatpush1.bf16.msra.mxu0 %v11820_v29  ;;  %8471 = vmatpush1.bf16.msra.mxu1 %v11823_v30  ;;  %v11915_v29 = vld [vmem:[#allocation2 + $0x1f48] ss:$16 sps:$4 sm:$0xff]   ;;  %v11920_v30 = vld [vmem:[#allocation2 + $0x1f64] ss:$16 sps:$4 sm:$0xff]  }
 0x3e5   :  { %7734 = vmatprep.subr.bf16.mxu0 %v11828_v21  ;;  %8472 = vmatprep.subr.bf16.mxu1 %v11831_v32  ;;  %v11923_v21 = vld [vmem:[#allocation2 + $0x1f6c] ss:$16 sps:$4 sm:$0xff]   ;;  %v11918_v32 = vld [vmem:[#allocation2 + $0x1f60] ss:$16 sps:$4 sm:$0xff]  }
 0x3e8   :  { %7735 = vmatpush1.bf16.msra.mxu0 %v11826_v33  ;;  %8473 = vmatpush1.bf16.msra.mxu1 %v11829_v25  ;;  %v11921_v33 = vld [vmem:[#allocation2 + $0x1f68] ss:$16 sps:$4 sm:$0xff]   ;;  %v11926_v25 = vld [vmem:[#allocation2 + $0x1f84] ss:$16 sps:$4 sm:$0xff]  }
 0x3e9   :  { %7736 = vmatprep.subr.bf16.mxu0 %v11834_v35  ;;  %8474 = vmatprep.subr.bf16.mxu1 %v11837_v36  ;;  %v11929_v35 = vld [vmem:[#allocation2 + $0x1f8c] ss:$16 sps:$4 sm:$0xff]   ;;  %v11924_v36 = vld [vmem:[#allocation2 + $0x1f80] ss:$16 sps:$4 sm:$0xff]  }
 0x3ec   :  { %7737 = vmatpush1.bf16.msra.mxu0 %v11832_v37  ;;  %8475 = vmatpush1.bf16.msra.mxu1 %v11835_v38  ;;  %v11927_v37 = vld [vmem:[#allocation2 + $0x1f88] ss:$16 sps:$4 sm:$0xff]   ;;  %v11932_v38 = vld [vmem:[#allocation2 + $0x1fa4] ss:$16 sps:$4 sm:$0xff]  }
 0x3ed   :  { %7738 = vmatprep.subr.bf16.mxu0 %v11840_v39  ;;  %8476 = vmatprep.subr.bf16.mxu1 %v11843_v40  ;;  %v11935_v39 = vld [vmem:[#allocation2 + $0x1fac] ss:$16 sps:$4 sm:$0xff]   ;;  %v11930_v40 = vld [vmem:[#allocation2 + $0x1fa0] ss:$16 sps:$4 sm:$0xff]  }
 0x3f0   :  { %7739 = vmatpush1.bf16.msra.mxu0 %v11838_v41  ;;  %8477 = vmatpush1.bf16.msra.mxu1 %v11841_v34  ;;  %v11933_v41 = vld [vmem:[#allocation2 + $0x1fa8] ss:$16 sps:$4 sm:$0xff]   ;;  %v11938_v34 = vld [vmem:[#allocation2 + $0x1fc4] ss:$16 sps:$4 sm:$0xff]  }
 0x3f1   :  { %7740 = vmatprep.subr.bf16.mxu0 %v11846_v42  ;;  %8478 = vmatprep.subr.bf16.mxu1 %v11849_v44  ;;  %v11941_v42 = vld [vmem:[#allocation2 + $0x1fcc] ss:$16 sps:$4 sm:$0xff]   ;;  %v11936_v44 = vld [vmem:[#allocation2 + $0x1fc0] ss:$16 sps:$4 sm:$0xff]  }
 0x3f4   :  { %7741 = vmatpush1.bf16.msra.mxu0 %v11844_v28  ;;  %8479 = vmatpush1.bf16.msra.mxu1 %v11847_v45  ;;  %v11939_v28 = vld [vmem:[#allocation2 + $0x1fc8] ss:$16 sps:$4 sm:$0xff]   ;;  %v11944_v45 = vld [vmem:[#allocation2 + $0x1fe4] ss:$16 sps:$4 sm:$0xff]  }
 0x3f5   :  { %7751 = vmatprep.subr.bf16.mxu0 %v11854_v47  ;;  %8489 = vmatprep.subr.bf16.mxu1 %v11857_v31  ;;  %v11947_v47 = vld [vmem:[#allocation2 + $0x1fec] ss:$16 sps:$4 sm:$0xff]   ;;  %v11942_v31 = vld [vmem:[#allocation2 + $0x1fe0] ss:$16 sps:$4 sm:$0xff]  }
 0x3f7   :  { %7743 = vmatmul.mubr.bf16.vlgmr.msra.gmra.mrb[0].mxu0 %v9000_v48  ;;  %8481 = vmatmul.mubr.bf16.vlgmr.msra.gmra.mrb[0].mxu1 %v9000_v48  ;;  %v11945_v48 = vld [vmem:[#allocation2 + $0x1fe8] ss:$16 sps:$4 sm:$0xff]  }
 0x3f8   :  { %7752 = vmatpush1.bf16.msra.mxu0 %v11852_v50  ;;  %8490 = vmatpush1.bf16.msra.mxu1 %v11855_v43  ;;  %v11952_v50 = vld [vmem:[#allocation2 + $0x2004] ss:$16 sps:$4 sm:$0xff]   ;;  %v11955_v43 = vld [vmem:[#allocation2 + $0x200c] ss:$16 sps:$4 sm:$0xff]  }
 0x3f9   :  { %7753 = vmatprep.subr.bf16.mxu0 %v11860_v51  ;;  %8491 = vmatprep.subr.bf16.mxu1 %v11863_v52  ;;  %v9002_v51 = vcombine.low %v12458_v49, %v12458_v49  ;;  %v12467_v52 = vld [vmem:[%s12581_s0 + $0x80] sm:$0xff] }
 0x3fa   :  { %7783 = vmatprep.mubr.bf16.mxu0 %v9003_v53  ;;  %8521 = vmatprep.mubr.bf16.mxu1 %v9003_v53  ;;  %v11950_v53 = vld [vmem:[#allocation2 + $0x2000] ss:$16 sps:$4 sm:$0xff]  }
 0x3fb   :  { %v11956_v49 = vld [vmem:[#allocation2 + $0x2020] ss:$16 sps:$4 sm:$0xff]  }
 0x3fc   :  { %7754 = vmatpush1.bf16.msra.mxu0 %v11858_v46  ;;  %8492 = vmatpush1.bf16.msra.mxu1 %v11861_v54  ;;  %v11953_v46 = vld [vmem:[#allocation2 + $0x2008] ss:$16 sps:$4 sm:$0xff]   ;;  %v11958_v54 = vld [vmem:[#allocation2 + $0x2024] ss:$16 sps:$4 sm:$0xff]  }
 0x3fd   :  { %7755 = vmatprep.subr.bf16.mxu0 %v11866_v55  ;;  %8493 = vmatprep.subr.bf16.mxu1 %v11869_v56  ;;  %v11961_v55 = vld [vmem:[#allocation2 + $0x202c] ss:$16 sps:$4 sm:$0xff]   ;;  %v9005_v56 = vcombine.high %v12467_v52, %v12467_v52 }
 0x400   :  { %7756 = vmatpush1.bf16.msra.mxu0 %v11864_v57  ;;  %8494 = vmatpush1.bf16.msra.mxu1 %v11867_v58  ;;  %v11959_v57 = vld [vmem:[#allocation2 + $0x2028] ss:$16 sps:$4 sm:$0xff]   ;;  %v11964_v58 = vld [vmem:[#allocation2 + $0x2044] ss:$16 sps:$4 sm:$0xff]  }
 0x401   :  { %7757 = vmatprep.subr.bf16.mxu0 %v11872_v59  ;;  %8495 = vmatprep.subr.bf16.mxu1 %v11875_v60  ;;  %v11967_v59 = vld [vmem:[#allocation2 + $0x204c] ss:$16 sps:$4 sm:$0xff]   ;;  %v11962_v60 = vld [vmem:[#allocation2 + $0x2040] ss:$16 sps:$4 sm:$0xff]  }
 0x404   :  { %7758 = vmatpush1.bf16.msra.mxu0 %v11870_v61  ;;  %8496 = vmatpush1.bf16.msra.mxu1 %v11873_v62  ;;  %v11965_v61 = vld [vmem:[#allocation2 + $0x2048] ss:$16 sps:$4 sm:$0xff]   ;;  %v11970_v62 = vld [vmem:[#allocation2 + $0x2064] ss:$16 sps:$4 sm:$0xff]  }
 0x405   :  { %7759 = vmatprep.subr.bf16.mxu0 %v11878_v63  ;;  %8497 = vmatprep.subr.bf16.mxu1 %v11881_v0  ;;  %v11973_v63 = vld [vmem:[#allocation2 + $0x206c] ss:$16 sps:$4 sm:$0xff]   ;;  %v11968_v0 = vld [vmem:[#allocation2 + $0x2060] ss:$16 sps:$4 sm:$0xff]  }
 0x408   :  { %7760 = vmatpush1.bf16.msra.mxu0 %v11876_v1  ;;  %8498 = vmatpush1.bf16.msra.mxu1 %v11879_v2  ;;  %v11971_v1 = vld [vmem:[#allocation2 + $0x2068] ss:$16 sps:$4 sm:$0xff]   ;;  %v11976_v2 = vld [vmem:[#allocation2 + $0x2084] ss:$16 sps:$4 sm:$0xff]  }
 0x409   :  { %7761 = vmatprep.subr.bf16.mxu0 %v11884_v3  ;;  %8499 = vmatprep.subr.bf16.mxu1 %v11887_v4  ;;  %v11979_v3 = vld [vmem:[#allocation2 + $0x208c] ss:$16 sps:$4 sm:$0xff]   ;;  %v11974_v4 = vld [vmem:[#allocation2 + $0x2080] ss:$16 sps:$4 sm:$0xff]  }
 0x40c   :  { %7762 = vmatpush1.bf16.msra.mxu0 %v11882_v5  ;;  %8500 = vmatpush1.bf16.msra.mxu1 %v11885_v6  ;;  %v11977_v5 = vld [vmem:[#allocation2 + $0x2088] ss:$16 sps:$4 sm:$0xff]   ;;  %v11982_v6 = vld [vmem:[#allocation2 + $0x20a4] ss:$16 sps:$4 sm:$0xff]  }
 0x40d   :  { %7763 = vmatprep.subr.bf16.mxu0 %v11890_v7  ;;  %8501 = vmatprep.subr.bf16.mxu1 %v11893_v8  ;;  %v11985_v7 = vld [vmem:[#allocation2 + $0x20ac] ss:$16 sps:$4 sm:$0xff]   ;;  %v11980_v8 = vld [vmem:[#allocation2 + $0x20a0] ss:$16 sps:$4 sm:$0xff]  }
 0x410   :  { %7764 = vmatpush1.bf16.msra.mxu0 %v11888_v9  ;;  %8502 = vmatpush1.bf16.msra.mxu1 %v11891_v10  ;;  %v11983_v9 = vld [vmem:[#allocation2 + $0x20a8] ss:$16 sps:$4 sm:$0xff]   ;;  %v11988_v10 = vld [vmem:[#allocation2 + $0x20c4] ss:$16 sps:$4 sm:$0xff]  }
 0x411   :  { %7765 = vmatprep.subr.bf16.mxu0 %v11896_v12  ;;  %8503 = vmatprep.subr.bf16.mxu1 %v11899_v13  ;;  %v11991_v12 = vld [vmem:[#allocation2 + $0x20cc] ss:$16 sps:$4 sm:$0xff]   ;;  %v11986_v13 = vld [vmem:[#allocation2 + $0x20c0] ss:$16 sps:$4 sm:$0xff]  }
 0x414   :  { %7766 = vmatpush1.bf16.msra.mxu0 %v11894_v15  ;;  %8504 = vmatpush1.bf16.msra.mxu1 %v11897_v16  ;;  %v11989_v15 = vld [vmem:[#allocation2 + $0x20c8] ss:$16 sps:$4 sm:$0xff]   ;;  %v11994_v16 = vld [vmem:[#allocation2 + $0x20e4] ss:$16 sps:$4 sm:$0xff]  }
 0x415   :  { %7767 = vmatprep.subr.bf16.mxu0 %v11902_v18  ;;  %8505 = vmatprep.subr.bf16.mxu1 %v11905_v11  ;;  %v11997_v18 = vld [vmem:[#allocation2 + $0x20ec] ss:$16 sps:$4 sm:$0xff]   ;;  %v11992_v11 = vld [vmem:[#allocation2 + $0x20e0] ss:$16 sps:$4 sm:$0xff]  }
 0x418   :  { %7768 = vmatpush1.bf16.msra.mxu0 %v11900_v20  ;;  %8506 = vmatpush1.bf16.msra.mxu1 %v11903_v14  ;;  %v11995_v20 = vld [vmem:[#allocation2 + $0x20e8] ss:$16 sps:$4 sm:$0xff]   ;;  %v12000_v14 = vld [vmem:[#allocation2 + $0x2104] ss:$16 sps:$4 sm:$0xff]  }
 0x419   :  { %7769 = vmatprep.subr.bf16.mxu0 %v11908_v22  ;;  %8507 = vmatprep.subr.bf16.mxu1 %v11911_v23  ;;  %v12003_v22 = vld [vmem:[#allocation2 + $0x210c] ss:$16 sps:$4 sm:$0xff]   ;;  %v11998_v23 = vld [vmem:[#allocation2 + $0x2100] ss:$16 sps:$4 sm:$0xff]  }
 0x41c   :  { %7770 = vmatpush1.bf16.msra.mxu0 %v11906_v24  ;;  %8508 = vmatpush1.bf16.msra.mxu1 %v11909_v17  ;;  %v12001_v24 = vld [vmem:[#allocation2 + $0x2108] ss:$16 sps:$4 sm:$0xff]   ;;  %v12006_v17 = vld [vmem:[#allocation2 + $0x2124] ss:$16 sps:$4 sm:$0xff]  }
 0x41d   :  { %7771 = vmatprep.subr.bf16.mxu0 %v11914_v26  ;;  %8509 = vmatprep.subr.bf16.mxu1 %v11917_v27  ;;  %v12009_v26 = vld [vmem:[#allocation2 + $0x212c] ss:$16 sps:$4 sm:$0xff]   ;;  %v12004_v27 = vld [vmem:[#allocation2 + $0x2120] ss:$16 sps:$4 sm:$0xff]  }
 0x420   :  { %7772 = vmatpush1.bf16.msra.mxu0 %v11912_v19  ;;  %8510 = vmatpush1.bf16.msra.mxu1 %v11915_v29  ;;  %v12007_v19 = vld [vmem:[#allocation2 + $0x2128] ss:$16 sps:$4 sm:$0xff]   ;;  %v12012_v29 = vld [vmem:[#allocation2 + $0x2144] ss:$16 sps:$4 sm:$0xff]  }
 0x421   :  { %7773 = vmatprep.subr.bf16.mxu0 %v11920_v30  ;;  %8511 = vmatprep.subr.bf16.mxu1 %v11923_v21  ;;  %v12015_v30 = vld [vmem:[#allocation2 + $0x214c] ss:$16 sps:$4 sm:$0xff]   ;;  %v12010_v21 = vld [vmem:[#allocation2 + $0x2140] ss:$16 sps:$4 sm:$0xff]  }
 0x424   :  { %7774 = vmatpush1.bf16.msra.mxu0 %v11918_v32  ;;  %8512 = vmatpush1.bf16.msra.mxu1 %v11921_v33  ;;  %v12013_v32 = vld [vmem:[#allocation2 + $0x2148] ss:$16 sps:$4 sm:$0xff]   ;;  %v12018_v33 = vld [vmem:[#allocation2 + $0x2164] ss:$16 sps:$4 sm:$0xff]  }
 0x425   :  { %7775 = vmatprep.subr.bf16.mxu0 %v11926_v25  ;;  %8513 = vmatprep.subr.bf16.mxu1 %v11929_v35  ;;  %v12021_v25 = vld [vmem:[#allocation2 + $0x216c] ss:$16 sps:$4 sm:$0xff]   ;;  %v12016_v35 = vld [vmem:[#allocation2 + $0x2160] ss:$16 sps:$4 sm:$0xff]  }
 0x428   :  { %7776 = vmatpush1.bf16.msra.mxu0 %v11924_v36  ;;  %8514 = vmatpush1.bf16.msra.mxu1 %v11927_v37  ;;  %v12019_v36 = vld [vmem:[#allocation2 + $0x2168] ss:$16 sps:$4 sm:$0xff]   ;;  %v12024_v37 = vld [vmem:[#allocation2 + $0x2184] ss:$16 sps:$4 sm:$0xff]  }
 0x429   :  { %7777 = vmatprep.subr.bf16.mxu0 %v11932_v38  ;;  %8515 = vmatprep.subr.bf16.mxu1 %v11935_v39  ;;  %v12027_v38 = vld [vmem:[#allocation2 + $0x218c] ss:$16 sps:$4 sm:$0xff]   ;;  %v12022_v39 = vld [vmem:[#allocation2 + $0x2180] ss:$16 sps:$4 sm:$0xff]  }
 0x42c   :  { %7778 = vmatpush1.bf16.msra.mxu0 %v11930_v40  ;;  %8516 = vmatpush1.bf16.msra.mxu1 %v11933_v41  ;;  %v12025_v40 = vld [vmem:[#allocation2 + $0x2188] ss:$16 sps:$4 sm:$0xff]   ;;  %v12030_v41 = vld [vmem:[#allocation2 + $0x21a4] ss:$16 sps:$4 sm:$0xff]  }
 0x42d   :  { %7779 = vmatprep.subr.bf16.mxu0 %v11938_v34  ;;  %8517 = vmatprep.subr.bf16.mxu1 %v11941_v42  ;;  %v12033_v34 = vld [vmem:[#allocation2 + $0x21ac] ss:$16 sps:$4 sm:$0xff]   ;;  %v12028_v42 = vld [vmem:[#allocation2 + $0x21a0] ss:$16 sps:$4 sm:$0xff]  }
 0x430   :  { %7780 = vmatpush1.bf16.msra.mxu0 %v11936_v44  ;;  %8518 = vmatpush1.bf16.msra.mxu1 %v11939_v28  ;;  %v12031_v44 = vld [vmem:[#allocation2 + $0x21a8] ss:$16 sps:$4 sm:$0xff]   ;;  %v12036_v28 = vld [vmem:[#allocation2 + $0x21c4] ss:$16 sps:$4 sm:$0xff]  }
 0x431   :  { %7781 = vmatprep.subr.bf16.mxu0 %v11944_v45  ;;  %8519 = vmatprep.subr.bf16.mxu1 %v11947_v47  ;;  %v12039_v45 = vld [vmem:[#allocation2 + $0x21cc] ss:$16 sps:$4 sm:$0xff]   ;;  %v12034_v47 = vld [vmem:[#allocation2 + $0x21c0] ss:$16 sps:$4 sm:$0xff]  }
 0x434   :  { %7782 = vmatpush1.bf16.msra.mxu0 %v11942_v31  ;;  %8520 = vmatpush1.bf16.msra.mxu1 %v11945_v48  ;;  %v12037_v31 = vld [vmem:[#allocation2 + $0x21c8] ss:$16 sps:$4 sm:$0xff]   ;;  %v12042_v48 = vld [vmem:[#allocation2 + $0x21e4] ss:$16 sps:$4 sm:$0xff]  }
 0x435   :  { %7792 = vmatprep.subr.bf16.mxu0 %v11952_v50  ;;  %8530 = vmatprep.subr.bf16.mxu1 %v11955_v43  ;;  %v12045_v50 = vld [vmem:[#allocation2 + $0x21ec] ss:$16 sps:$4 sm:$0xff]   ;;  %v12040_v43 = vld [vmem:[#allocation2 + $0x21e0] ss:$16 sps:$4 sm:$0xff]  }
 0x437   :  { %7784 = vmatmul.mubr.bf16.vlgmr.msra.gmra.mrb[0].mxu0 %v9002_v51  ;;  %8522 = vmatmul.mubr.bf16.vlgmr.msra.gmra.mrb[0].mxu1 %v9002_v51  ;;  %v12043_v51 = vld [vmem:[#allocation2 + $0x21e8] ss:$16 sps:$4 sm:$0xff]  }
 0x438   :  { %7793 = vmatpush1.bf16.msra.mxu0 %v11950_v53  ;;  %8531 = vmatpush1.bf16.msra.mxu1 %v11953_v46  ;;  %v12050_v53 = vld [vmem:[#allocation2 + $0x2204] ss:$16 sps:$4 sm:$0xff]   ;;  %v12053_v46 = vld [vmem:[#allocation2 + $0x220c] ss:$16 sps:$4 sm:$0xff]  }
 0x439   :  { %7794 = vmatprep.subr.bf16.mxu0 %v11958_v54  ;;  %8532 = vmatprep.subr.bf16.mxu1 %v11961_v55  ;;  %v9004_v54 = vcombine.low %v12467_v52, %v12467_v52  ;;  %v12476_v55 = vld [vmem:[%s12581_s0 + $0x88] sm:$0xff]  ;;  %v12054_v52 = vld [vmem:[#allocation2 + $0x2220] ss:$16 sps:$4 sm:$0xff]  }
 0x43a   :  { %7824 = vmatprep.mubr.bf16.mxu0 %v9005_v56  ;;  %8562 = vmatprep.mubr.bf16.mxu1 %v9005_v56  ;;  %v12048_v56 = vld [vmem:[#allocation2 + $0x2200] ss:$16 sps:$4 sm:$0xff]  }
 0x43c   :  { %7795 = vmatpush1.bf16.msra.mxu0 %v11956_v49  ;;  %8533 = vmatpush1.bf16.msra.mxu1 %v11959_v57  ;;  %v12051_v49 = vld [vmem:[#allocation2 + $0x2208] ss:$16 sps:$4 sm:$0xff]   ;;  %v12056_v57 = vld [vmem:[#allocation2 + $0x2224] ss:$16 sps:$4 sm:$0xff]  }
 0x43d   :  { %7796 = vmatprep.subr.bf16.mxu0 %v11964_v58  ;;  %8534 = vmatprep.subr.bf16.mxu1 %v11967_v59  ;;  %v12059_v58 = vld [vmem:[#allocation2 + $0x222c] ss:$16 sps:$4 sm:$0xff]   ;;  %v9007_v59 = vcombine.high %v12476_v55, %v12476_v55 }
 0x440   :  { %7797 = vmatpush1.bf16.msra.mxu0 %v11962_v60  ;;  %8535 = vmatpush1.bf16.msra.mxu1 %v11965_v61  ;;  %v12057_v60 = vld [vmem:[#allocation2 + $0x2228] ss:$16 sps:$4 sm:$0xff]   ;;  %v12062_v61 = vld [vmem:[#allocation2 + $0x2244] ss:$16 sps:$4 sm:$0xff]  }
 0x441   :  { %7798 = vmatprep.subr.bf16.mxu0 %v11970_v62  ;;  %8536 = vmatprep.subr.bf16.mxu1 %v11973_v63  ;;  %v12065_v62 = vld [vmem:[#allocation2 + $0x224c] ss:$16 sps:$4 sm:$0xff]   ;;  %v12060_v63 = vld [vmem:[#allocation2 + $0x2240] ss:$16 sps:$4 sm:$0xff]  }
 0x444   :  { %7799 = vmatpush1.bf16.msra.mxu0 %v11968_v0  ;;  %8537 = vmatpush1.bf16.msra.mxu1 %v11971_v1  ;;  %v12063_v0 = vld [vmem:[#allocation2 + $0x2248] ss:$16 sps:$4 sm:$0xff]   ;;  %v12068_v1 = vld [vmem:[#allocation2 + $0x2264] ss:$16 sps:$4 sm:$0xff]  }
 0x445   :  { %7800 = vmatprep.subr.bf16.mxu0 %v11976_v2  ;;  %8538 = vmatprep.subr.bf16.mxu1 %v11979_v3  ;;  %v12071_v2 = vld [vmem:[#allocation2 + $0x226c] ss:$16 sps:$4 sm:$0xff]   ;;  %v12066_v3 = vld [vmem:[#allocation2 + $0x2260] ss:$16 sps:$4 sm:$0xff]  }
 0x448   :  { %7801 = vmatpush1.bf16.msra.mxu0 %v11974_v4  ;;  %8539 = vmatpush1.bf16.msra.mxu1 %v11977_v5  ;;  %v12069_v4 = vld [vmem:[#allocation2 + $0x2268] ss:$16 sps:$4 sm:$0xff]   ;;  %v12074_v5 = vld [vmem:[#allocation2 + $0x2284] ss:$16 sps:$4 sm:$0xff]  }
 0x449   :  { %7802 = vmatprep.subr.bf16.mxu0 %v11982_v6  ;;  %8540 = vmatprep.subr.bf16.mxu1 %v11985_v7  ;;  %v12077_v6 = vld [vmem:[#allocation2 + $0x228c] ss:$16 sps:$4 sm:$0xff]   ;;  %v12072_v7 = vld [vmem:[#allocation2 + $0x2280] ss:$16 sps:$4 sm:$0xff]  }
 0x44c   :  { %7803 = vmatpush1.bf16.msra.mxu0 %v11980_v8  ;;  %8541 = vmatpush1.bf16.msra.mxu1 %v11983_v9  ;;  %v12075_v8 = vld [vmem:[#allocation2 + $0x2288] ss:$16 sps:$4 sm:$0xff]   ;;  %v12080_v9 = vld [vmem:[#allocation2 + $0x22a4] ss:$16 sps:$4 sm:$0xff]  }
 0x44d   :  { %7804 = vmatprep.subr.bf16.mxu0 %v11988_v10  ;;  %8542 = vmatprep.subr.bf16.mxu1 %v11991_v12  ;;  %v12083_v10 = vld [vmem:[#allocation2 + $0x22ac] ss:$16 sps:$4 sm:$0xff]   ;;  %v12078_v12 = vld [vmem:[#allocation2 + $0x22a0] ss:$16 sps:$4 sm:$0xff]  }
 0x450   :  { %7805 = vmatpush1.bf16.msra.mxu0 %v11986_v13  ;;  %8543 = vmatpush1.bf16.msra.mxu1 %v11989_v15  ;;  %v12081_v13 = vld [vmem:[#allocation2 + $0x22a8] ss:$16 sps:$4 sm:$0xff]   ;;  %v12086_v15 = vld [vmem:[#allocation2 + $0x22c4] ss:$16 sps:$4 sm:$0xff]  }
 0x451   :  { %7806 = vmatprep.subr.bf16.mxu0 %v11994_v16  ;;  %8544 = vmatprep.subr.bf16.mxu1 %v11997_v18  ;;  %v12089_v16 = vld [vmem:[#allocation2 + $0x22cc] ss:$16 sps:$4 sm:$0xff]   ;;  %v12084_v18 = vld [vmem:[#allocation2 + $0x22c0] ss:$16 sps:$4 sm:$0xff]  }
 0x454   :  { %7807 = vmatpush1.bf16.msra.mxu0 %v11992_v11  ;;  %8545 = vmatpush1.bf16.msra.mxu1 %v11995_v20  ;;  %v12087_v11 = vld [vmem:[#allocation2 + $0x22c8] ss:$16 sps:$4 sm:$0xff]   ;;  %v12092_v20 = vld [vmem:[#allocation2 + $0x22e4] ss:$16 sps:$4 sm:$0xff]  }
 0x455   :  { %7808 = vmatprep.subr.bf16.mxu0 %v12000_v14  ;;  %8546 = vmatprep.subr.bf16.mxu1 %v12003_v22  ;;  %v12095_v14 = vld [vmem:[#allocation2 + $0x22ec] ss:$16 sps:$4 sm:$0xff]   ;;  %v12090_v22 = vld [vmem:[#allocation2 + $0x22e0] ss:$16 sps:$4 sm:$0xff]  }
 0x458   :  { %7809 = vmatpush1.bf16.msra.mxu0 %v11998_v23  ;;  %8547 = vmatpush1.bf16.msra.mxu1 %v12001_v24  ;;  %v12093_v23 = vld [vmem:[#allocation2 + $0x22e8] ss:$16 sps:$4 sm:$0xff]   ;;  %v12098_v24 = vld [vmem:[#allocation2 + $0x2304] ss:$16 sps:$4 sm:$0xff]  }
 0x459   :  { %7810 = vmatprep.subr.bf16.mxu0 %v12006_v17  ;;  %8548 = vmatprep.subr.bf16.mxu1 %v12009_v26  ;;  %v12101_v17 = vld [vmem:[#allocation2 + $0x230c] ss:$16 sps:$4 sm:$0xff]   ;;  %v12096_v26 = vld [vmem:[#allocation2 + $0x2300] ss:$16 sps:$4 sm:$0xff]  }
 0x45c   :  { %7811 = vmatpush1.bf16.msra.mxu0 %v12004_v27  ;;  %8549 = vmatpush1.bf16.msra.mxu1 %v12007_v19  ;;  %v12099_v27 = vld [vmem:[#allocation2 + $0x2308] ss:$16 sps:$4 sm:$0xff]   ;;  %v12104_v19 = vld [vmem:[#allocation2 + $0x2324] ss:$16 sps:$4 sm:$0xff]  }
 0x45d   :  { %7812 = vmatprep.subr.bf16.mxu0 %v12012_v29  ;;  %8550 = vmatprep.subr.bf16.mxu1 %v12015_v30  ;;  %v12107_v29 = vld [vmem:[#allocation2 + $0x232c] ss:$16 sps:$4 sm:$0xff]   ;;  %v12102_v30 = vld [vmem:[#allocation2 + $0x2320] ss:$16 sps:$4 sm:$0xff]  }
 0x460   :  { %7813 = vmatpush1.bf16.msra.mxu0 %v12010_v21  ;;  %8551 = vmatpush1.bf16.msra.mxu1 %v12013_v32  ;;  %v12105_v21 = vld [vmem:[#allocation2 + $0x2328] ss:$16 sps:$4 sm:$0xff]   ;;  %v12110_v32 = vld [vmem:[#allocation2 + $0x2344] ss:$16 sps:$4 sm:$0xff]  }
 0x461   :  { %7814 = vmatprep.subr.bf16.mxu0 %v12018_v33  ;;  %8552 = vmatprep.subr.bf16.mxu1 %v12021_v25  ;;  %v12113_v33 = vld [vmem:[#allocation2 + $0x234c] ss:$16 sps:$4 sm:$0xff]   ;;  %v12108_v25 = vld [vmem:[#allocation2 + $0x2340] ss:$16 sps:$4 sm:$0xff]  }
 0x464   :  { %7815 = vmatpush1.bf16.msra.mxu0 %v12016_v35  ;;  %8553 = vmatpush1.bf16.msra.mxu1 %v12019_v36  ;;  %v12111_v35 = vld [vmem:[#allocation2 + $0x2348] ss:$16 sps:$4 sm:$0xff]   ;;  %v12116_v36 = vld [vmem:[#allocation2 + $0x2364] ss:$16 sps:$4 sm:$0xff]  }
 0x465   :  { %7816 = vmatprep.subr.bf16.mxu0 %v12024_v37  ;;  %8554 = vmatprep.subr.bf16.mxu1 %v12027_v38  ;;  %v12119_v37 = vld [vmem:[#allocation2 + $0x236c] ss:$16 sps:$4 sm:$0xff]   ;;  %v12114_v38 = vld [vmem:[#allocation2 + $0x2360] ss:$16 sps:$4 sm:$0xff]  }
 0x468   :  { %7817 = vmatpush1.bf16.msra.mxu0 %v12022_v39  ;;  %8555 = vmatpush1.bf16.msra.mxu1 %v12025_v40  ;;  %v12117_v39 = vld [vmem:[#allocation2 + $0x2368] ss:$16 sps:$4 sm:$0xff]   ;;  %v12122_v40 = vld [vmem:[#allocation2 + $0x2384] ss:$16 sps:$4 sm:$0xff]  }
 0x469   :  { %7818 = vmatprep.subr.bf16.mxu0 %v12030_v41  ;;  %8556 = vmatprep.subr.bf16.mxu1 %v12033_v34  ;;  %v12125_v41 = vld [vmem:[#allocation2 + $0x238c] ss:$16 sps:$4 sm:$0xff]   ;;  %v12120_v34 = vld [vmem:[#allocation2 + $0x2380] ss:$16 sps:$4 sm:$0xff]  }
 0x46c   :  { %7819 = vmatpush1.bf16.msra.mxu0 %v12028_v42  ;;  %8557 = vmatpush1.bf16.msra.mxu1 %v12031_v44  ;;  %v12123_v42 = vld [vmem:[#allocation2 + $0x2388] ss:$16 sps:$4 sm:$0xff]   ;;  %v12128_v44 = vld [vmem:[#allocation2 + $0x23a4] ss:$16 sps:$4 sm:$0xff]  }
 0x46d   :  { %7820 = vmatprep.subr.bf16.mxu0 %v12036_v28  ;;  %8558 = vmatprep.subr.bf16.mxu1 %v12039_v45  ;;  %v12131_v28 = vld [vmem:[#allocation2 + $0x23ac] ss:$16 sps:$4 sm:$0xff]   ;;  %v12126_v45 = vld [vmem:[#allocation2 + $0x23a0] ss:$16 sps:$4 sm:$0xff]  }
 0x470   :  { %7821 = vmatpush1.bf16.msra.mxu0 %v12034_v47  ;;  %8559 = vmatpush1.bf16.msra.mxu1 %v12037_v31  ;;  %v12129_v47 = vld [vmem:[#allocation2 + $0x23a8] ss:$16 sps:$4 sm:$0xff]   ;;  %v12134_v31 = vld [vmem:[#allocation2 + $0x23c4] ss:$16 sps:$4 sm:$0xff]  }
 0x471   :  { %7822 = vmatprep.subr.bf16.mxu0 %v12042_v48  ;;  %8560 = vmatprep.subr.bf16.mxu1 %v12045_v50  ;;  %v12137_v48 = vld [vmem:[#allocation2 + $0x23cc] ss:$16 sps:$4 sm:$0xff]   ;;  %v12132_v50 = vld [vmem:[#allocation2 + $0x23c0] ss:$16 sps:$4 sm:$0xff]  }
 0x474   :  { %7823 = vmatpush1.bf16.msra.mxu0 %v12040_v43  ;;  %8561 = vmatpush1.bf16.msra.mxu1 %v12043_v51  ;;  %v12135_v43 = vld [vmem:[#allocation2 + $0x23c8] ss:$16 sps:$4 sm:$0xff]   ;;  %v12140_v51 = vld [vmem:[#allocation2 + $0x23e4] ss:$16 sps:$4 sm:$0xff]  }
 0x475   :  { %7833 = vmatprep.subr.bf16.mxu0 %v12050_v53  ;;  %8571 = vmatprep.subr.bf16.mxu1 %v12053_v46  ;;  %v12143_v53 = vld [vmem:[#allocation2 + $0x23ec] ss:$16 sps:$4 sm:$0xff]   ;;  %v12138_v46 = vld [vmem:[#allocation2 + $0x23e0] ss:$16 sps:$4 sm:$0xff]  }
 0x477   :  { %7825 = vmatmul.mubr.bf16.vlgmr.msra.gmra.mrb[0].mxu0 %v9004_v54  ;;  %8563 = vmatmul.mubr.bf16.vlgmr.msra.gmra.mrb[0].mxu1 %v9004_v54  ;;  %v12141_v54 = vld [vmem:[#allocation2 + $0x23e8] ss:$16 sps:$4 sm:$0xff]  }
 0x478   :  { %7834 = vmatpush1.bf16.msra.mxu0 %v12048_v56  ;;  %8572 = vmatpush1.bf16.msra.mxu1 %v12051_v49  ;;  %v12146_v56 = vld [vmem:[%s12584_s3 + $0x40] sm:$0xff]  }
 0x479   :  { %7835 = vmatprep.subr.bf16.mxu0 %v12056_v57  ;;  %8573 = vmatprep.subr.bf16.mxu1 %v12059_v58  ;;  %v12147_v49 = vld [vmem:[%s12584_s3 + $0xc0] sm:$0xff]   ;;  %v9006_v57 = vcombine.low %v12476_v55, %v12476_v55  ;;  %v12151_v55 = vld [vmem:[%s12584_s3 + $0xc8] sm:$0xff]  }
 0x47a   :  { %7865 = vmatprep.mubr.bf16.mxu0 %v9007_v59  ;;  %8603 = vmatprep.mubr.bf16.mxu1 %v9007_v59  ;;  %v12148_v58 = vld [vmem:[%s12584_s3] sm:$0xff]  }
 0x47b   :  { %v12149_v59 = vld [vmem:[%s12584_s3 + $0x80] sm:$0xff]  }
 0x47c   :  { %7836 = vmatpush1.bf16.msra.mxu0 %v12054_v52  ;;  %8574 = vmatpush1.bf16.msra.mxu1 %v12057_v60  ;;  %v12150_v52 = vld [vmem:[%s12584_s3 + $0x48] sm:$0xff]  }
 0x47d   :  { %7837 = vmatprep.subr.bf16.mxu0 %v12062_v61  ;;  %8575 = vmatprep.subr.bf16.mxu1 %v12065_v62  ;;  %v12152_v60 = vld [vmem:[%s12584_s3 + $0x8] sm:$0xff]   ;;  %v12154_v62 = vld [vmem:[%s12584_s3 + $0x50] sm:$0xff]  }
 0x47e   :  { %v12153_v61 = vld [vmem:[%s12584_s3 + $0x88] sm:$0xff]  }
 0x480   :  { %7838 = vmatpush1.bf16.msra.mxu0 %v12060_v63  ;;  %8576 = vmatpush1.bf16.msra.mxu1 %v12063_v0  ;;  %v12155_v63 = vld [vmem:[%s12584_s3 + $0xd0] sm:$0xff]  }
 0x481   :  { %7839 = vmatprep.subr.bf16.mxu0 %v12068_v1  ;;  %8577 = vmatprep.subr.bf16.mxu1 %v12071_v2  ;;  %v12156_v0 = vld [vmem:[%s12584_s3 + $0x10] sm:$0xff]   ;;  %v12158_v2 = vld [vmem:[%s12584_s3 + $0x58] sm:$0xff]  }
 0x482   :  { %v12157_v1 = vld [vmem:[%s12584_s3 + $0x90] sm:$0xff]  }
 0x484   :  { %7840 = vmatpush1.bf16.msra.mxu0 %v12066_v3  ;;  %8578 = vmatpush1.bf16.msra.mxu1 %v12069_v4  ;;  %v12159_v3 = vld [vmem:[%s12584_s3 + $0xd8] sm:$0xff]  }
 0x485   :  { %7841 = vmatprep.subr.bf16.mxu0 %v12074_v5  ;;  %8579 = vmatprep.subr.bf16.mxu1 %v12077_v6  ;;  %v12160_v4 = vld [vmem:[%s12584_s3 + $0x18] sm:$0xff]   ;;  %v12162_v6 = vld [vmem:[%s12584_s3 + $0x60] sm:$0xff]  }
 0x486   :  { %v12161_v5 = vld [vmem:[%s12584_s3 + $0x98] sm:$0xff]  }
 0x488   :  { %7842 = vmatpush1.bf16.msra.mxu0 %v12072_v7  ;;  %8580 = vmatpush1.bf16.msra.mxu1 %v12075_v8  ;;  %v12163_v7 = vld [vmem:[%s12584_s3 + $0xe0] sm:$0xff]  }
 0x489   :  { %7843 = vmatprep.subr.bf16.mxu0 %v12080_v9  ;;  %8581 = vmatprep.subr.bf16.mxu1 %v12083_v10  ;;  %v12164_v8 = vld [vmem:[%s12584_s3 + $0x20] sm:$0xff]   ;;  %v12166_v10 = vld [vmem:[%s12584_s3 + $0x68] sm:$0xff]  }
 0x48a   :  { %v12165_v9 = vld [vmem:[%s12584_s3 + $0xa0] sm:$0xff]  }
 0x48c   :  { %7844 = vmatpush1.bf16.msra.mxu0 %v12078_v12  ;;  %8582 = vmatpush1.bf16.msra.mxu1 %v12081_v13  ;;  %v12167_v12 = vld [vmem:[%s12584_s3 + $0xe8] sm:$0xff]  }
 0x48d   :  { %7845 = vmatprep.subr.bf16.mxu0 %v12086_v15  ;;  %8583 = vmatprep.subr.bf16.mxu1 %v12089_v16  ;;  %v12168_v13 = vld [vmem:[%s12584_s3 + $0x28] sm:$0xff]   ;;  %v12170_v16 = vld [vmem:[%s12584_s3 + $0x70] sm:$0xff]  }
 0x48e   :  { %v12169_v15 = vld [vmem:[%s12584_s3 + $0xa8] sm:$0xff]  }
 0x490   :  { %7846 = vmatpush1.bf16.msra.mxu0 %v12084_v18  ;;  %8584 = vmatpush1.bf16.msra.mxu1 %v12087_v11  ;;  %v12171_v18 = vld [vmem:[%s12584_s3 + $0xf0] sm:$0xff]  }
 0x491   :  { %7847 = vmatprep.subr.bf16.mxu0 %v12092_v20  ;;  %8585 = vmatprep.subr.bf16.mxu1 %v12095_v14  ;;  %v12172_v11 = vld [vmem:[%s12584_s3 + $0x30] sm:$0xff]   ;;  %v12174_v14 = vld [vmem:[%s12584_s3 + $0x78] sm:$0xff]  }
 0x492   :  { %v12173_v20 = vld [vmem:[%s12584_s3 + $0xb0] sm:$0xff]  }
 0x494   :  { %7848 = vmatpush1.bf16.msra.mxu0 %v12090_v22  ;;  %8586 = vmatpush1.bf16.msra.mxu1 %v12093_v23  ;;  %v12175_v22 = vld [vmem:[%s12584_s3 + $0xf8] sm:$0xff]  }
 0x495   :  { %7849 = vmatprep.subr.bf16.mxu0 %v12098_v24  ;;  %8587 = vmatprep.subr.bf16.mxu1 %v12101_v17  ;;  %v12176_v23 = vld [vmem:[%s12584_s3 + $0x38] sm:$0xff]   ;;  %v1230_v17 = vlaneseq }
 0x496   :  { %v12177_v24 = vld [vmem:[%s12584_s3 + $0xb8] sm:$0xff]  }
 0x498   :  { %7850 = vmatpush1.bf16.msra.mxu0 %v12096_v26  ;;  %8588 = vmatpush1.bf16.msra.mxu1 %v12099_v27  ;;  %v1231_v26 = vshrl.u32 %v1230_v17, 7 }
 0x499   :  { %7851 = vmatprep.subr.bf16.mxu0 %v12104_v19  ;;  %8589 = vmatprep.subr.bf16.mxu1 %v12107_v29  ;;  %v1228_v29 = vld [vmem:[#allocation4] sm:$0xf] }
 0x49a   :  { %v1232_v27 = vsub.s32 0, %v1231_v26  ;;  %v1240_v19 = vsub.s32 2, %v1231_v26 }
 0x49c   :  { %7852 = vmatpush1.bf16.msra.mxu0 %v12102_v30  ;;  %8590 = vmatpush1.bf16.msra.mxu1 %v12105_v21  ;;  %v1236_v30 = vsub.s32 1, %v1231_v26  ;;  %v1244_v21 = vsub.s32 3, %v1231_v26 }
 0x49d   :  { %7853 = vmatprep.subr.bf16.mxu0 %v12110_v32  ;;  %8591 = vmatprep.subr.bf16.mxu1 %v12113_v33  ;;  %v1233_v32 = vrot.slane %v1228_v29, %v1232_v27  ;;  %v1241_v33 = vrot.slane %v1228_v29, %v1240_v19 }
 0x4a0   :  { %7854 = vmatpush1.bf16.msra.mxu0 %v12108_v25  ;;  %8592 = vmatpush1.bf16.msra.mxu1 %v12111_v35  ;;  %v1237_v25 = vrot.slane %v1228_v29, %v1236_v30  ;;  %v1245_v35 = vrot.slane %v1228_v29, %v1244_v21 }
 0x4a1   :  { %7855 = vmatprep.subr.bf16.mxu0 %v12116_v36  ;;  %8593 = vmatprep.subr.bf16.mxu1 %v12119_v37 }
 0x4a4   :  { %7856 = vmatpush1.bf16.msra.mxu0 %v12114_v38  ;;  %8594 = vmatpush1.bf16.msra.mxu1 %v12117_v39 }
 0x4a5   :  { %7857 = vmatprep.subr.bf16.mxu0 %v12122_v40  ;;  %8595 = vmatprep.subr.bf16.mxu1 %v12125_v41 }
 0x4a8   :  { %7858 = vmatpush1.bf16.msra.mxu0 %v12120_v34  ;;  %8596 = vmatpush1.bf16.msra.mxu1 %v12123_v42 }
 0x4a9   :  { %7859 = vmatprep.subr.bf16.mxu0 %v12128_v44  ;;  %8597 = vmatprep.subr.bf16.mxu1 %v12131_v28 }
 0x4ac   :  { %7860 = vmatpush1.bf16.msra.mxu0 %v12126_v45  ;;  %8598 = vmatpush1.bf16.msra.mxu1 %v12129_v47 }
 0x4ad   :  { %7861 = vmatprep.subr.bf16.mxu0 %v12134_v31  ;;  %8599 = vmatprep.subr.bf16.mxu1 %v12137_v48 }
 0x4b0   :  { %7862 = vmatpush1.bf16.msra.mxu0 %v12132_v50  ;;  %8600 = vmatpush1.bf16.msra.mxu1 %v12135_v43 }
 0x4b1   :  { %7863 = vmatprep.subr.bf16.mxu0 %v12140_v51  ;;  %8601 = vmatprep.subr.bf16.mxu1 %v12143_v53 }
 0x4b4   :  { %7864 = vmatpush1.bf16.msra.mxu0 %v12138_v46  ;;  %8602 = vmatpush1.bf16.msra.mxu1 %v12141_v54 }
 0x4b5   :  { %10193 = vmatprep.subr.bf16.mxu0 %v12146_v56  ;;  %10215 = vmatprep.subr.bf16.mxu1 %v12147_v49 }
 0x4b7   :  { %7866 = vmatmul.mubr.bf16.vlgmr.msra.gmra.mrb[0].mxu0 %v9006_v57  ;;  %8604 = vmatmul.mubr.bf16.vlgmr.msra.gmra.mrb[0].mxu1 %v9006_v57  ;;  %v10160_v57 = vld [vmem:[#allocation6] ss:$0 sm:$0xff] }
 0x4b8   :  { %10194 = vmatpush3.bf16.msra.mxu0 %v12148_v58  ;;  %10216 = vmatpush3.bf16.msra.mxu1 %v12149_v59 }
 0x4b9   :  { %10195 = vmatprep.subr.bf16.mxu0 %v12150_v52  ;;  %10217 = vmatprep.subr.bf16.mxu1 %v12151_v55 }
 0x4bc   :  { %10196 = vmatpush3.bf16.msra.mxu0 %v12152_v60  ;;  %10218 = vmatpush3.bf16.msra.mxu1 %v12153_v61 }
 0x4bd   :  { %10197 = vmatprep.subr.bf16.mxu0 %v12154_v62  ;;  %10219 = vmatprep.subr.bf16.mxu1 %v12155_v63 }
 0x4c0   :  { %10198 = vmatpush3.bf16.msra.mxu0 %v12156_v0  ;;  %10220 = vmatpush3.bf16.msra.mxu1 %v12157_v1 }
 0x4c1   :  { %10199 = vmatprep.subr.bf16.mxu0 %v12158_v2  ;;  %10221 = vmatprep.subr.bf16.mxu1 %v12159_v3 }
 0x4c4   :  { %10200 = vmatpush3.bf16.msra.mxu0 %v12160_v4  ;;  %10222 = vmatpush3.bf16.msra.mxu1 %v12161_v5 }
 0x4c5   :  { %10201 = vmatprep.subr.bf16.mxu0 %v12162_v6  ;;  %10223 = vmatprep.subr.bf16.mxu1 %v12163_v7 }
 0x4c8   :  { %10202 = vmatpush3.bf16.msra.mxu0 %v12164_v8  ;;  %10224 = vmatpush3.bf16.msra.mxu1 %v12165_v9 }
 0x4c9   :  { %10203 = vmatprep.subr.bf16.mxu0 %v12166_v10  ;;  %10225 = vmatprep.subr.bf16.mxu1 %v12167_v12 }
 0x4cc   :  { %10204 = vmatpush3.bf16.msra.mxu0 %v12168_v13  ;;  %10226 = vmatpush3.bf16.msra.mxu1 %v12169_v15 }
 0x4cd   :  { %10205 = vmatprep.subr.bf16.mxu0 %v12170_v16  ;;  %10227 = vmatprep.subr.bf16.mxu1 %v12171_v18 }
 0x4d0   :  { %10206 = vmatpush3.bf16.msra.mxu0 %v12172_v11  ;;  %10228 = vmatpush3.bf16.msra.mxu1 %v12173_v20 }
 0x4d1   :  { %10207 = vmatprep.subr.bf16.mxu0 %v12174_v14  ;;  %10229 = vmatprep.subr.bf16.mxu1 %v12175_v22 }
 0x4d4   :  { %10208 = vmatpush3.bf16.msra.mxu0 %v12176_v23  ;;  %10230 = vmatpush3.bf16.msra.mxu1 %v12177_v24 }
 0x58a   :  { %v7867_v36 = vpop.f32.mrb[0].mxu0  ;;  %v8605_v37 = vpop.f32.mrb[0].mxu1 }
 0x58b   :  { %v10237_v38 = vadd.f32 %v7867_v36, %v1233_v32  ;;  %v10239_v39 = vadd.f32 %v8605_v37, %v1241_v33  ;;  %v7869_v40 = vpop.f32.mrb[1].mxu0  ;;  %v8607_v41 = vpop.f32.mrb[1].mxu1 }
 0x58c   :  { %v10238_v34 = vadd.f32 %v7869_v40, %v1237_v25  ;;  %v10240_v42 = vadd.f32 %v8607_v41, %v1245_v35  ;;  %v7871_v44 = vpop.f32.mrb[2].mxu0  ;;  %v8609_v28 = vpop.f32.mrb[2].mxu1 }
 0x58d   :  { %v8612_v45 = vmax.f32 %v10237_v38, 0.0  ;;  %v8614_v47 = vmax.f32 %v10239_v39, 0.0  ;;  %v7872_v31 = vpop.f32.mrb[3].mxu0  ;;  %v8610_v48 = vpop.f32.mrb[3].mxu1 }
 0x58e   :  { %v8613_v50 = vmax.f32 %v10238_v34, 0.0  ;;  %v8615_v43 = vmax.f32 %v10240_v42, 0.0 }
 0x58f   :  { %v8616_v46 = vpack.c.bf16 %v8612_v45, %v8612_v45  ;;  %v8618_v54 = vpack.c.bf16 %v8614_v47, %v8614_v47 }
 0x590   :  { %v8617_v51 = vpack.c.bf16 %v8613_v50, %v8613_v50  ;;  %v8619_v53 = vpack.c.bf16 %v8615_v43, %v8615_v43 }
 0x592   :  { %8915 = vmatprep.mubr.bf16.mxu0 %v8617_v51  ;;  %8955 = vmatprep.mubr.bf16.mxu1 %v8619_v53 }
 0x593   :  { %8916 = vmatmul.mubr.bf16.vlgmr.msra.gmra.mrb[4].mxu0 %v8616_v46  ;;  %8956 = vmatmul.mubr.bf16.vlgmr.msra.gmra.mrb[4].mxu1 %v8618_v54 }
 0x666   :  { %v10209_v56 = vpop.f32.mrb[4].mxu0  ;;  %v10231_v49 = vpop.f32.mrb[4].mxu1 }
 0x667   :  { %v10210_v58 = vpop.f32.mrb[5].mxu0  ;;  %v10232_v59 = vpop.f32.mrb[5].mxu1 }
 0x668   :  { %v10211_v52 = vadd.f32 %v10210_v58, %v10209_v56  ;;  %v10233_v55 = vadd.f32 %v10232_v59, %v10231_v49  ;;  %v10212_v60 = vpop.f32.mrb[6].mxu0  ;;  %v10234_v61 = vpop.f32.mrb[6].mxu1 }
 0x669   :  { %v10213_v62 = vpop.f32.mrb[7].mxu0  ;;  %v10235_v63 = vpop.f32.mrb[7].mxu1 }
 0x66a   :  { %v8918_v0 = vadd.f32 %v10211_v52, %v10160_v57 }
 0x66c   :  { %v8958_v1 = vadd.f32 %v10233_v55, %v8918_v0 }
 0x66e   :  { %v8963_v2 = vmax.f32 %v8958_v1, 0.0 }
 0x670   :  { %8965 = vst.msk [vmem:[%s12586_s5] sm:$0xff] %vm8964_vm0, %v8963_v2 }
 0x671   :  { %8970 = vsyncpa [#allocation3], 1 }
 0x672   :  { %8971 = vsyncpa [#allocation5], 1 }

</bundles_post_ra>
